<compile_context>
chip_gen: v6e
topology: v6e:2x2x1
jax: 0.10.0
libtpu: 0.0.40
codegen_flags: <defaults>
</compile_context>

<pallas_src>
import functools

import jax
import jax.numpy as jnp
from jax.experimental import pallas as pl
from jax.experimental.pallas import tpu as pltpu

IN_CH = 66
HID_CH = 64
OUT_CH = 1
LN_EPS = 1e-5


def mlp_kernel(x_ref, w1_ref, b1_ref, w2_ref, b2_ref, o_ref, *, lane_dense):
    # x_ref : (TN, 66)        VMEM (bf16 or f32)
    # w1_ref: (66, 64)        VMEM (same dtype as x)
    # b1_ref: (1, 64)         VMEM f32
    # w2_ref: (1, 64)         VMEM f32   (fc2 weight as a row)
    # b2_ref: (1,)            SMEM f32   (fc2 bias scalar)
    # o_ref : (TN//128, 128)  VMEM if lane_dense else (TN, 1)
    tn = x_ref.shape[0]

    # fc: (TN, 66) @ (66, 64) with f32 accumulation (native bf16 MXU path when
    # inputs are bf16).
    h = jnp.dot(x_ref[...], w1_ref[...], preferred_element_type=jnp.float32)
    h = h + b1_ref[...]

    # layer_norm over the last dim (no affine), eps = 1e-5, all in f32.
    mean = jnp.mean(h, axis=-1, keepdims=True)
    centered = h - mean
    var = jnp.mean(centered * centered, axis=-1, keepdims=True)
    h = centered * jax.lax.rsqrt(var + LN_EPS)

    # relu
    h = jnp.maximum(h, 0.0)

    # fc2 as VPU multiply + lane reduce (a (TN,64)@(64,1) MXU matmul would
    # waste the MXU / result FIFO for ~0 useful FLOPs).
    col = jnp.sum(h * w2_ref[...], axis=-1, keepdims=True)       # (TN, 1) f32

    if lane_dense:
        # Sublane -> lane relayout of the per-row scalars, then dense stores.
        out = col.reshape(tn // 128, 128) + b2_ref[0]
        o_ref[...] = out.astype(o_ref.dtype)
    else:
        o_ref[...] = (col + b2_ref[0]).astype(o_ref.dtype)


def _round_up(x, m):
    return (x + m - 1) // m * m


def _num_tensorcores():
    """Best-effort TensorCore count (v7x has 2 per chip); falls back to 1."""
    try:
        kind = jax.devices()[0].device_kind.lower()
    except Exception:
        return 1
    return 2 if ("v7" in kind or "7x" in kind) else 1


def _choose_tile(n_rows_padded, tile_n, num_cores):
    """Row-tile size.  Multiples of 1024 when the grid has >1 step (keeps the
    lane-dense out block's sublane dim a multiple of 8); the full 128-padded
    row count otherwise (no forced split on single-TC chips).  On multi-TC
    chips, cap the tile so each core gets >= 2 grid steps when rows allow."""
    tile_n = max(1024, (tile_n // 1024) * 1024)
    if num_cores > 1 and n_rows_padded >= 2 * num_cores * 1024:
        cap = max(1024, (n_rows_padded // (2 * num_cores)) // 1024 * 1024)
        tile_n = min(tile_n, cap)
    if n_rows_padded <= tile_n:
        return n_rows_padded
    return tile_n


def mlp_forward(x, w1, b1, w2, b2, *, tile_n=8192, io_dtype=jnp.bfloat16,
                out_dtype=jnp.float32, lane_dense_out=True, x_buffers=2,
                vmem_limit_bytes=None):
    """x: (N, 66) -> (N, 1).

    io_dtype: dtype x / w1 are handed to the kernel in (None = leave as-is);
    LayerNorm and all accumulation are always f32 in-kernel."""
    n = x.shape[0]
    if io_dtype is not None:
        x = x.astype(io_dtype)
        w1 = w1.astype(io_dtype)
    else:
        w1 = w1.astype(x.dtype)
    b1 = b1.reshape(1, HID_CH).astype(jnp.float32)
    w2 = w2.reshape(1, HID_CH).astype(jnp.float32)
    b2 = b2.reshape(1).astype(jnp.float32)

    # Pad rows to a multiple of 128 so every block is layout-friendly.
    # No-op (and no copy) for already-aligned N.
    n_pad = _round_up(max(n, 1), 128)
    if n_pad != n:
        x = jnp.pad(x, ((0, n_pad - n), (0, 0)))

    tile = _choose_tile(n_pad, tile_n, _num_tensorcores())
    grid = (pl.cdiv(n_pad, tile),)
    rows = grid[0] * tile                      # rows covered by full blocks

    x_spec_kwargs = {}
    if x_buffers is not None and x_buffers != 2:
        x_spec_kwargs["pipeline_mode"] = pl.Buffered(x_buffers)

    in_specs = [
        pl.BlockSpec((tile, IN_CH), lambda i: (i, 0), **x_spec_kwargs),  # x tile
        pl.BlockSpec((IN_CH, HID_CH), lambda i: (0, 0)),    # fc weight (resident)
        pl.BlockSpec((1, HID_CH), lambda i: (0, 0)),        # fc bias   (resident)
        pl.BlockSpec((1, HID_CH), lambda i: (0, 0)),        # fc2 weight row
        pl.BlockSpec(memory_space=pltpu.MemorySpace.SMEM),  # fc2 bias scalar
    ]
    if lane_dense_out:
        out_shape = jax.ShapeDtypeStruct((rows // 128, 128), out_dtype)
        out_spec = pl.BlockSpec((tile // 128, 128), lambda i: (i, 0))
    else:
        out_shape = jax.ShapeDtypeStruct((rows, OUT_CH), out_dtype)
        out_spec = pl.BlockSpec((tile, OUT_CH), lambda i: (i, 0))

    in_itemsize = jnp.dtype(x.dtype).itemsize
    cost = pl.CostEstimate(
        flops=2 * rows * IN_CH * HID_CH + 12 * rows * HID_CH,
        transcendentals=rows,                                   # rsqrt per row
        bytes_accessed=rows * IN_CH * in_itemsize
        + rows * jnp.dtype(out_dtype).itemsize
        + (IN_CH + 2) * HID_CH * 4,
    )

    out = pl.pallas_call(
        functools.partial(mlp_kernel, lane_dense=lane_dense_out),
        out_shape=out_shape,
        grid_spec=pltpu.PrefetchScalarGridSpec(
            num_scalar_prefetch=0,
            grid=grid,
            in_specs=in_specs,
            out_specs=out_spec,
        ),
        compiler_params=pltpu.CompilerParams(
            dimension_semantics=("parallel",),
            vmem_limit_bytes=vmem_limit_bytes,
        ),
        cost_estimate=cost,
    )(x, w1, b1, w2, b2)

    # Un-pad and present the (N, 1) contract (free metadata when N is aligned).
    return out.reshape(-1)[:n].reshape(n, OUT_CH)


def init_params(key):
    """Deterministic init mimicking nn.Linear's uniform(-1/sqrt(fan_in), ...)."""
    k1, k2, k3, k4 = jax.random.split(key, 4)
    bound1 = 1.0 / jnp.sqrt(IN_CH)
    bound2 = 1.0 / jnp.sqrt(HID_CH)
    # Stored already transposed as (in, out) so the forward does x @ W.
    w1 = jax.random.uniform(k1, (IN_CH, HID_CH), jnp.float32, -bound1, bound1)
    b1 = jax.random.uniform(k2, (1, HID_CH), jnp.float32, -bound1, bound1)
    w2 = jax.random.uniform(k3, (HID_CH, OUT_CH), jnp.float32, -bound2, bound2)
    b2 = jax.random.uniform(k4, (1,), jnp.float32, -bound2, bound2)
    return w1, b1, w2, b2


def reference_forward(x, w1, b1, w2, b2):
    hi = jax.lax.Precision.HIGHEST
    h = jnp.dot(x, w1, precision=hi) + b1
    mean = jnp.mean(h, axis=-1, keepdims=True)
    var = jnp.mean((h - mean) ** 2, axis=-1, keepdims=True)
    h = (h - mean) / jnp.sqrt(var + LN_EPS)
    h = jnp.maximum(h, 0.0)
    return jnp.dot(h, w2, precision=hi) + b2


if __name__ == "__main__":
    key = jax.random.PRNGKey(0)
    kx1, kx2, kp = jax.random.split(key, 3)
    w1, b1, w2, b2 = init_params(kp)

    # Case 1: multi-block grid (ragged last input block), bf16 I/O, lane-dense out.
    num = 2304
    x = jax.random.normal(kx1, (num, IN_CH), jnp.float32)
    out = jax.block_until_ready(mlp_forward(x, w1, b1, w2, b2, tile_n=1024))
    assert out.shape == (num, OUT_CH)
    xq = x.astype(jnp.bfloat16).astype(jnp.float32)
    w1q = w1.astype(jnp.bfloat16).astype(jnp.float32)
    ref = reference_forward(xq, w1q, b1, w2, b2)
    assert jnp.allclose(out, ref, atol=2e-3, rtol=2e-3), "bf16 case mismatch"

    # Case 2: non-multiple-of-128 row count (padded in wrapper), f32 I/O, 1 block.
    num2 = 200
    x2 = jax.random.normal(kx2, (num2, IN_CH), jnp.float32)
    out2 = jax.block_until_ready(mlp_forward(x2, w1, b1, w2, b2, io_dtype=None))
    assert out2.shape == (num2, OUT_CH)
    ref2 = reference_forward(x2, w1, b1, w2, b2)
    assert jnp.allclose(out2, ref2, atol=2e-3, rtol=2e-3), "f32 case mismatch"

    print("KERNEL_OK")
</pallas_src>

<mosaic_0001>
module attributes {stable_mosaic.version = 11 : i64} {
  func.func @mlp_kernel(%arg0: i32, %arg1: memref<1024x66xbf16, #tpu.memory_space<vmem>>, %arg2: memref<66x64xbf16, #tpu.memory_space<vmem>>, %arg3: memref<1x64xf32, #tpu.memory_space<vmem>>, %arg4: memref<1x64xf32, #tpu.memory_space<vmem>>, %arg5: memref<1xf32, #tpu.memory_space<smem>>, %arg6: memref<8x128xf32, #tpu.memory_space<vmem>>) attributes {dimension_semantics = [#tpu.dimension_semantics<parallel>], iteration_bounds = array<i64: 3>, scalar_prefetch = 0 : i64, scratch_operands = 0 : i64, tpu.core_type = #tpu.core_type<tc>, window_params = [{transform_indices = @transform_0, window_bounds = array<i64: 1024, 66>}, {pipeline_mode = #tpu.pipeline_mode<synchronous>, transform_indices = @transform_1, window_bounds = array<i64: 66, 64>}, {pipeline_mode = #tpu.pipeline_mode<synchronous>, transform_indices = @transform_2, window_bounds = array<i64: 1, 64>}, {pipeline_mode = #tpu.pipeline_mode<synchronous>, transform_indices = @transform_3, window_bounds = array<i64: 1, 64>}, {transform_indices = @transform_4, window_bounds = array<i64: 1>}, {transform_indices = @transform_5, window_bounds = array<i64: 8, 128>}]} {
    %c0 = arith.constant 0 : index
    %c0_0 = arith.constant 0 : index
    %0 = vector.load %arg1[%c0, %c0_0] : memref<1024x66xbf16, #tpu.memory_space<vmem>>, vector<1024x66xbf16>
    %c0_1 = arith.constant 0 : index
    %c0_2 = arith.constant 0 : index
    %1 = vector.load %arg2[%c0_1, %c0_2] : memref<66x64xbf16, #tpu.memory_space<vmem>>, vector<66x64xbf16>
    %cst = arith.constant dense<0.000000e+00> : vector<1024x64xf32>
    %2 = tpu.matmul %0, %1, %cst {dimension_numbers = #tpu.dot_dimension_numbers<[1], [0], [0], [1], [0, 0, 1, 1], [], []>} : vector<1024x66xbf16>, vector<66x64xbf16>, vector<1024x64xf32> -> vector<1024x64xf32>
    %c0_3 = arith.constant 0 : index
    %c0_4 = arith.constant 0 : index
    %3 = vector.load %arg3[%c0_3, %c0_4] : memref<1x64xf32, #tpu.memory_space<vmem>>, vector<1x64xf32>
    %4 = vector.broadcast %3 : vector<1x64xf32> to vector<1024x64xf32>
    %5 = arith.addf %2, %4 : vector<1024x64xf32>
    %cst_5 = arith.constant dense<0.000000e+00> : vector<1024xf32>
    %6 = vector.multi_reduction <add>, %5, %cst_5 [1] : vector<1024x64xf32> to vector<1024xf32>
    %7 = vector.shape_cast %6 : vector<1024xf32> to vector<1024x1xf32>
    %cst_6 = arith.constant 6.400000e+01 : f32
    %8 = vector.broadcast %cst_6 : f32 to vector<1024x1xf32>
    %9 = arith.divf %7, %8 : vector<1024x1xf32>
    %10 = vector.broadcast %9 : vector<1024x1xf32> to vector<1024x64xf32>
    %11 = arith.subf %5, %10 : vector<1024x64xf32>
    %12 = arith.mulf %11, %11 : vector<1024x64xf32>
    %cst_7 = arith.constant dense<0.000000e+00> : vector<1024xf32>
    %13 = vector.multi_reduction <add>, %12, %cst_7 [1] : vector<1024x64xf32> to vector<1024xf32>
    %14 = vector.shape_cast %13 : vector<1024xf32> to vector<1024x1xf32>
    %cst_8 = arith.constant 6.400000e+01 : f32
    %15 = vector.broadcast %cst_8 : f32 to vector<1024x1xf32>
    %16 = arith.divf %14, %15 : vector<1024x1xf32>
    %cst_9 = arith.constant 9.99999974E-6 : f32
    %17 = vector.broadcast %cst_9 : f32 to vector<1024x1xf32>
    %18 = arith.addf %16, %17 : vector<1024x1xf32>
    %19 = math.rsqrt %18 : vector<1024x1xf32>
    %20 = vector.broadcast %19 : vector<1024x1xf32> to vector<1024x64xf32>
    %21 = arith.mulf %11, %20 : vector<1024x64xf32>
    %cst_10 = arith.constant 0.000000e+00 : f32
    %22 = vector.broadcast %cst_10 : f32 to vector<1024x64xf32>
    %23 = arith.maximumf %21, %22 : vector<1024x64xf32>
    %c0_11 = arith.constant 0 : index
    %c0_12 = arith.constant 0 : index
    %24 = vector.load %arg4[%c0_11, %c0_12] : memref<1x64xf32, #tpu.memory_space<vmem>>, vector<1x64xf32>
    %25 = vector.broadcast %24 : vector<1x64xf32> to vector<1024x64xf32>
    %26 = arith.mulf %23, %25 : vector<1024x64xf32>
    %cst_13 = arith.constant dense<0.000000e+00> : vector<1024xf32>
    %27 = vector.multi_reduction <add>, %26, %cst_13 [1] : vector<1024x64xf32> to vector<1024xf32>
    %28 = vector.shape_cast %27 : vector<1024xf32> to vector<1024x1xf32>
    %29 = vector.shape_cast %28 : vector<1024x1xf32> to vector<8x128xf32>
    %c0_14 = arith.constant 0 : index
    %30 = memref.load %arg5[%c0_14] : memref<1xf32, #tpu.memory_space<smem>>
    %31 = vector.broadcast %30 : f32 to vector<8x128xf32>
    %32 = arith.addf %29, %31 : vector<8x128xf32>
    %c0_15 = arith.constant 0 : index
    %c0_16 = arith.constant 0 : index
    %33 = vector.load %arg6[%c0_15, %c0_16] : memref<8x128xf32, #tpu.memory_space<vmem>>, vector<8x128xf32>
    tpu.vector_store %arg6[%c0_15, %c0_16], %32 {strides = array<i32>} : memref<8x128xf32, #tpu.memory_space<vmem>>, vector<8x128xf32>,
    return
  }
  func.func @transform_0(%arg0: i32) -> (i32, i32) {
    %c0_i32 = arith.constant 0 : i32
    %c0_i32_0 = arith.constant 0 : i32
    return %arg0, %c0_i32 : i32, i32
  }
  func.func @transform_1(%arg0: i32) -> (i32, i32) {
    %c0_i32 = arith.constant 0 : i32
    %c0_i32_0 = arith.constant 0 : i32
    %c0_i32_1 = arith.constant 0 : i32
    return %c0_i32, %c0_i32_0 : i32, i32
  }
  func.func @transform_2(%arg0: i32) -> (i32, i32) {
    %c0_i32 = arith.constant 0 : i32
    %c0_i32_0 = arith.constant 0 : i32
    %c0_i32_1 = arith.constant 0 : i32
    return %c0_i32, %c0_i32_0 : i32, i32
  }
  func.func @transform_3(%arg0: i32) -> (i32, i32) {
    %c0_i32 = arith.constant 0 : i32
    %c0_i32_0 = arith.constant 0 : i32
    %c0_i32_1 = arith.constant 0 : i32
    return %c0_i32, %c0_i32_0 : i32, i32
  }
  func.func @transform_4(%arg0: i32) -> i32 {
    %c0_i32 = arith.constant 0 : i32
    %c0_i32_0 = arith.constant 0 : i32
    return %c0_i32 : i32
  }
  func.func @transform_5(%arg0: i32) -> (i32, i32) {
    %c0_i32 = arith.constant 0 : i32
    %c0_i32_0 = arith.constant 0 : i32
    return %arg0, %c0_i32 : i32, i32
  }
}

</mosaic_0001>

<bundles_post_ra>
// kernel: tpu_custom_call.1
= control target key start
LH: loop header
LB: loop body
LE: loop exit
PB: predicated region body
PF: predicated region fallthrough
CT: control target
= control target key end

     0   :  { %s9069_s0 = inlined_call_operand.vmem [shape: bf16[2304,66], index: 0, kind: input, shape index: {}]   ;;  %s9070_s1 = inlined_call_operand.vmem [shape: bf16[66,64], index: 1, kind: input, shape index: {}]   ;;  %s9071_s2 = inlined_call_operand.vmem [shape: f32[1,64], index: 2, kind: input, shape index: {}]   ;;  %s9072_s3 = inlined_call_operand.vmem [shape: f32[1,64], index: 3, kind: input, shape index: {}]   ;;  %s9073_s4 = inlined_call_operand.<no memory space> [shape: f32[1], index: 4, kind: input, shape index: {}]   ;;  %s9074_s5 = inlined_call_operand.hbm [shape: f32[24,128], index: 5, kind: output, shape index: {}]  }
   0x1   :  { %10 = sst [smem:[#allocation2]] %s9073_s4 }
   0x2   :  { %11 = vsyncpa [#allocation4], 0 }
   0x3   :  { %13 = vsyncpa [#allocation4 + $0x1], 0  ;;  %s5632_s20 = smov 0   ;;  %s5634_s21 = smov 0  }
   0x4   :  { %s5636_s22 = smov 0   ;;  %s5638_s23 = smov 0  }
   0x5 LB: > { %s4803_s4 = sadd.s32 4294967295, %s5596_s23   ;;  %s4804_s24 = sadd.s32 4294967294, %s5596_s23   ;;  %s5596_s23 = sphi %s5638_s23, %s9916_s23   ;;  %s5592_s22 = sphi %s5636_s22, %s9915_s22   ;;  %s5588_s21 = sphi %s5634_s21, %s9914_s21   ;;  %s5584_s20 = sphi %s5632_s20, %s9913_s20  }
   0x6   : > { %s5655_s25 = sadd.s32 1, %s5596_s23   ;;  %s136_s26 = sadd.s32 1, %s5592_s22 }
   0x7   : > { %s133_s27 = ssub.s32 %s5596_s23, %s5655_s25  ;;  %p146_p0 = scmp.ne.s32.totalorder %s5592_s22, %s5588_s21 }
   0x8   : > { %p134_p1 = scmp.eq.s32.totalorder %s133_s27, 0  ;;  %p147_p2 = scmp.eq.s32.totalorder %s4803_s4, 2 }
   0x9   : > { %p152_p3 = scmp.ne.s32.totalorder %s5588_s21, %s5584_s20  ;;  %p153_p4 = scmp.eq.s32.totalorder %s4804_s24, 2 }
   0xa   : > { %s5665_s28 = scalar_select %p134_p1, %s5592_s22, %s136_s26  }
   0xb   : > { %p5667_p5 = por %p147_p2, %p146_p0  ;;  %p5671_p6 = por %p153_p4, %p152_p3 }
   0xc   : > { %p4807_p7 = scmp.ge.s32.totalorder %s5596_s23, 1  ;;  %p200_p8 = scmp.lt.s32.totalorder %s5596_s23, 4 }
   0xe   : > { %p201_p9 = pnand %p4807_p7, %p200_p8 }
  0x10   : > { %204 = sbr.rel (%p201_p9) target bundleno = 1161 (0x489), region = 40 }
  0x15   : > { %v5208_v0 = vld [vmem:[%s9070_s1 + $0x20] ss:$0 sps:$4 sm:$0x11]   ;;  %vm931_vm0 = vcmask 1040384   ;;  %v5209_v1 = vld [vmem:[%s9070_s1 + $0x18] sm:$0xff]   ;;  %s5683_s10 = sshll.u32 %s4803_s4, 7 }
  0x16   : > { %5167 = vmatprep.subr.msk.bf16.mxu0 %vm931_vm0, %v5208_v0  ;;  %5168 = vmatprep.subr.msk.bf16.mxu1 %vm931_vm0, %v5208_v0  ;;  %v933_v2 = vsel %vm931_vm0, %v5208_v0, 0  ;;  %p237_p10 = scmp.lt.s32.totalorder %s5683_s10, 287  ;;  %v5210_v3 = vld [vmem:[%s9070_s1 + $0x10] sm:$0xff]   ;;  %v5211_v4 = vld [vmem:[%s9070_s1 + $0x8] sm:$0xff]   ;;  %vm738_vm1 = vcmask 539648   ;;  %v5212_v7 = vld [vmem:[%s9070_s1] sm:$0xff]   ;;  %s9032_s26 = scalar_lea.hbm %s9074_s5, %s5683_s10 }
  0x17   : > { %5020 = vmatpush3.bf16.msra.mxu0 %v933_v2  ;;  %5162 = vmatpush3.bf16.msra.mxu1 %v933_v2  ;;  %vm1480_vm2 = vcmask 523264   ;;  %vm4062_vm3 = vcmask 130112   ;;  %vm4069_vm4 = vcmask 195712   ;;  %vm4076_vm5 = vcmask 261312   ;;  %s229_s16 = sand.u32 1, %s5588_s21   ;;  %s5598_s7 = smov [#allocation3]  }
  0x18   : > { %5021 = vmatprep.subr.bf16.mxu0 %v5209_v1  ;;  %5158 = vmatprep.subr.bf16.mxu1 %v5209_v1  ;;  %s238_s13 = scalar_select %p237_p10, %s5683_s10, 287  ;;  %vm4083_vm6 = vcmask 326912   ;;  %vm4090_vm7 = vcmask 392512   ;;  %vm4097_vm8 = vcmask 458112   ;;  %vm4104_vm9 = vcmask 523712  }
  0x19   : > { %vm4111_vm10 = vcmask 589312   ;;  %vm4118_vm11 = vcmask 654912   ;;  %vm4125_vm12 = vcmask 720512   ;;  %vm9308_vm13 = vcmask 786112   ;;  %s9001_s17 = sshll.u32 %s229_s16, 3  ;;  %s4732_s27 = scalar_lea.sflag [#allocation4], %s229_s16 }
  0x1a   : > { %s4810_s14 = sshll.u32 %s238_s13, 2  ;;  %s8294_s13 = sld [smem:[#allocation2]]  ;;  %vm4139_vm14 = vcmask 851712   ;;  %vm4146_vm15 = vcmask 917312   ;;  %vm4153_vm0 = vcmask 982912  }
  0x1b   : > { %5022 = vmatpush3.bf16.msra.mxu0 %v5209_v1  ;;  %5163 = vmatpush3.bf16.msra.mxu1 %v5209_v1  ;;  %s5696_s19 = scalar_lea.vmem %s9069_s0, %s4810_s14  ;;  %s231_s18 = scalar_lea.vmem [#allocation3], %s9001_s17 }
  0x1c   : > { %5023 = vmatprep.subr.bf16.mxu0 %v5210_v3  ;;  %5159 = vmatprep.subr.bf16.mxu1 %v5210_v3  ;;  %v5213_v5 = vld [vmem:[%s5696_s19] sm:$0xff]   ;;  %v5215_v8 = vld [vmem:[%s5696_s19 + $0x8] sm:$0xff]   ;;  %v5217_v10 = vld [vmem:[%s5696_s19 + $0x10] sm:$0xff]   ;;  %s5540_s8 = sshll.u32 %s5598_s7, 4  ;;  %s5541_s8 = int_to_ptr.vmem [resolvable:$false] %s5540_s8 }
  0x1d   : > { %v5214_v6 = vld [vmem:[%s5696_s19 + $0x100] sm:$0xff]   ;;  %5029 = vmatprep.mubr.msk.bf16.mxu0 %vm738_vm1, %v5213_v5  ;;  %v5216_v9 = vld [vmem:[%s5696_s19 + $0x108] sm:$0xff]   ;;  %v5219_v11 = vld [vmem:[%s5696_s19 + $0x110] sm:$0xff]   ;;  %s5542_s9 = scalar_lea.vmem %s5541_s8, 256 }
  0x1e   : > { %5093 = vmatprep.mubr.msk.bf16.mxu1 %vm738_vm1, %v5214_v6  ;;  %v5218_v12 = vld [vmem:[%s5696_s19 + $0x18] sm:$0xff]   ;;  %v5221_v14 = vld [vmem:[%s5696_s19 + $0x20] sm:$0xff]   ;;  %v5222_v16 = vld [vmem:[%s5696_s19 + $0x28] sm:$0xff]  }
  0x1f   : > { %5024 = vmatpush3.bf16.msra.mxu0 %v5210_v3  ;;  %5164 = vmatpush3.bf16.msra.mxu1 %v5210_v3  ;;  %v5220_v13 = vld [vmem:[%s5696_s19 + $0x118] sm:$0xff]   ;;  %v5223_v15 = vld [vmem:[%s5696_s19 + $0x120] sm:$0xff]   ;;  %v5224_v17 = vld [vmem:[%s5696_s19 + $0x128] sm:$0xff]  }
  0x20   : > { %5025 = vmatprep.subr.bf16.mxu0 %v5211_v4  ;;  %5160 = vmatprep.subr.bf16.mxu1 %v5211_v4  ;;  %v5225_v18 = vld [vmem:[%s5696_s19 + $0x30] sm:$0xff]   ;;  %v5226_v20 = vld [vmem:[%s5696_s19 + $0x38] sm:$0xff]   ;;  %v5229_v22 = vld [vmem:[%s5696_s19 + $0x40] sm:$0xff]  }
  0x21   : > { %v5227_v19 = vld [vmem:[%s5696_s19 + $0x130] sm:$0xff]   ;;  %v5228_v21 = vld [vmem:[%s5696_s19 + $0x138] sm:$0xff]   ;;  %v5231_v23 = vld [vmem:[%s5696_s19 + $0x140] sm:$0xff]  }
  0x22   : > { %v5230_v24 = vld [vmem:[%s5696_s19 + $0x48] sm:$0xff]   ;;  %v5233_v26 = vld [vmem:[%s5696_s19 + $0x50] sm:$0xff]   ;;  %v5234_v28 = vld [vmem:[%s5696_s19 + $0x58] sm:$0xff]  }
  0x23   : > { %5026 = vmatpush3.bf16.msra.mxu0 %v5211_v4  ;;  %5165 = vmatpush3.bf16.msra.mxu1 %v5211_v4  ;;  %v5232_v25 = vld [vmem:[%s5696_s19 + $0x148] sm:$0xff]   ;;  %v5235_v27 = vld [vmem:[%s5696_s19 + $0x150] sm:$0xff]   ;;  %v5236_v29 = vld [vmem:[%s5696_s19 + $0x158] sm:$0xff]  }
  0x24   : > { %5027 = vmatprep.subr.bf16.mxu0 %v5212_v7  ;;  %5161 = vmatprep.subr.bf16.mxu1 %v5212_v7  ;;  %v5237_v30 = vld [vmem:[%s5696_s19 + $0x60] sm:$0xff]   ;;  %v5238_v32 = vld [vmem:[%s5696_s19 + $0x68] sm:$0xff]   ;;  %v5241_v34 = vld [vmem:[%s5696_s19 + $0x70] sm:$0xff]  }
  0x25   : > { %v5239_v31 = vld [vmem:[%s5696_s19 + $0x160] sm:$0xff]   ;;  %v5240_v33 = vld [vmem:[%s5696_s19 + $0x168] sm:$0xff]   ;;  %v5243_v35 = vld [vmem:[%s5696_s19 + $0x170] sm:$0xff]  }
  0x26   : > { %v5242_v36 = vld [vmem:[%s5696_s19 + $0x78] sm:$0xff]   ;;  %v5245_v38 = vld [vmem:[%s5696_s19 + $0x80] sm:$0xff]   ;;  %v5246_v40 = vld [vmem:[%s5696_s19 + $0x88] sm:$0xff]  }
  0x27   : > { %5028 = vmatpush3.bf16.msra.mxu0 %v5212_v7  ;;  %5166 = vmatpush3.bf16.msra.mxu1 %v5212_v7  ;;  %v5244_v37 = vld [vmem:[%s5696_s19 + $0x178] sm:$0xff]   ;;  %v5247_v39 = vld [vmem:[%s5696_s19 + $0x180] sm:$0xff]   ;;  %v5248_v41 = vld [vmem:[%s5696_s19 + $0x188] sm:$0xff]  }
  0x28   : > { %v5249_v42 = vld [vmem:[%s5696_s19 + $0x90] sm:$0xff]   ;;  %v5250_v44 = vld [vmem:[%s5696_s19 + $0x98] sm:$0xff]   ;;  %v5253_v46 = vld [vmem:[%s5696_s19 + $0xa0] sm:$0xff]  }
  0x29   : > { %v5251_v43 = vld [vmem:[%s5696_s19 + $0x190] sm:$0xff]   ;;  %v5252_v45 = vld [vmem:[%s5696_s19 + $0x198] sm:$0xff]   ;;  %v5255_v47 = vld [vmem:[%s5696_s19 + $0x1a0] sm:$0xff]  }
  0x2a   : > { %5030 = vmatmul.mubr.msk.bf16.vlgmr.msra.gmra.mxu0 %vm738_vm1, %v5215_v8  ;;  %5094 = vmatmul.mubr.msk.bf16.vlgmr.msra.gmra.mxu1 %vm738_vm1, %v5216_v9  ;;  %v5254_v48 = vld [vmem:[%s5696_s19 + $0xa8] sm:$0xff]   ;;  %v5257_v50 = vld [vmem:[%s5696_s19 + $0xb0] sm:$0xff]   ;;  %v5258_v52 = vld [vmem:[%s5696_s19 + $0xb8] sm:$0xff]  }
  0x2b   : > { %5033 = vmatprep.mubr.msk.bf16.mxu0 %vm738_vm1, %v5217_v10  ;;  %5097 = vmatprep.mubr.msk.bf16.mxu1 %vm738_vm1, %v5219_v11  ;;  %v5256_v49 = vld [vmem:[%s5696_s19 + $0x1a8] sm:$0xff]   ;;  %v5259_v51 = vld [vmem:[%s5696_s19 + $0x1b0] sm:$0xff]   ;;  %v5260_v53 = vld [vmem:[%s5696_s19 + $0x1b8] sm:$0xff]  }
  0x2c   : > { %v5261_v54 = vld [vmem:[%s5696_s19 + $0xc0] sm:$0xff]   ;;  %v5262_v56 = vld [vmem:[%s5696_s19 + $0xc8] sm:$0xff]   ;;  %v5265_v58 = vld [vmem:[%s5696_s19 + $0xd0] sm:$0xff]  }
  0x2d   : > { %v5263_v55 = vld [vmem:[%s5696_s19 + $0x1c0] sm:$0xff]   ;;  %v5264_v57 = vld [vmem:[%s5696_s19 + $0x1c8] sm:$0xff]   ;;  %v5267_v59 = vld [vmem:[%s5696_s19 + $0x1d0] sm:$0xff]  }
  0x2e   : > { %v5266_v60 = vld [vmem:[%s5696_s19 + $0xd8] sm:$0xff]   ;;  %v5269_v62 = vld [vmem:[%s5696_s19 + $0xe0] sm:$0xff]   ;;  %v5270_v0 = vld [vmem:[%s5696_s19 + $0xe8] sm:$0xff]  }
  0x2f   : > { %v5268_v61 = vld [vmem:[%s5696_s19 + $0x1d8] sm:$0xff]   ;;  %v5271_v63 = vld [vmem:[%s5696_s19 + $0x1e0] sm:$0xff]   ;;  %v5272_v1 = vld [vmem:[%s5696_s19 + $0x1e8] sm:$0xff]  }
  0x30   : > { %v5273_v2 = vld [vmem:[%s5696_s19 + $0xf0] sm:$0xff]   ;;  %v5274_v4 = vld [vmem:[%s5696_s19 + $0xf8] sm:$0xff]   ;;  %v5832_v6 = vld [vmem:[%s9071_s2] ss:$0 sm:$0xff] }
  0x31   : > { %v5275_v3 = vld [vmem:[%s5696_s19 + $0x1f0] sm:$0xff]   ;;  %v5276_v5 = vld [vmem:[%s5696_s19 + $0x1f8] sm:$0xff]   ;;  %s4745_s19 = sshll.u32 %s231_s18, 4  ;;  %s4746_s19 = int_to_ptr.vmem [resolvable:$true] %s4745_s19 }
  0x32   : > { %5034 = vmatmul.mubr.msk.bf16.gmra.mxu0 %vm738_vm1, %v5218_v12  ;;  %5098 = vmatmul.mubr.msk.bf16.gmra.mxu1 %vm738_vm1, %v5220_v13  ;;  %s5536_s6 = scalar_lea.vmem %s4746_s19, 128  ;;  %p5543_p0 = scmp.lt.s32.totalorder %s4746_s19, %s5541_s8 }
  0x33   : > { %5037 = vmatprep.mubr.msk.bf16.mxu0 %vm738_vm1, %v5221_v14  ;;  %5101 = vmatprep.mubr.msk.bf16.mxu1 %vm738_vm1, %v5223_v15  ;;  %p5537_p11 = scmp.ne.s32.totalorder %s4746_s19, %s5536_s6  ;;  %p5544_p1 = scmp.lt.s32.totalorder %s5542_s9, %s5536_s6 }
  0x35   : > { %p5538_p12 = pnand %p5537_p11, %p5667_p5  ;;  %p5545_p2 = por %p5544_p1, %p5543_p0 }
  0x37   : > { %p5539_p13 = pneg %p5538_p12 }
  0x39   : > { %p5546_p3 = pnand %p5545_p2, %p5539_p13 }
  0x3a   : > { %5038 = vmatmul.mubr.msk.bf16.gmra.mxu0 %vm738_vm1, %v5222_v16  ;;  %5102 = vmatmul.mubr.msk.bf16.gmra.mxu1 %vm738_vm1, %v5224_v17 }
  0x3b   : > { %5041 = vmatprep.mubr.msk.bf16.mxu0 %vm738_vm1, %v5225_v18  ;;  %5105 = vmatprep.mubr.msk.bf16.mxu1 %vm738_vm1, %v5227_v19 }
  0x42   : > { %5042 = vmatmul.mubr.msk.bf16.gmra.mxu0 %vm738_vm1, %v5226_v20  ;;  %5106 = vmatmul.mubr.msk.bf16.gmra.mxu1 %vm738_vm1, %v5228_v21 }
  0x43   : > { %5045 = vmatprep.mubr.msk.bf16.mxu0 %vm738_vm1, %v5229_v22  ;;  %5109 = vmatprep.mubr.msk.bf16.mxu1 %vm738_vm1, %v5231_v23 }
  0x4a   : > { %5046 = vmatmul.mubr.msk.bf16.gmra.mxu0 %vm738_vm1, %v5230_v24  ;;  %5110 = vmatmul.mubr.msk.bf16.gmra.mxu1 %vm738_vm1, %v5232_v25 }
  0x4b   : > { %5049 = vmatprep.mubr.msk.bf16.mxu0 %vm738_vm1, %v5233_v26  ;;  %5113 = vmatprep.mubr.msk.bf16.mxu1 %vm738_vm1, %v5235_v27 }
  0x52   : > { %5050 = vmatmul.mubr.msk.bf16.gmra.mxu0 %vm738_vm1, %v5234_v28  ;;  %5114 = vmatmul.mubr.msk.bf16.gmra.mxu1 %vm738_vm1, %v5236_v29 }
  0x53   : > { %5053 = vmatprep.mubr.msk.bf16.mxu0 %vm738_vm1, %v5237_v30  ;;  %5117 = vmatprep.mubr.msk.bf16.mxu1 %vm738_vm1, %v5239_v31 }
  0x5a   : > { %5054 = vmatmul.mubr.msk.bf16.gmra.mxu0 %vm738_vm1, %v5238_v32  ;;  %5118 = vmatmul.mubr.msk.bf16.gmra.mxu1 %vm738_vm1, %v5240_v33 }
  0x5b   : > { %5057 = vmatprep.mubr.msk.bf16.mxu0 %vm738_vm1, %v5241_v34  ;;  %5121 = vmatprep.mubr.msk.bf16.mxu1 %vm738_vm1, %v5243_v35 }
  0x62   : > { %5058 = vmatmul.mubr.msk.bf16.gmra.mxu0 %vm738_vm1, %v5242_v36  ;;  %5122 = vmatmul.mubr.msk.bf16.gmra.mxu1 %vm738_vm1, %v5244_v37 }
  0x63   : > { %5061 = vmatprep.mubr.msk.bf16.mxu0 %vm738_vm1, %v5245_v38  ;;  %5125 = vmatprep.mubr.msk.bf16.mxu1 %vm738_vm1, %v5247_v39 }
  0x6a   : > { %5062 = vmatmul.mubr.msk.bf16.gmra.mxu0 %vm738_vm1, %v5246_v40  ;;  %5126 = vmatmul.mubr.msk.bf16.gmra.mxu1 %vm738_vm1, %v5248_v41 }
  0x6b   : > { %5065 = vmatprep.mubr.msk.bf16.mxu0 %vm738_vm1, %v5249_v42  ;;  %5129 = vmatprep.mubr.msk.bf16.mxu1 %vm738_vm1, %v5251_v43 }
  0x72   : > { %5066 = vmatmul.mubr.msk.bf16.gmra.mxu0 %vm738_vm1, %v5250_v44  ;;  %5130 = vmatmul.mubr.msk.bf16.gmra.mxu1 %vm738_vm1, %v5252_v45 }
  0x73   : > { %5069 = vmatprep.mubr.msk.bf16.mxu0 %vm738_vm1, %v5253_v46  ;;  %5133 = vmatprep.mubr.msk.bf16.mxu1 %vm738_vm1, %v5255_v47 }
  0x7a   : > { %5070 = vmatmul.mubr.msk.bf16.gmra.mxu0 %vm738_vm1, %v5254_v48  ;;  %5134 = vmatmul.mubr.msk.bf16.gmra.mxu1 %vm738_vm1, %v5256_v49 }
  0x7b   : > { %5073 = vmatprep.mubr.msk.bf16.mxu0 %vm738_vm1, %v5257_v50  ;;  %5137 = vmatprep.mubr.msk.bf16.mxu1 %vm738_vm1, %v5259_v51 }
  0x82   : > { %5074 = vmatmul.mubr.msk.bf16.gmra.mxu0 %vm738_vm1, %v5258_v52  ;;  %5138 = vmatmul.mubr.msk.bf16.gmra.mxu1 %vm738_vm1, %v5260_v53 }
  0x83   : > { %5077 = vmatprep.mubr.msk.bf16.mxu0 %vm738_vm1, %v5261_v54  ;;  %5141 = vmatprep.mubr.msk.bf16.mxu1 %vm738_vm1, %v5263_v55 }
  0x8a   : > { %5078 = vmatmul.mubr.msk.bf16.gmra.mxu0 %vm738_vm1, %v5262_v56  ;;  %5142 = vmatmul.mubr.msk.bf16.gmra.mxu1 %vm738_vm1, %v5264_v57 }
  0x8b   : > { %5081 = vmatprep.mubr.msk.bf16.mxu0 %vm738_vm1, %v5265_v58  ;;  %5145 = vmatprep.mubr.msk.bf16.mxu1 %vm738_vm1, %v5267_v59 }
  0x92   : > { %5082 = vmatmul.mubr.msk.bf16.gmra.mxu0 %vm738_vm1, %v5266_v60  ;;  %5146 = vmatmul.mubr.msk.bf16.gmra.mxu1 %vm738_vm1, %v5268_v61 }
  0x93   : > { %5085 = vmatprep.mubr.msk.bf16.mxu0 %vm738_vm1, %v5269_v62  ;;  %5149 = vmatprep.mubr.msk.bf16.mxu1 %vm738_vm1, %v5271_v63 }
  0x9a   : > { %5086 = vmatmul.mubr.msk.bf16.gmra.mxu0 %vm738_vm1, %v5270_v0  ;;  %5150 = vmatmul.mubr.msk.bf16.gmra.mxu1 %vm738_vm1, %v5272_v1 }
  0x9b   : > { %5089 = vmatprep.mubr.msk.bf16.mxu0 %vm738_vm1, %v5273_v2  ;;  %5153 = vmatprep.mubr.msk.bf16.mxu1 %vm738_vm1, %v5275_v3 }
  0xa2   : > { %5090 = vmatmul.mubr.msk.bf16.gmra.mxu0 %vm738_vm1, %v5274_v4  ;;  %5154 = vmatmul.mubr.msk.bf16.gmra.mxu1 %vm738_vm1, %v5276_v5  ;;  %vm4160_vm1 = vcmask 1048512  }
  0xea   : > { %v5031_v7 = vpop.f32.mrf.mxu0  ;;  %v5095_v8 = vpop.f32.mrf.mxu1 }
  0xeb   : > { %v5835_v9 = vadd.f32 %v5031_v7, %v5832_v6  ;;  %v5838_v10 = vadd.f32 %v5095_v8, %v5832_v6 }
  0xec   : > { %v969_v11 = vpop.f32.mrf.mxu0  ;;  %v1225_v12 = vpop.f32.mrf.mxu1 }
  0xed   : > { %v5841_v13 = vadd.f32 %v5832_v6, %v969_v11  ;;  %v1679_v14 = vsel %vm1480_vm2, %v5838_v10, 0.0  ;;  %v1487_v15 = vsel %vm1480_vm2, %v5835_v9, 0.0  ;;  %v5851_v20 = vadd.f32 %v5832_v6, %v1225_v12 }
  0xee   : > { %1680 = vadd.xlane.f32.xlu0 %v1679_v14  ;;  %v5096_v16 = vpop.f32.mrf.mxu1  ;;  %1488 = vadd.xlane.f32.xlu1 %v1487_v15  ;;  %v5032_v17 = vpop.f32.mrf.mxu0 }
  0xef   : > { %v5848_v18 = vadd.f32 %v5032_v17, %v5832_v6  ;;  %v5854_v21 = vadd.f32 %v5096_v16, %v5832_v6  ;;  %v1481_v23 = vsel %vm1480_vm2, %v5841_v13, 0.0  ;;  %v1673_v31 = vsel %vm1480_vm2, %v5851_v20, 0.0 }
  0xf0   : > { %v972_v19 = vpop.f32.mrf.mxu0  ;;  %v1228_v24 = vpop.f32.mrf.mxu1 }
  0xf1   : > { %v1490_v22 = vsel %vm1480_vm2, %v5848_v18, 0.0  ;;  %v5861_v28 = vadd.f32 %v5832_v6, %v972_v19  ;;  %v5864_v29 = vadd.f32 %v5832_v6, %v1228_v24  ;;  %v1682_v30 = vsel %vm1480_vm2, %v5854_v21, 0.0 }
  0xf2   : > { %1491 = vadd.xlane.f32.xlu1 %v1490_v22  ;;  %v5035_v25 = vpop.f32.mrf.mxu0  ;;  %1482 = vadd.xlane.f32.xlu0 %v1481_v23  ;;  %v5099_v27 = vpop.f32.mrf.mxu1 }
  0xf3   : > { %v5871_v34 = vadd.f32 %v5035_v25, %v5832_v6  ;;  %v1676_v36 = vsel %vm1480_vm2, %v5864_v29, 0.0  ;;  %v1484_v37 = vsel %vm1480_vm2, %v5861_v28, 0.0  ;;  %v5881_v39 = vadd.f32 %v5099_v27, %v5832_v6 }
  0xf4   : > { %v985_v26 = vpop.f32.mrf.mxu0  ;;  %v1241_v33 = vpop.f32.mrf.mxu1 }
  0xf5   : > { %v1499_v42 = vsel %vm1480_vm2, %v5871_v34, 0.0  ;;  %v5891_v45 = vadd.f32 %v5832_v6, %v985_v26  ;;  %v1691_v48 = vsel %vm1480_vm2, %v5881_v39, 0.0  ;;  %v5901_v52 = vadd.f32 %v5832_v6, %v1241_v33 }
  0xf6   : > { %1683 = vadd.xlane.f32.xlu1 %v1682_v30  ;;  %v5036_v32 = vpop.f32.mrf.mxu0  ;;  %1674 = vadd.xlane.f32.xlu0 %v1673_v31  ;;  %v5100_v38 = vpop.f32.mrf.mxu1 }
  0xf7   : > { %v5874_v35 = vadd.f32 %v5036_v32, %v5832_v6  ;;  %v5884_v40 = vadd.f32 %v5100_v38, %v5832_v6  ;;  %v1493_v55 = vsel %vm1480_vm2, %v5891_v45, 0.0  ;;  %v1685_v61 = vsel %vm1480_vm2, %v5901_v52, 0.0 }
  0xf8   : > { %v988_v43 = vpop.f32.mrf.mxu0  ;;  %v1244_v49 = vpop.f32.mrf.mxu1 }
  0xf9   : > { %v1502_v41 = vsel %vm1480_vm2, %v5874_v35, 0.0  ;;  %v5894_v46 = vadd.f32 %v5832_v6, %v988_v43  ;;  %v1694_v47 = vsel %vm1480_vm2, %v5884_v40, 0.0  ;;  %v5904_v53 = vadd.f32 %v5832_v6, %v1244_v49 }
  0xfa   : > { %1677 = vadd.xlane.f32.xlu1 %v1676_v36  ;;  %1485 = vadd.xlane.f32.xlu0 %v1484_v37  ;;  %v5039_v44 = vpop.f32.mrf.mxu0  ;;  %v5103_v51 = vpop.f32.mrf.mxu1 }
  0xfb   : > { %v1496_v54 = vsel %vm1480_vm2, %v5894_v46, 0.0  ;;  %v5911_v58 = vadd.f32 %v5039_v44, %v5832_v6  ;;  %v1688_v60 = vsel %vm1480_vm2, %v5904_v53, 0.0  ;;  %v5921_v63 = vadd.f32 %v5103_v51, %v5832_v6 }
  0xfc   : > { %v1001_v50 = vpop.f32.mrf.mxu0  ;;  %v1257_v57 = vpop.f32.mrf.mxu1 }
  0xfd   : > { %v1511_v2 = vsel %vm1480_vm2, %v5911_v58, 0.0  ;;  %v5931_v5 = vadd.f32 %v5832_v6, %v1001_v50  ;;  %v1703_v11 = vsel %vm1480_vm2, %v5921_v63, 0.0  ;;  %v5941_v16 = vadd.f32 %v5832_v6, %v1257_v57 }
  0xfe   : > { %1503 = vadd.xlane.f32.xlu1 %v1502_v41  ;;  %1500 = vadd.xlane.f32.xlu0 %v1499_v42  ;;  %v5040_v56 = vpop.f32.mrf.mxu0  ;;  %v5104_v62 = vpop.f32.mrf.mxu1 }
  0xff   : > { %v5914_v59 = vadd.f32 %v5040_v56, %v5832_v6  ;;  %v5924_v0 = vadd.f32 %v5104_v62, %v5832_v6  ;;  %9311 = vst [vmem:[#allocation6_spill] sm:$0xff] %v5941_v16  ;;  %v1505_v22 = vsel %vm1480_vm2, %v5931_v5, 0.0  ;;  %v1697_v30 = vsel %vm1480_vm2, %v5941_v16, 0.0 }
 0x100   : > { %v1004_v3 = vpop.f32.mrf.mxu0  ;;  %v1260_v12 = vpop.f32.mrf.mxu1 }
 0x101   : > { %v1514_v1 = vsel %vm1480_vm2, %v5914_v59, 0.0  ;;  %v5934_v7 = vadd.f32 %v5832_v6, %v1004_v3  ;;  %v1706_v8 = vsel %vm1480_vm2, %v5924_v0, 0.0  ;;  %v5944_v17 = vadd.f32 %v5832_v6, %v1260_v12 }
 0x102   : > { %1695 = vadd.xlane.f32.xlu1 %v1694_v47  ;;  %1692 = vadd.xlane.f32.xlu0 %v1691_v48  ;;  %v5043_v4 = vpop.f32.mrf.mxu0  ;;  %v5107_v15 = vpop.f32.mrf.mxu1 }
 0x103   : > { %v1508_v19 = vsel %vm1480_vm2, %v5934_v7, 0.0  ;;  %v5951_v25 = vadd.f32 %v5043_v4, %v5832_v6  ;;  %v1700_v27 = vsel %vm1480_vm2, %v5944_v17, 0.0  ;;  %v5961_v32 = vadd.f32 %v5107_v15, %v5832_v6 }
 0x104   : > { %v1017_v14 = vpop.f32.mrf.mxu0  ;;  %v1273_v24 = vpop.f32.mrf.mxu1 }
 0x105   : > { %9312 = vst [vmem:[#allocation7_spill] sm:$0xff] %v5951_v25  ;;  %9314 = vst [vmem:[#allocation9_spill] sm:$0xff] %v5961_v32  ;;  %v1523_v37 = vsel %vm1480_vm2, %v5951_v25, 0.0  ;;  %v5971_v42 = vadd.f32 %v5832_v6, %v1017_v14  ;;  %v1715_v47 = vsel %vm1480_vm2, %v5961_v32, 0.0  ;;  %v5981_v51 = vadd.f32 %v5832_v6, %v1273_v24 }
 0x106   : > { %1497 = vadd.xlane.f32.xlu1 %v1496_v54  ;;  %1494 = vadd.xlane.f32.xlu0 %v1493_v55  ;;  %v5044_v23 = vpop.f32.mrf.mxu0  ;;  %v5108_v31 = vpop.f32.mrf.mxu1 }
 0x107   : > { %v5954_v26 = vadd.f32 %v5044_v23, %v5832_v6  ;;  %v5964_v33 = vadd.f32 %v5108_v31, %v5832_v6  ;;  %9316 = vst [vmem:[#allocation11_spill] sm:$0xff] %v5971_v42  ;;  %9318 = vst [vmem:[#allocation13_spill] sm:$0xff] %v5981_v51  ;;  %v1517_v56 = vsel %vm1480_vm2, %v5971_v42, 0.0 }
 0x108   : > { %v1020_v38 = vpop.f32.mrf.mxu0  ;;  %v1276_v48 = vpop.f32.mrf.mxu1 }
 0x109   : > { %9313 = vst [vmem:[#allocation8_spill] sm:$0xff] %v5954_v26  ;;  %9315 = vst [vmem:[#allocation10_spill] sm:$0xff] %v5964_v33  ;;  %v1526_v36 = vsel %vm1480_vm2, %v5954_v26, 0.0  ;;  %v5974_v43 = vadd.f32 %v5832_v6, %v1020_v38  ;;  %v1718_v44 = vsel %vm1480_vm2, %v5964_v33, 0.0  ;;  %v5984_v54 = vadd.f32 %v5832_v6, %v1276_v48 }
 0x10a   : > { %1689 = vadd.xlane.f32.xlu1 %v1688_v60  ;;  %1686 = vadd.xlane.f32.xlu0 %v1685_v61  ;;  %v5047_v41 = vpop.f32.mrf.mxu0  ;;  %v5111_v50 = vpop.f32.mrf.mxu1 }
 0x10b   : > { %9317 = vst [vmem:[#allocation12_spill] sm:$0xff] %v5974_v43  ;;  %9319 = vst [vmem:[#allocation14_spill] sm:$0xff] %v5984_v54  ;;  %v1520_v55 = vsel %vm1480_vm2, %v5974_v43, 0.0  ;;  %v5991_v61 = vadd.f32 %v5047_v41, %v5832_v6  ;;  %v6001_v4 = vadd.f32 %v5111_v50, %v5832_v6 }
 0x10c   : > { %v1033_v49 = vpop.f32.mrf.mxu0  ;;  %v1289_v60 = vpop.f32.mrf.mxu1 }
 0x10d   : > { %9320 = vst [vmem:[#allocation15_spill] sm:$0xff] %v5991_v61  ;;  %9322 = vst [vmem:[#allocation17_spill] sm:$0xff] %v6001_v4  ;;  %v1535_v12 = vsel %vm1480_vm2, %v5991_v61, 0.0  ;;  %v1727_v24 = vsel %vm1480_vm2, %v6001_v4, 0.0 }
 0x10e   : > { %1515 = vadd.xlane.f32.xlu1 %v1514_v1  ;;  %1512 = vadd.xlane.f32.xlu0 %v1511_v2  ;;  %v5048_v57 = vpop.f32.mrf.mxu0  ;;  %v1712_v1 = vsel %vm1480_vm2, %v5984_v54, 0.0  ;;  %v1709_v2 = vsel %vm1480_vm2, %v5981_v51, 0.0  ;;  %v5112_v3 = vpop.f32.mrf.mxu1 }
 0x10f   : > { %v5994_v62 = vadd.f32 %v5048_v57, %v5832_v6 }
 0x110   : > { %v1036_v14 = vpop.f32.mrf.mxu0 }
 0x111   : > { %9321 = vst [vmem:[#allocation16_spill] sm:$0xff] %v5994_v62 }
 0x112   : > { %1707 = vadd.xlane.f32.xlu1 %v1706_v8  ;;  %1704 = vadd.xlane.f32.xlu0 %v1703_v11  ;;  %v6004_v8 = vadd.f32 %v5112_v3, %v5832_v6  ;;  %v1538_v11 = vsel %vm1480_vm2, %v5994_v62, 0.0  ;;  %v5051_v15 = vpop.f32.mrf.mxu0 }
 0x113   : > { %v6031_v48 = vadd.f32 %v5051_v15, %v5832_v6 }
 0x114   : > { %9323 = vst [vmem:[#allocation18_spill] sm:$0xff] %v6004_v8  ;;  %v1730_v23 = vsel %vm1480_vm2, %v6004_v8, 0.0 }
 0x115   : > { %9328 = vst [vmem:[#allocation23_spill] sm:$0xff] %v6031_v48 }
 0x116   : > { %1509 = vadd.xlane.f32.xlu1 %v1508_v19  ;;  %1506 = vadd.xlane.f32.xlu0 %v1505_v22  ;;  %v6011_v19 = vadd.f32 %v5832_v6, %v1033_v49  ;;  %v6014_v22 = vadd.f32 %v5832_v6, %v1036_v14 }
 0x118   : > { %9324 = vst [vmem:[#allocation19_spill] sm:$0xff] %v6011_v19  ;;  %9325 = vst [vmem:[#allocation20_spill] sm:$0xff] %v6014_v22  ;;  %v1532_v38 = vsel %vm1480_vm2, %v6014_v22, 0.0  ;;  %v1529_v41 = vsel %vm1480_vm2, %v6011_v19, 0.0 }
 0x11a   : > { %1701 = vadd.xlane.f32.xlu1 %v1700_v27  ;;  %1698 = vadd.xlane.f32.xlu0 %v1697_v30  ;;  %v1292_v27 = vpop.f32.mrf.mxu1  ;;  %v1049_v30 = vpop.f32.mrf.mxu0 }
 0x11c   : > { %v5115_v31 = vpop.f32.mrf.mxu1 }
 0x11d   : > { %v6041_v57 = vadd.f32 %v5115_v31, %v5832_v6 }
 0x11e   : > { %1527 = vadd.xlane.f32.xlu1 %v1526_v36  ;;  %1524 = vadd.xlane.f32.xlu0 %v1523_v37  ;;  %v6021_v36 = vadd.f32 %v5832_v6, %v1289_v60  ;;  %v6024_v37 = vadd.f32 %v5832_v6, %v1292_v27 }
 0x11f   : > { %9330 = vst [vmem:[#allocation25_spill] sm:$0xff] %v6041_v57 }
 0x120   : > { %9326 = vst [vmem:[#allocation21_spill] sm:$0xff] %v6021_v36  ;;  %9327 = vst [vmem:[#allocation22_spill] sm:$0xff] %v6024_v37  ;;  %v1724_v50 = vsel %vm1480_vm2, %v6024_v37, 0.0 }
 0x122   : > { %1719 = vadd.xlane.f32.xlu1 %v1718_v44  ;;  %1716 = vadd.xlane.f32.xlu0 %v1715_v47  ;;  %v5052_v44 = vpop.f32.mrf.mxu0  ;;  %v1305_v47 = vpop.f32.mrf.mxu1 }
 0x123   : > { %v6034_v49 = vadd.f32 %v5052_v44, %v5832_v6 }
 0x124   : > { %v1052_v3 = vpop.f32.mrf.mxu0 }
 0x125   : > { %9329 = vst [vmem:[#allocation24_spill] sm:$0xff] %v6034_v49  ;;  %v6054_v14 = vadd.f32 %v5832_v6, %v1052_v3 }
 0x126   : > { %1521 = vadd.xlane.f32.xlu1 %v1520_v55  ;;  %1518 = vadd.xlane.f32.xlu0 %v1517_v56  ;;  %v1721_v55 = vsel %vm1480_vm2, %v6021_v36, 0.0  ;;  %v5116_v56 = vpop.f32.mrf.mxu1 }
 0x127   : > { %v6044_v60 = vadd.f32 %v5116_v56, %v5832_v6  ;;  %9333 = vst [vmem:[#allocation28_spill] sm:$0xff] %v6054_v14 }
 0x129   : > { %9331 = vst [vmem:[#allocation26_spill] sm:$0xff] %v6044_v60  ;;  %v1742_v15 = vsel %vm1480_vm2, %v6044_v60, 0.0 }
 0x12a   : > { %1713 = vadd.xlane.f32.xlu1 %v1712_v1  ;;  %1710 = vadd.xlane.f32.xlu0 %v1709_v2  ;;  %v1550_v1 = vsel %vm1480_vm2, %v6034_v49, 0.0  ;;  %v1547_v2 = vsel %vm1480_vm2, %v6031_v48, 0.0 }
 0x12e   : > { %1539 = vadd.xlane.f32.xlu1 %v1538_v11  ;;  %1536 = vadd.xlane.f32.xlu0 %v1535_v12  ;;  %v5055_v11 = vpop.f32.mrf.mxu0  ;;  %v6051_v12 = vadd.f32 %v5832_v6, %v1049_v30 }
 0x12f   : > { %v6071_v56 = vadd.f32 %v5055_v11, %v5832_v6 }
 0x130   : > { %9332 = vst [vmem:[#allocation27_spill] sm:$0xff] %v6051_v12  ;;  %v1065_v27 = vpop.f32.mrf.mxu0  ;;  %v1541_v44 = vsel %vm1480_vm2, %v6051_v12, 0.0 }
 0x131   : > { %9336 = vst [vmem:[#allocation31_spill] sm:$0xff] %v6071_v56 }
 0x132   : > { %1731 = vadd.xlane.f32.xlu1 %v1730_v23  ;;  %1728 = vadd.xlane.f32.xlu0 %v1727_v24  ;;  %v1739_v23 = vsel %vm1480_vm2, %v6041_v57, 0.0  ;;  %v1308_v24 = vpop.f32.mrf.mxu1 }
 0x133   : > { %v6064_v30 = vadd.f32 %v5832_v6, %v1308_v24  ;;  %v1559_v24 = vsel %vm1480_vm2, %v6071_v56, 0.0 }
 0x134   : > { %v5119_v31 = vpop.f32.mrf.mxu1 }
 0x135   : > { %9335 = vst [vmem:[#allocation30_spill] sm:$0xff] %v6064_v30 }
 0x136   : > { %1533 = vadd.xlane.f32.xlu1 %v1532_v38  ;;  %1530 = vadd.xlane.f32.xlu0 %v1529_v41  ;;  %v6061_v38 = vadd.f32 %v5832_v6, %v1305_v47  ;;  %v1544_v41 = vsel %vm1480_vm2, %v6054_v14, 0.0  ;;  %v1736_v47 = vsel %vm1480_vm2, %v6064_v30, 0.0 }
 0x138   : > { %9334 = vst [vmem:[#allocation29_spill] sm:$0xff] %v6061_v38 }
 0x13a   : > { %1725 = vadd.xlane.f32.xlu1 %v1724_v50  ;;  %1722 = vadd.xlane.f32.xlu0 %v1721_v55  ;;  %v5056_v50 = vpop.f32.mrf.mxu0  ;;  %v1321_v55 = vpop.f32.mrf.mxu1 }
 0x13c   : > { %v5120_v3 = vpop.f32.mrf.mxu1 }
 0x13e   : > { %1551 = vadd.xlane.f32.xlu1 %v1550_v1  ;;  %1548 = vadd.xlane.f32.xlu0 %v1547_v2  ;;  %v6074_v1 = vadd.f32 %v5056_v50, %v5832_v6  ;;  %v1733_v2 = vsel %vm1480_vm2, %v6061_v38, 0.0  ;;  %v6091_v50 = vadd.f32 %v5832_v6, %v1065_v27 }
 0x140   : > { %9337 = vst [vmem:[#allocation32_spill] sm:$0xff] %v6074_v1  ;;  %v1562_v11 = vsel %vm1480_vm2, %v6074_v1, 0.0  ;;  %9340 = vst [vmem:[#allocation35_spill] sm:$0xff] %v6091_v50 }
 0x142   : > { %1743 = vadd.xlane.f32.xlu1 %v1742_v15  ;;  %1740 = vadd.xlane.f32.xlu0 %v1739_v23  ;;  %v6081_v15 = vadd.f32 %v5119_v31, %v5832_v6  ;;  %v6084_v23 = vadd.f32 %v5120_v3, %v5832_v6  ;;  %v1324_v3 = vpop.f32.mrf.mxu1 }
 0x143   : > { %v6104_v27 = vadd.f32 %v5832_v6, %v1324_v3 }
 0x144   : > { %9338 = vst [vmem:[#allocation33_spill] sm:$0xff] %v6081_v15  ;;  %9339 = vst [vmem:[#allocation34_spill] sm:$0xff] %v6084_v23  ;;  %v1754_v31 = vsel %vm1480_vm2, %v6084_v23, 0.0  ;;  %v5123_v1 = vpop.f32.mrf.mxu1 }
 0x145   : > { %9343 = vst [vmem:[#allocation38_spill] sm:$0xff] %v6104_v27 }
 0x146   : > { %1545 = vadd.xlane.f32.xlu1 %v1544_v41  ;;  %1542 = vadd.xlane.f32.xlu0 %v1541_v44  ;;  %v1068_v41 = vpop.f32.mrf.mxu0  ;;  %v1337_v23 = vpop.f32.mrf.mxu1 }
 0x148   : > { %v5059_v44 = vpop.f32.mrf.mxu0 }
 0x14a   : > { %1737 = vadd.xlane.f32.xlu1 %v1736_v47  ;;  %1734 = vadd.xlane.f32.xlu0 %v1733_v2  ;;  %v6094_v47 = vadd.f32 %v5832_v6, %v1068_v41  ;;  %v1751_v2 = vsel %vm1480_vm2, %v6081_v15, 0.0  ;;  %v1081_v56 = vpop.f32.mrf.mxu0  ;;  %v1553_v41 = vsel %vm1480_vm2, %v6091_v50, 0.0 }
 0x14c   : > { %9341 = vst [vmem:[#allocation36_spill] sm:$0xff] %v6094_v47  ;;  %v5060_v15 = vpop.f32.mrf.mxu0 }
 0x14e   : > { %1563 = vadd.xlane.f32.xlu1 %v1562_v11  ;;  %1560 = vadd.xlane.f32.xlu0 %v1559_v24  ;;  %v6101_v11 = vadd.f32 %v5832_v6, %v1321_v55  ;;  %v1556_v24 = vsel %vm1480_vm2, %v6094_v47, 0.0  ;;  %v1748_v55 = vsel %vm1480_vm2, %v6104_v27, 0.0  ;;  %v5124_v47 = vpop.f32.mrf.mxu1  ;;  %v1084_v50 = vpop.f32.mrf.mxu0 }
 0x150   : > { %9342 = vst [vmem:[#allocation37_spill] sm:$0xff] %v6101_v11  ;;  %v1745_v3 = vsel %vm1480_vm2, %v6101_v11, 0.0  ;;  %v5063_v27 = vpop.f32.mrf.mxu0 }
 0x152   : > { %1755 = vadd.xlane.f32.xlu1 %v1754_v31  ;;  %1752 = vadd.xlane.f32.xlu0 %v1751_v2  ;;  %v6111_v31 = vadd.f32 %v5059_v44, %v5832_v6  ;;  %v6114_v2 = vadd.f32 %v5060_v15, %v5832_v6 }
 0x154   : > { %9344 = vst [vmem:[#allocation39_spill] sm:$0xff] %v6111_v31  ;;  %9345 = vst [vmem:[#allocation40_spill] sm:$0xff] %v6114_v2  ;;  %v1574_v44 = vsel %vm1480_vm2, %v6114_v2, 0.0  ;;  %v1571_v15 = vsel %vm1480_vm2, %v6111_v31, 0.0  ;;  %v1340_v2 = vpop.f32.mrf.mxu1  ;;  %v1097_v31 = vpop.f32.mrf.mxu0 }
 0x156   : > { %1557 = vadd.xlane.f32.xlu1 %v1556_v24  ;;  %1554 = vadd.xlane.f32.xlu0 %v1553_v41  ;;  %v6121_v24 = vadd.f32 %v5123_v1, %v5832_v6  ;;  %v6124_v41 = vadd.f32 %v5124_v47, %v5832_v6  ;;  %v5127_v11 = vpop.f32.mrf.mxu1 }
 0x158   : > { %9346 = vst [vmem:[#allocation41_spill] sm:$0xff] %v6121_v24  ;;  %9347 = vst [vmem:[#allocation42_spill] sm:$0xff] %v6124_v41  ;;  %v1766_v1 = vsel %vm1480_vm2, %v6124_v41, 0.0  ;;  %v1763_v47 = vsel %vm1480_vm2, %v6121_v24, 0.0  ;;  %v5064_v24 = vpop.f32.mrf.mxu0  ;;  %v1353_v41 = vpop.f32.mrf.mxu1 }
 0x15a   : > { %1749 = vadd.xlane.f32.xlu1 %v1748_v55  ;;  %1746 = vadd.xlane.f32.xlu0 %v1745_v3  ;;  %v6131_v55 = vadd.f32 %v5832_v6, %v1081_v56  ;;  %v6134_v3 = vadd.f32 %v5832_v6, %v1084_v50  ;;  %v6144_v56 = vadd.f32 %v5832_v6, %v1340_v2 }
 0x15c   : > { %9348 = vst [vmem:[#allocation43_spill] sm:$0xff] %v6131_v55  ;;  %9349 = vst [vmem:[#allocation44_spill] sm:$0xff] %v6134_v3  ;;  %v1568_v50 = vsel %vm1480_vm2, %v6134_v3, 0.0  ;;  %v5128_v3 = vpop.f32.mrf.mxu1 }
 0x15d   : > { %9351 = vst [vmem:[#allocation46_spill] sm:$0xff] %v6144_v56 }
 0x15e   : > { %1575 = vadd.xlane.f32.xlu1 %v1574_v44  ;;  %1572 = vadd.xlane.f32.xlu0 %v1571_v15  ;;  %v6141_v44 = vadd.f32 %v5832_v6, %v1337_v23  ;;  %v1565_v15 = vsel %vm1480_vm2, %v6131_v55, 0.0  ;;  %v1760_v23 = vsel %vm1480_vm2, %v6144_v56, 0.0  ;;  %v1100_v55 = vpop.f32.mrf.mxu0 }
 0x160   : > { %9350 = vst [vmem:[#allocation45_spill] sm:$0xff] %v6141_v44  ;;  %v1757_v2 = vsel %vm1480_vm2, %v6141_v44, 0.0  ;;  %v5067_v56 = vpop.f32.mrf.mxu0 }
 0x162   : > { %1767 = vadd.xlane.f32.xlu1 %v1766_v1  ;;  %1764 = vadd.xlane.f32.xlu0 %v1763_v47  ;;  %v6151_v1 = vadd.f32 %v5063_v27, %v5832_v6  ;;  %v6154_v47 = vadd.f32 %v5064_v24, %v5832_v6 }
 0x164   : > { %9352 = vst [vmem:[#allocation47_spill] sm:$0xff] %v6151_v1  ;;  %9353 = vst [vmem:[#allocation48_spill] sm:$0xff] %v6154_v47  ;;  %v1586_v27 = vsel %vm1480_vm2, %v6154_v47, 0.0  ;;  %v1583_v24 = vsel %vm1480_vm2, %v6151_v1, 0.0  ;;  %v1356_v47 = vpop.f32.mrf.mxu1  ;;  %v1113_v1 = vpop.f32.mrf.mxu0 }
 0x166   : > { %1569 = vadd.xlane.f32.xlu1 %v1568_v50  ;;  %1566 = vadd.xlane.f32.xlu0 %v1565_v15  ;;  %v6161_v50 = vadd.f32 %v5127_v11, %v5832_v6  ;;  %v6164_v15 = vadd.f32 %v5128_v3, %v5832_v6  ;;  %v5131_v44 = vpop.f32.mrf.mxu1 }
 0x167   : > { %v6209_v30 = vadd.f32 %v5131_v44, %v5832_v6  ;;  %v6223_v44 = vadd.f32 %v5832_v6, %v1113_v1 }
 0x168   : > { %9354 = vst [vmem:[#allocation49_spill] sm:$0xff] %v6161_v50  ;;  %9355 = vst [vmem:[#allocation50_spill] sm:$0xff] %v6164_v15  ;;  %v1778_v11 = vsel %vm1480_vm2, %v6164_v15, 0.0  ;;  %v1775_v3 = vsel %vm1480_vm2, %v6161_v50, 0.0  ;;  %v1369_v15 = vpop.f32.mrf.mxu1 }
 0x169   : > { %9362 = vst [vmem:[#allocation57_spill] sm:$0xff] %v6209_v30  ;;  %9364 = vst [vmem:[#allocation59_spill] sm:$0xff] %v6223_v44  ;;  %v6237_v1 = vadd.f32 %v5832_v6, %v1369_v15 }
 0x16a   : > { %1761 = vadd.xlane.f32.xlu1 %v1760_v23  ;;  %1758 = vadd.xlane.f32.xlu0 %v1757_v2  ;;  %v6171_v23 = vadd.f32 %v5832_v6, %v1097_v31  ;;  %v6174_v2 = vadd.f32 %v5832_v6, %v1100_v55  ;;  %v6184_v31 = vadd.f32 %v5832_v6, %v1356_v47  ;;  %v5132_v38 = vpop.f32.mrf.mxu1 }
 0x16b   : > { %9366 = vst [vmem:[#allocation61_spill] sm:$0xff] %v6237_v1 }
 0x16c   : > { %9356 = vst [vmem:[#allocation51_spill] sm:$0xff] %v6171_v23  ;;  %9357 = vst [vmem:[#allocation52_spill] sm:$0xff] %v6174_v2  ;;  %v1580_v55 = vsel %vm1480_vm2, %v6174_v2, 0.0  ;;  %v1772_v2 = vsel %vm1480_vm2, %v6184_v31, 0.0  ;;  %v1372_v14 = vpop.f32.mrf.mxu1 }
 0x16d   : > { %9359 = vst [vmem:[#allocation54_spill] sm:$0xff] %v6184_v31 }
 0x16e   : > { %1587 = vadd.xlane.f32.xlu1 %v1586_v27  ;;  %1584 = vadd.xlane.f32.xlu0 %v1583_v24  ;;  %v6181_v27 = vadd.f32 %v5832_v6, %v1353_v41  ;;  %v1577_v24 = vsel %vm1480_vm2, %v6171_v23, 0.0  ;;  %v6195_v41 = vadd.f32 %v5067_v56, %v5832_v6  ;;  %v6212_v56 = vadd.f32 %v5132_v38, %v5832_v6  ;;  %v5135_v60 = vpop.f32.mrf.mxu1 }
 0x16f   : > { %v6265_v37 = vadd.f32 %v5135_v60, %v5832_v6 }
 0x170   : > { %9358 = vst [vmem:[#allocation53_spill] sm:$0xff] %v6181_v27  ;;  %9360 = vst [vmem:[#allocation55_spill] sm:$0xff] %v6195_v41  ;;  %v1769_v23 = vsel %vm1480_vm2, %v6181_v27, 0.0  ;;  %v1595_v31 = vsel %vm1480_vm2, %v6195_v41, 0.0  ;;  %v1787_v41 = vsel %vm1480_vm2, %v6209_v30, 0.0  ;;  %v1589_v30 = vsel %vm1480_vm2, %v6223_v44, 0.0  ;;  %v1385_v49 = vpop.f32.mrf.mxu1 }
 0x171   : > { %9363 = vst [vmem:[#allocation58_spill] sm:$0xff] %v6212_v56  ;;  %v1781_v44 = vsel %vm1480_vm2, %v6237_v1, 0.0  ;;  %9370 = vst [vmem:[#allocation65_spill] sm:$0xff] %v6265_v37 }
 0x172   : > { %1779 = vadd.xlane.f32.xlu1 %v1778_v11  ;;  %1776 = vadd.xlane.f32.xlu0 %v1775_v3  ;;  %v5068_v3 = vpop.f32.mrf.mxu0  ;;  %v5136_v36 = vpop.f32.mrf.mxu1 }
 0x173   : > { %v6198_v47 = vadd.f32 %v5068_v3, %v5832_v6 }
 0x174   : > { %v1116_v27 = vpop.f32.mrf.mxu0  ;;  %v1388_v22 = vpop.f32.mrf.mxu1 }
 0x175   : > { %9361 = vst [vmem:[#allocation56_spill] sm:$0xff] %v6198_v47  ;;  %v1598_v3 = vsel %vm1480_vm2, %v6198_v47, 0.0  ;;  %v6226_v38 = vadd.f32 %v5832_v6, %v1116_v27  ;;  %v1790_v47 = vsel %vm1480_vm2, %v6212_v56, 0.0  ;;  %v6240_v27 = vadd.f32 %v5832_v6, %v1372_v14 }
 0x176   : > { %1581 = vadd.xlane.f32.xlu1 %v1580_v55  ;;  %1578 = vadd.xlane.f32.xlu0 %v1577_v24  ;;  %v5071_v12 = vpop.f32.mrf.mxu0  ;;  %v5139_v8 = vpop.f32.mrf.mxu1 }
 0x177   : > { %v6190_v50 = vpop.xlane.xlu0 %1680  ;;  %v6192_v11 = vpop.xlane.xlu1 %1488  ;;  %9365 = vst [vmem:[#allocation60_spill] sm:$0xff] %v6226_v38  ;;  %9367 = vst [vmem:[#allocation62_spill] sm:$0xff] %v6240_v27  ;;  %v1592_v56 = vsel %vm1480_vm2, %v6226_v38, 0.0  ;;  %v6251_v15 = vadd.f32 %v5071_v12, %v5832_v6  ;;  %v1784_v38 = vsel %vm1480_vm2, %v6240_v27, 0.0  ;;  %v6268_v12 = vadd.f32 %v5136_v36, %v5832_v6 }
 0x178   : > { %v1129_v57 = vpop.f32.mrf.mxu0  ;;  %v1401_v62 = vpop.f32.mrf.mxu1  ;;  %v6321_v54 = vadd.f32 %v5139_v8, %v5832_v6 }
 0x179   : > { %9368 = vst [vmem:[#allocation63_spill] sm:$0xff] %v6251_v15  ;;  %9371 = vst [vmem:[#allocation66_spill] sm:$0xff] %v6268_v12  ;;  %v1607_v27 = vsel %vm1480_vm2, %v6251_v15, 0.0  ;;  %v6279_v60 = vadd.f32 %v5832_v6, %v1129_v57  ;;  %v1799_v15 = vsel %vm1480_vm2, %v6265_v37, 0.0  ;;  %v6293_v57 = vadd.f32 %v5832_v6, %v1385_v49 }
 0x17a   : > { %1773 = vadd.xlane.f32.xlu1 %v1772_v2  ;;  %1770 = vadd.xlane.f32.xlu0 %v1769_v23  ;;  %v5072_v48 = vpop.f32.mrf.mxu0  ;;  %v5140_v51 = vpop.f32.mrf.mxu1  ;;  %9378 = vst [vmem:[#allocation73_spill] sm:$0xff] %v6321_v54 }
 0x17b   : > { %v6204_v55 = vpop.xlane.xlu1 %1491  ;;  %v6206_v24 = vpop.xlane.xlu0 %1482  ;;  %v6254_v14 = vadd.f32 %v5072_v48, %v5832_v6  ;;  %9372 = vst [vmem:[#allocation67_spill] sm:$0xff] %v6279_v60  ;;  %9374 = vst [vmem:[#allocation69_spill] sm:$0xff] %v6293_v57  ;;  %v1601_v37 = vsel %vm1480_vm2, %v6279_v60, 0.0  ;;  %v1793_v60 = vsel %vm1480_vm2, %v6293_v57, 0.0 }
 0x17c   : > { %v1132_v1 = vpop.f32.mrf.mxu0  ;;  %v1404_v43 = vpop.f32.mrf.mxu1 }
 0x17d   : > { %9369 = vst [vmem:[#allocation64_spill] sm:$0xff] %v6254_v14  ;;  %v1610_v48 = vsel %vm1480_vm2, %v6254_v14, 0.0  ;;  %v6282_v36 = vadd.f32 %v5832_v6, %v1132_v1  ;;  %v1802_v14 = vsel %vm1480_vm2, %v6268_v12, 0.0  ;;  %v6296_v1 = vadd.f32 %v5832_v6, %v1388_v22 }
 0x17e   : > { %1599 = vadd.xlane.f32.xlu1 %v1598_v3  ;;  %1596 = vadd.xlane.f32.xlu0 %v1595_v31  ;;  %v5075_v19 = vpop.f32.mrf.mxu0  ;;  %v5143_v33 = vpop.f32.mrf.mxu1 }
 0x17f   : > { %v6218_v23 = vpop.xlane.xlu1 %1683  ;;  %v6220_v2 = vpop.xlane.xlu0 %1674  ;;  %9373 = vst [vmem:[#allocation68_spill] sm:$0xff] %v6282_v36  ;;  %9375 = vst [vmem:[#allocation70_spill] sm:$0xff] %v6296_v1  ;;  %v1604_v12 = vsel %vm1480_vm2, %v6282_v36, 0.0  ;;  %v6307_v49 = vadd.f32 %v5075_v19, %v5832_v6  ;;  %v1796_v36 = vsel %vm1480_vm2, %v6296_v1, 0.0  ;;  %v6324_v19 = vadd.f32 %v5140_v51, %v5832_v6 }
 0x180   : > { %v1145_v4 = vpop.f32.mrf.mxu0  ;;  %v1417_v26 = vpop.f32.mrf.mxu1 }
 0x181   : > { %9376 = vst [vmem:[#allocation71_spill] sm:$0xff] %v6307_v49  ;;  %9379 = vst [vmem:[#allocation74_spill] sm:$0xff] %v6324_v19  ;;  %v1619_v1 = vsel %vm1480_vm2, %v6307_v49, 0.0  ;;  %v6335_v8 = vadd.f32 %v5832_v6, %v1145_v4  ;;  %v1811_v49 = vsel %vm1480_vm2, %v6321_v54, 0.0  ;;  %v6349_v4 = vadd.f32 %v5832_v6, %v1401_v62 }
 0x182   : > { %1791 = vadd.xlane.f32.xlu1 %v1790_v47  ;;  %1788 = vadd.xlane.f32.xlu0 %v1787_v41  ;;  %v5076_v61 = vpop.f32.mrf.mxu0 }
 0x183   : > { %v6232_v31 = vpop.xlane.xlu1 %1677  ;;  %v6234_v3 = vpop.xlane.xlu0 %1485  ;;  %v6310_v22 = vadd.f32 %v5076_v61, %v5832_v6  ;;  %9380 = vst [vmem:[#allocation75_spill] sm:$0xff] %v6335_v8  ;;  %9382 = vst [vmem:[#allocation77_spill] sm:$0xff] %v6349_v4  ;;  %v1613_v54 = vsel %vm1480_vm2, %v6335_v8, 0.0  ;;  %v1805_v8 = vsel %vm1480_vm2, %v6349_v4, 0.0 }
 0x184   : > { %v1148_v57 = vpop.f32.mrf.mxu0 }
 0x185   : > { %9377 = vst [vmem:[#allocation72_spill] sm:$0xff] %v6310_v22  ;;  %v1622_v61 = vsel %vm1480_vm2, %v6310_v22, 0.0  ;;  %v6338_v51 = vadd.f32 %v5832_v6, %v1148_v57  ;;  %v1814_v22 = vsel %vm1480_vm2, %v6324_v19, 0.0  ;;  %v6352_v57 = vadd.f32 %v5832_v6, %v1404_v43 }
 0x186   : > { %1593 = vadd.xlane.f32.xlu1 %v1592_v56  ;;  %1590 = vadd.xlane.f32.xlu0 %v1589_v30  ;;  %v5079_v42 = vpop.f32.mrf.mxu0 }
 0x187   : > { %v6246_v41 = vpop.xlane.xlu1 %1503  ;;  %v6248_v47 = vpop.xlane.xlu0 %1500  ;;  %9381 = vst [vmem:[#allocation76_spill] sm:$0xff] %v6338_v51  ;;  %9383 = vst [vmem:[#allocation78_spill] sm:$0xff] %v6352_v57  ;;  %v1616_v19 = vsel %vm1480_vm2, %v6338_v51, 0.0  ;;  %v6363_v62 = vadd.f32 %v5079_v42, %v5832_v6  ;;  %v1808_v51 = vsel %vm1480_vm2, %v6352_v57, 0.0 }
 0x188   : > { %v1161_v32 = vpop.f32.mrf.mxu0 }
 0x189   : > { %9386 = vst [vmem:[#allocation81_spill] sm:$0xff] %v6363_v62  ;;  %v1631_v57 = vsel %vm1480_vm2, %v6363_v62, 0.0 }
 0x18a   : > { %1785 = vadd.xlane.f32.xlu1 %v1784_v38  ;;  %1782 = vadd.xlane.f32.xlu0 %v1781_v44  ;;  %v5080_v25 = vpop.f32.mrf.mxu0 }
 0x18b   : > { %v6260_v30 = vpop.xlane.xlu1 %1695  ;;  %v6262_v56 = vpop.xlane.xlu0 %1692  ;;  %v6366_v43 = vadd.f32 %v5080_v25, %v5832_v6 }
 0x18c   : > { %v1164_v4 = vpop.f32.mrf.mxu0 }
 0x18d   : > { %9387 = vst [vmem:[#allocation82_spill] sm:$0xff] %v6366_v43  ;;  %v1634_v25 = vsel %vm1480_vm2, %v6366_v43, 0.0 }
 0x18e   : > { %1611 = vadd.xlane.f32.xlu1 %v1610_v48  ;;  %1608 = vadd.xlane.f32.xlu0 %v1607_v27 }
 0x18f   : > { %v6274_v44 = vpop.xlane.xlu1 %1497  ;;  %v6276_v38 = vpop.xlane.xlu0 %1494 }
 0x192   : > { %1803 = vadd.xlane.f32.xlu1 %v1802_v14  ;;  %1800 = vadd.xlane.f32.xlu0 %v1799_v15 }
 0x193   : > { %v6288_v27 = vpop.xlane.xlu1 %1689  ;;  %v6290_v48 = vpop.xlane.xlu0 %1686 }
 0x196   : > { %1605 = vadd.xlane.f32.xlu1 %v1604_v12  ;;  %1602 = vadd.xlane.f32.xlu0 %v1601_v37 }
 0x197   : > { %v6302_v15 = vpop.xlane.xlu1 %1515  ;;  %v6304_v14 = vpop.xlane.xlu0 %1512 }
 0x19a   : > { %1797 = vadd.xlane.f32.xlu1 %v1796_v36  ;;  %1794 = vadd.xlane.f32.xlu0 %v1793_v60 }
 0x19b   : > { %v6316_v37 = vpop.xlane.xlu1 %1707  ;;  %v6318_v12 = vpop.xlane.xlu0 %1704 }
 0x19e   : > { %1623 = vadd.xlane.f32.xlu1 %v1622_v61  ;;  %1620 = vadd.xlane.f32.xlu0 %v1619_v1 }
 0x19f   : > { %v6330_v60 = vpop.xlane.xlu1 %1509  ;;  %v6332_v36 = vpop.xlane.xlu0 %1506 }
 0x1a2   : > { %1815 = vadd.xlane.f32.xlu1 %v1814_v22  ;;  %1812 = vadd.xlane.f32.xlu0 %v1811_v49 }
 0x1a3   : > { %v6344_v1 = vpop.xlane.xlu1 %1701  ;;  %v6346_v61 = vpop.xlane.xlu0 %1698 }
 0x1a6   : > { %1617 = vadd.xlane.f32.xlu1 %v1616_v19  ;;  %1614 = vadd.xlane.f32.xlu0 %v1613_v54 }
 0x1a7   : > { %v6358_v49 = vpop.xlane.xlu1 %1527  ;;  %v6360_v22 = vpop.xlane.xlu0 %1524 }
 0x1a8   : > { %9384 = vst [vmem:[#allocation79_spill] sm:$0xff] %v6358_v49  ;;  %9385 = vst [vmem:[#allocation80_spill] sm:$0xff] %v6360_v22  ;;  %v5144_v22 = vpop.f32.mrf.mxu1  ;;  %v6377_v49 = vadd.f32 %v5143_v33, %v5832_v6  ;;  %v6391_v33 = vadd.f32 %v5832_v6, %v1161_v32  ;;  %v6405_v32 = vadd.f32 %v5832_v6, %v1417_v26 }
 0x1a9   : > { %v6380_v42 = vadd.f32 %v5144_v22, %v5832_v6  ;;  %v6394_v22 = vadd.f32 %v5832_v6, %v1164_v4 }
 0x1aa   : > { %1809 = vadd.xlane.f32.xlu1 %v1808_v51  ;;  %1806 = vadd.xlane.f32.xlu0 %v1805_v8  ;;  %9390 = vst [vmem:[#allocation85_spill] sm:$0xff] %v6377_v49  ;;  %9394 = vst [vmem:[#allocation89_spill] sm:$0xff] %v6391_v33  ;;  %v1823_v62 = vsel %vm1480_vm2, %v6377_v49, 0.0  ;;  %v1625_v49 = vsel %vm1480_vm2, %v6391_v33, 0.0  ;;  %v1817_v33 = vsel %vm1480_vm2, %v6405_v32, 0.0 }
 0x1ab   : > { %v6372_v54 = vpop.xlane.xlu1 %1719  ;;  %v6374_v19 = vpop.xlane.xlu0 %1716  ;;  %9391 = vst [vmem:[#allocation86_spill] sm:$0xff] %v6380_v42  ;;  %9395 = vst [vmem:[#allocation90_spill] sm:$0xff] %v6394_v22  ;;  %v1826_v43 = vsel %vm1480_vm2, %v6380_v42, 0.0  ;;  %v1628_v42 = vsel %vm1480_vm2, %v6394_v22, 0.0 }
 0x1ac   : > { %9388 = vst [vmem:[#allocation83_spill] sm:$0xff] %v6372_v54  ;;  %9389 = vst [vmem:[#allocation84_spill] sm:$0xff] %v6374_v19  ;;  %v5083_v19 = vpop.f32.mrf.mxu0  ;;  %v1420_v54 = vpop.f32.mrf.mxu1 }
 0x1ad   : > { %9398 = vst [vmem:[#allocation93_spill] sm:$0xff] %v6405_v32  ;;  %v6408_v4 = vadd.f32 %v5832_v6, %v1420_v54  ;;  %v6419_v26 = vadd.f32 %v5083_v19, %v5832_v6 }
 0x1ae   : > { %1635 = vadd.xlane.f32.xlu1 %v1634_v25  ;;  %1632 = vadd.xlane.f32.xlu0 %v1631_v57 }
 0x1af   : > { %v6386_v8 = vpop.xlane.xlu1 %1521  ;;  %v6388_v51 = vpop.xlane.xlu0 %1518  ;;  %9399 = vst [vmem:[#allocation94_spill] sm:$0xff] %v6408_v4  ;;  %9402 = vst [vmem:[#allocation97_spill] sm:$0xff] %v6419_v26  ;;  %v1820_v22 = vsel %vm1480_vm2, %v6408_v4, 0.0  ;;  %v1643_v4 = vsel %vm1480_vm2, %v6419_v26, 0.0 }
 0x1b0   : > { %9392 = vst [vmem:[#allocation87_spill] sm:$0xff] %v6386_v8  ;;  %9393 = vst [vmem:[#allocation88_spill] sm:$0xff] %v6388_v51  ;;  %v1177_v51 = vpop.f32.mrf.mxu0  ;;  %v5147_v8 = vpop.f32.mrf.mxu1 }
 0x1b2   : > { %1827 = vadd.xlane.f32.xlu1 %v1826_v43  ;;  %1824 = vadd.xlane.f32.xlu0 %v1823_v62 }
 0x1b3   : > { %v6400_v57 = vpop.xlane.xlu1 %1713  ;;  %v6402_v25 = vpop.xlane.xlu0 %1710 }
 0x1b4   : > { %9396 = vst [vmem:[#allocation91_spill] sm:$0xff] %v6400_v57  ;;  %9397 = vst [vmem:[#allocation92_spill] sm:$0xff] %v6402_v25  ;;  %v5084_v25 = vpop.f32.mrf.mxu0  ;;  %v1433_v57 = vpop.f32.mrf.mxu1 }
 0x1b5   : > { %v6422_v54 = vadd.f32 %v5084_v25, %v5832_v6 }
 0x1b6   : > { %1629 = vadd.xlane.f32.xlu1 %v1628_v42  ;;  %1626 = vadd.xlane.f32.xlu0 %v1625_v49  ;;  %v1180_v32 = vpop.f32.mrf.mxu0 }
 0x1b7   : > { %v6414_v62 = vpop.xlane.xlu1 %1539  ;;  %v6416_v43 = vpop.xlane.xlu0 %1536  ;;  %9403 = vst [vmem:[#allocation98_spill] sm:$0xff] %v6422_v54  ;;  %v1646_v25 = vsel %vm1480_vm2, %v6422_v54, 0.0 }
 0x1b8   : > { %9400 = vst [vmem:[#allocation95_spill] sm:$0xff] %v6414_v62  ;;  %9401 = vst [vmem:[#allocation96_spill] sm:$0xff] %v6416_v43  ;;  %v5148_v43 = vpop.f32.mrf.mxu1  ;;  %v6433_v62 = vadd.f32 %v5147_v8, %v5832_v6  ;;  %v6447_v8 = vadd.f32 %v5832_v6, %v1177_v51  ;;  %v6461_v51 = vadd.f32 %v5832_v6, %v1433_v57 }
 0x1b9   : > { %v6436_v19 = vadd.f32 %v5148_v43, %v5832_v6  ;;  %v6450_v43 = vadd.f32 %v5832_v6, %v1180_v32 }
 0x1ba   : > { %1821 = vadd.xlane.f32.xlu1 %v1820_v22  ;;  %1818 = vadd.xlane.f32.xlu0 %v1817_v33  ;;  %9406 = vst [vmem:[#allocation101_spill] sm:$0xff] %v6433_v62  ;;  %9410 = vst [vmem:[#allocation105_spill] sm:$0xff] %v6447_v8  ;;  %v1835_v26 = vsel %vm1480_vm2, %v6433_v62, 0.0  ;;  %v1637_v62 = vsel %vm1480_vm2, %v6447_v8, 0.0  ;;  %v1829_v8 = vsel %vm1480_vm2, %v6461_v51, 0.0 }
 0x1bb   : > { %v6428_v49 = vpop.xlane.xlu1 %1731  ;;  %v6430_v42 = vpop.xlane.xlu0 %1728  ;;  %9407 = vst [vmem:[#allocation102_spill] sm:$0xff] %v6436_v19  ;;  %9411 = vst [vmem:[#allocation106_spill] sm:$0xff] %v6450_v43  ;;  %v1838_v54 = vsel %vm1480_vm2, %v6436_v19, 0.0  ;;  %v1640_v19 = vsel %vm1480_vm2, %v6450_v43, 0.0 }
 0x1bc   : > { %9404 = vst [vmem:[#allocation99_spill] sm:$0xff] %v6428_v49  ;;  %9405 = vst [vmem:[#allocation100_spill] sm:$0xff] %v6430_v42  ;;  %v5087_v42 = vpop.f32.mrf.mxu0  ;;  %v1436_v49 = vpop.f32.mrf.mxu1 }
 0x1bd   : > { %9414 = vst [vmem:[#allocation109_spill] sm:$0xff] %v6461_v51  ;;  %v6464_v32 = vadd.f32 %v5832_v6, %v1436_v49  ;;  %v6475_v57 = vadd.f32 %v5087_v42, %v5832_v6 }
 0x1be   : > { %1647 = vadd.xlane.f32.xlu1 %v1646_v25  ;;  %1644 = vadd.xlane.f32.xlu0 %v1643_v4 }
 0x1bf   : > { %v6442_v33 = vpop.xlane.xlu1 %1533  ;;  %v6444_v22 = vpop.xlane.xlu0 %1530  ;;  %9415 = vst [vmem:[#allocation110_spill] sm:$0xff] %v6464_v32  ;;  %9418 = vst [vmem:[#allocation113_spill] sm:$0xff] %v6475_v57  ;;  %v1832_v43 = vsel %vm1480_vm2, %v6464_v32, 0.0  ;;  %v1655_v32 = vsel %vm1480_vm2, %v6475_v57, 0.0 }
 0x1c0   : > { %9408 = vst [vmem:[#allocation103_spill] sm:$0xff] %v6442_v33  ;;  %9409 = vst [vmem:[#allocation104_spill] sm:$0xff] %v6444_v22  ;;  %v1193_v22 = vpop.f32.mrf.mxu0  ;;  %v5151_v33 = vpop.f32.mrf.mxu1 }
 0x1c2   : > { %1839 = vadd.xlane.f32.xlu1 %v1838_v54  ;;  %1836 = vadd.xlane.f32.xlu0 %v1835_v26 }
 0x1c3   : > { %v6456_v4 = vpop.xlane.xlu1 %1725  ;;  %v6458_v25 = vpop.xlane.xlu0 %1722 }
 0x1c4   : > { %9412 = vst [vmem:[#allocation107_spill] sm:$0xff] %v6456_v4  ;;  %9413 = vst [vmem:[#allocation108_spill] sm:$0xff] %v6458_v25  ;;  %v5088_v25 = vpop.f32.mrf.mxu0  ;;  %v1449_v4 = vpop.f32.mrf.mxu1 }
 0x1c5   : > { %v6478_v49 = vadd.f32 %v5088_v25, %v5832_v6 }
 0x1c6   : > { %1641 = vadd.xlane.f32.xlu1 %v1640_v19  ;;  %1638 = vadd.xlane.f32.xlu0 %v1637_v62  ;;  %v1196_v51 = vpop.f32.mrf.mxu0 }
 0x1c7   : > { %v6470_v26 = vpop.xlane.xlu1 %1551  ;;  %v6472_v54 = vpop.xlane.xlu0 %1548  ;;  %9419 = vst [vmem:[#allocation114_spill] sm:$0xff] %v6478_v49  ;;  %v1658_v25 = vsel %vm1480_vm2, %v6478_v49, 0.0 }
 0x1c8   : > { %9416 = vst [vmem:[#allocation111_spill] sm:$0xff] %v6470_v26  ;;  %9417 = vst [vmem:[#allocation112_spill] sm:$0xff] %v6472_v54  ;;  %v5152_v54 = vpop.f32.mrf.mxu1  ;;  %v6489_v26 = vadd.f32 %v5151_v33, %v5832_v6  ;;  %v5533_v33 = vld [vmem:[%s9071_s2] ss:$0 sm:$0xff] }
 0x1c9   : > { %v6492_v42 = vadd.f32 %v5152_v54, %v5832_v6  ;;  %v6505_v6 = vadd.f32 %v5533_v33, %v1193_v22  ;;  %v6507_v54 = vadd.f32 %v5533_v33, %v1196_v51  ;;  %v6517_v16 = vadd.f32 %v5533_v33, %v1449_v4 }
 0x1ca   : > { %1833 = vadd.xlane.f32.xlu1 %v1832_v43  ;;  %1830 = vadd.xlane.f32.xlu0 %v1829_v8  ;;  %9422 = vst [vmem:[#allocation117_spill] sm:$0xff] %v6489_v26 }
 0x1cb   : > { %v6484_v62 = vpop.xlane.xlu1 %1743  ;;  %v6486_v19 = vpop.xlane.xlu0 %1740  ;;  %9423 = vst [vmem:[#allocation118_spill] sm:$0xff] %v6492_v42  ;;  %9426 = vst [vmem:[#allocation121_spill] sm:$0xff] %v6505_v6  ;;  %v1850_v49 = vsel %vm1480_vm2, %v6492_v42, 0.0  ;;  %v1652_v51 = vsel %vm1480_vm2, %v6507_v54, 0.0  ;;  %v1649_v42 = vsel %vm1480_vm2, %v6505_v6, 0.0 }
 0x1cc   : > { %9420 = vst [vmem:[#allocation115_spill] sm:$0xff] %v6484_v62  ;;  %9421 = vst [vmem:[#allocation116_spill] sm:$0xff] %v6486_v19  ;;  %v5091_v19 = vpop.f32.mrf.mxu0 }
 0x1cd   : > { %9427 = vst [vmem:[#allocation122_spill] sm:$0xff] %v6507_v54  ;;  %9430 = vst [vmem:[#allocation125_spill] sm:$0xff] %v6517_v16  ;;  %v1841_v54 = vsel %vm1480_vm2, %v6517_v16, 0.0 }
 0x1ce   : > { %1659 = vadd.xlane.f32.xlu1 %v1658_v25  ;;  %1656 = vadd.xlane.f32.xlu0 %v1655_v32  ;;  %v1847_v25 = vsel %vm1480_vm2, %v6489_v26, 0.0  ;;  %v1452_v32 = vpop.f32.mrf.mxu1 }
 0x1cf   : > { %v6498_v8 = vpop.xlane.xlu1 %1545  ;;  %v6500_v43 = vpop.xlane.xlu0 %1542  ;;  %v6519_v22 = vadd.f32 %v5533_v33, %v1452_v32 }
 0x1d0   : > { %9424 = vst [vmem:[#allocation119_spill] sm:$0xff] %v6498_v8  ;;  %9425 = vst [vmem:[#allocation120_spill] sm:$0xff] %v6500_v43  ;;  %v1209_v8 = vpop.f32.mrf.mxu0  ;;  %v5155_v62 = vpop.f32.mrf.mxu1 }
 0x1d1   : > { %9431 = vst [vmem:[#allocation126_spill] sm:$0xff] %v6519_v22  ;;  %v1844_v32 = vsel %vm1480_vm2, %v6519_v22, 0.0  ;;  %v6541_v6 = vadd.f32 %v5533_v33, %v5155_v62  ;;  %v6553_v16 = vadd.f32 %v5533_v33, %v1209_v8  ;;  %v1932_v8 = vmul.f32 0.015625, %v6190_v50 }
 0x1d2   : > { %1851 = vadd.xlane.f32.xlu1 %v1850_v49  ;;  %1848 = vadd.xlane.f32.xlu0 %v1847_v25  ;;  %v5092_v26 = vpop.f32.mrf.mxu0 }
 0x1d3   : > { %v6513_v57 = vpop.xlane.xlu1 %1737  ;;  %v6515_v43 = vpop.xlane.xlu0 %1734  ;;  %v6531_v4 = vadd.f32 %v5533_v33, %v5092_v26  ;;  %9438 = vst [vmem:[#allocation133_spill] sm:$0xff] %v6541_v6  ;;  %9441 = vst [vmem:[#allocation136_spill] sm:$0xff] %v6553_v16  ;;  %v1859_v62 = vsel %vm1480_vm2, %v6541_v6, 0.0 }
 0x1d4   : > { %9428 = vst [vmem:[#allocation123_spill] sm:$0xff] %v6513_v57  ;;  %9429 = vst [vmem:[#allocation124_spill] sm:$0xff] %v6515_v43  ;;  %v1465_v43 = vpop.f32.mrf.mxu1  ;;  %v6529_v57 = vadd.f32 %v5533_v33, %v5091_v19  ;;  %v1212_v22 = vpop.f32.mrf.mxu0 }
 0x1d5   : > { %9435 = vst [vmem:[#allocation130_spill] sm:$0xff] %v6531_v4  ;;  %v1670_v26 = vsel %vm1480_vm2, %v6531_v4, 0.0  ;;  %v6559_v4 = vadd.f32 %v5533_v33, %v1212_v22 }
 0x1d6   : > { %1653 = vadd.xlane.f32.xlu1 %v1652_v51  ;;  %1650 = vadd.xlane.f32.xlu0 %v1649_v42  ;;  %9434 = vst [vmem:[#allocation129_spill] sm:$0xff] %v6529_v57  ;;  %v1667_v19 = vsel %vm1480_vm2, %v6529_v57, 0.0 }
 0x1d7   : > { %v6525_v49 = vpop.xlane.xlu1 %1563  ;;  %v6527_v25 = vpop.xlane.xlu0 %1560  ;;  %9442 = vst [vmem:[#allocation137_spill] sm:$0xff] %v6559_v4 }
 0x1d8   : > { %9432 = vst [vmem:[#allocation127_spill] sm:$0xff] %v6525_v49  ;;  %9433 = vst [vmem:[#allocation128_spill] sm:$0xff] %v6527_v25  ;;  %v5156_v25 = vpop.f32.mrf.mxu1 }
 0x1d9   : > { %v6543_v49 = vadd.f32 %v5533_v33, %v5156_v25  ;;  %v1868_v25 = vmul.f32 0.015625, %v6192_v11  ;;  %v1661_v11 = vsel %vm1480_vm2, %v6553_v16, 0.0 }
 0x1da   : > { %1845 = vadd.xlane.f32.xlu1 %v1844_v32  ;;  %1842 = vadd.xlane.f32.xlu0 %v1841_v54 }
 0x1db   : > { %v6537_v51 = vpop.xlane.xlu1 %1755  ;;  %v6539_v42 = vpop.xlane.xlu0 %1752  ;;  %9439 = vst [vmem:[#allocation134_spill] sm:$0xff] %v6543_v49  ;;  %v9536_v16 = vld [vmem:[#allocation124_spill] sm:$0xff] }
 0x1dc   : > { %9436 = vst [vmem:[#allocation131_spill] sm:$0xff] %v6537_v51  ;;  %9437 = vst [vmem:[#allocation132_spill] sm:$0xff] %v6539_v42  ;;  %v1869_v42 = vmul.f32 0.015625, %v6204_v55  ;;  %v1468_v51 = vpop.f32.mrf.mxu1  ;;  %v6575_v55 = vsub.f32 %v5835_v9, %v1868_v25  ;;  %v1866_v9 = vmul.f32 0.015625, %v6206_v24 }
 0x1dd   : > { %v6570_v6 = vadd.f32 %v5533_v33, %v1468_v51 }
 0x1de   : > { %1671 = vadd.xlane.f32.xlu1 %v1670_v26  ;;  %1668 = vadd.xlane.f32.xlu0 %v1667_v19  ;;  %v1862_v26 = vsel %vm1480_vm2, %v6543_v49, 0.0  ;;  %9445 = vst [vmem:[#allocation140_spill] sm:$0xff] %v6575_v55  ;;  %v6578_v22 = vsub.f32 %v5848_v18, %v1869_v42  ;;  %v1867_v42 = vmul.f32 0.015625, %v6234_v3 }
 0x1df   : > { %v6549_v32 = vpop.xlane.xlu1 %1557  ;;  %v6551_v54 = vpop.xlane.xlu0 %1554  ;;  %9444 = vst [vmem:[#allocation139_spill] sm:$0xff] %v6570_v6  ;;  %v1856_v18 = vsel %vm1480_vm2, %v6570_v6, 0.0 }
 0x1e0   : > { %9440 = vst [vmem:[#allocation135_spill] sm:$0xff] %v6551_v54  ;;  %v6568_v54 = vadd.f32 %v5533_v33, %v1465_v43  ;;  %9446 = vst [vmem:[#allocation141_spill] sm:$0xff] %v6578_v22  ;;  %v6588_v33 = vsub.f32 %v5838_v10, %v1932_v8  ;;  %v2125_v25 = vmul.f32 %v6578_v22, %v6578_v22 }
 0x1e1   : > { %v2124_v10 = vmul.f32 %v6575_v55, %v6575_v55 }
 0x1e2   : > { %1863 = vadd.xlane.f32.xlu1 %v1862_v26  ;;  %1860 = vadd.xlane.f32.xlu0 %v1859_v62  ;;  %9443 = vst [vmem:[#allocation138_spill] sm:$0xff] %v6568_v54  ;;  %v1933_v62 = vmul.f32 0.015625, %v6218_v23  ;;  %v1664_v26 = vsel %vm1480_vm2, %v6559_v4, 0.0  ;;  %9447 = vst [vmem:[#allocation142_spill] sm:$0xff] %v6588_v33  ;;  %v1853_v23 = vsel %vm1480_vm2, %v6568_v54, 0.0  ;;  %v2188_v3 = vmul.f32 %v6588_v33, %v6588_v33  ;;  %v9512_v33 = vld [vmem:[#allocation19_spill] sm:$0xff] }
 0x1e3   : > { %v6563_v19 = vpop.xlane.xlu1 %1749  ;;  %v6565_v57 = vpop.xlane.xlu0 %1746 }
 0x1e4   : > { %v6596_v51 = vsub.f32 %v5854_v21, %v1933_v62  ;;  %v1930_v21 = vmul.f32 0.015625, %v6220_v2  ;;  %v1931_v62 = vmul.f32 0.015625, %v6232_v31 }
 0x1e6   : > { %1665 = vadd.xlane.f32.xlu1 %v1664_v26  ;;  %1662 = vadd.xlane.f32.xlu0 %v1661_v11  ;;  %9448 = vst [vmem:[#allocation143_spill] sm:$0xff] %v6596_v51  ;;  %v6608_v11 = vsub.f32 %v5841_v13, %v1866_v9  ;;  %v6615_v26 = vsub.f32 %v5861_v28, %v1867_v42  ;;  %v1873_v28 = vmul.f32 0.015625, %v6246_v41  ;;  %v2448_v42 = vsel %vm1480_vm2, %v2188_v3, 0.0 }
 0x1e7   : > { %v6583_v50 = vpop.xlane.xlu1 %1575  ;;  %v6585_v43 = vpop.xlane.xlu0 %1572  ;;  %v2189_v55 = vmul.f32 %v6596_v51, %v6596_v51  ;;  %v6626_v31 = vsub.f32 %v5851_v20, %v1930_v21  ;;  %v6629_v9 = vsub.f32 %v5864_v29, %v1931_v62  ;;  %v1937_v21 = vmul.f32 0.015625, %v6260_v30 }
 0x1e8   : > { %9449 = vst [vmem:[#allocation144_spill] sm:$0xff] %v6608_v11  ;;  %9450 = vst [vmem:[#allocation145_spill] sm:$0xff] %v6615_v26  ;;  %v6644_v41 = vsub.f32 %v5874_v35, %v1873_v28  ;;  %v1936_v3 = vmul.f32 0.015625, %v6262_v56 }
 0x1e9   : > { %9451 = vst [vmem:[#allocation146_spill] sm:$0xff] %v6626_v31  ;;  %9452 = vst [vmem:[#allocation147_spill] sm:$0xff] %v6629_v9  ;;  %v6662_v28 = vsub.f32 %v5884_v40, %v1937_v21 }
 0x1ea   : > { %1857 = vadd.xlane.f32.xlu1 %v1856_v18  ;;  %1854 = vadd.xlane.f32.xlu0 %v1853_v23  ;;  %v2259_v18 = vsel %vm1480_vm2, %v2125_v25, 0.0  ;;  %v2256_v23 = vsel %vm1480_vm2, %v2124_v10, 0.0  ;;  %v1872_v25 = vmul.f32 0.015625, %v6248_v47  ;;  %v2451_v10 = vsel %vm1480_vm2, %v2189_v55, 0.0  ;;  %9453 = vst [vmem:[#allocation148_spill] sm:$0xff] %v6644_v41 }
 0x1eb   : > { %v6603_v24 = vpop.xlane.xlu1 %1767  ;;  %v6605_v8 = vpop.xlane.xlu0 %1764  ;;  %v2187_v47 = vmul.f32 %v6629_v9, %v6629_v9  ;;  %v2186_v55 = vmul.f32 %v6626_v31, %v6626_v31  ;;  %9455 = vst [vmem:[#allocation150_spill] sm:$0xff] %v6662_v28  ;;  %v2129_v56 = vmul.f32 %v6644_v41, %v6644_v41 }
 0x1ec   : > { %v6652_v62 = vsub.f32 %v5871_v34, %v1872_v25  ;;  %v6669_v25 = vsub.f32 %v5881_v39, %v1936_v3 }
 0x1ed   : > { %v2445_v31 = vsel %vm1480_vm2, %v2187_v47, 0.0  ;;  %v2442_v34 = vsel %vm1480_vm2, %v2186_v55, 0.0  ;;  %v1935_v47 = vmul.f32 0.015625, %v6288_v27  ;;  %v1934_v55 = vmul.f32 0.015625, %v6290_v48 }
 0x1ee   : > { %2260 = vadd.xlane.f32.xlu1 %v2259_v18  ;;  %2257 = vadd.xlane.f32.xlu0 %v2256_v23  ;;  %v2123_v18 = vmul.f32 %v6615_v26, %v6615_v26  ;;  %v2122_v23 = vmul.f32 %v6608_v11, %v6608_v11  ;;  %9454 = vst [vmem:[#allocation149_spill] sm:$0xff] %v6652_v62  ;;  %9456 = vst [vmem:[#allocation151_spill] sm:$0xff] %v6669_v25  ;;  %v2271_v39 = vsel %vm1480_vm2, %v2129_v56, 0.0  ;;  %v9509_v26 = vld [vmem:[#allocation108_spill] sm:$0xff] }
 0x1ef   : > { %v6621_v13 = vpop.xlane.xlu1 %1569  ;;  %v6623_v2 = vpop.xlane.xlu0 %1566 }
 0x1f2   : > { %2452 = vadd.xlane.f32.xlu1 %v2451_v10  ;;  %2449 = vadd.xlane.f32.xlu0 %v2448_v42  ;;  %v2253_v42 = vsel %vm1480_vm2, %v2123_v18, 0.0  ;;  %v2250_v10 = vsel %vm1480_vm2, %v2122_v23, 0.0  ;;  %v1871_v18 = vmul.f32 0.015625, %v6274_v44  ;;  %v1870_v23 = vmul.f32 0.015625, %v6276_v38 }
 0x1f3   : > { %v6639_v20 = vpop.xlane.xlu1 %1761  ;;  %v6641_v29 = vpop.xlane.xlu0 %1758  ;;  %v2193_v44 = vmul.f32 %v6662_v28, %v6662_v28 }
 0x1f4   : > { %v6685_v38 = vsub.f32 %v5894_v46, %v1871_v18  ;;  %v6688_v3 = vsub.f32 %v5891_v45, %v1870_v23  ;;  %v6701_v46 = vsub.f32 %v5901_v52, %v1934_v55  ;;  %v1877_v45 = vmul.f32 0.015625, %v6302_v15 }
 0x1f5   : > { %v2463_v56 = vsel %vm1480_vm2, %v2193_v44, 0.0  ;;  %v1876_v18 = vmul.f32 0.015625, %v6304_v14 }
 0x1f6   : > { %2254 = vadd.xlane.f32.xlu1 %v2253_v42  ;;  %2251 = vadd.xlane.f32.xlu0 %v2250_v10  ;;  %v2128_v42 = vmul.f32 %v6652_v62, %v6652_v62  ;;  %9457 = vst [vmem:[#allocation152_spill] sm:$0xff] %v6685_v38  ;;  %9458 = vst [vmem:[#allocation153_spill] sm:$0xff] %v6688_v3  ;;  %v2192_v10 = vmul.f32 %v6669_v25, %v6669_v25 }
 0x1f7   : > { %v6657_v35 = vpop.xlane.xlu1 %1587  ;;  %v6659_v30 = vpop.xlane.xlu0 %1584  ;;  %9460 = vst [vmem:[#allocation155_spill] sm:$0xff] %v6701_v46  ;;  %v6716_v15 = vsub.f32 %v5914_v59, %v1877_v45  ;;  %v2190_v55 = vmul.f32 %v6701_v46, %v6701_v46  ;;  %v6724_v44 = vsub.f32 %v5911_v58, %v1876_v18 }
 0x1f8   : > { %v2460_v23 = vsel %vm1480_vm2, %v2192_v10, 0.0 }
 0x1f9   : > { %9461 = vst [vmem:[#allocation156_spill] sm:$0xff] %v6716_v15  ;;  %9462 = vst [vmem:[#allocation157_spill] sm:$0xff] %v6724_v44  ;;  %v2454_v58 = vsel %vm1480_vm2, %v2190_v55, 0.0  ;;  %v1938_v55 = vmul.f32 0.015625, %v6346_v61 }
 0x1fa   : > { %2446 = vadd.xlane.f32.xlu1 %v2445_v31  ;;  %2443 = vadd.xlane.f32.xlu0 %v2442_v34  ;;  %v2268_v31 = vsel %vm1480_vm2, %v2128_v42, 0.0  ;;  %v6698_v34 = vsub.f32 %v5904_v53, %v1935_v47  ;;  %v2127_v42 = vmul.f32 %v6685_v38, %v6685_v38  ;;  %v1941_v47 = vmul.f32 0.015625, %v6316_v37  ;;  %v9488_v38 = vld [vmem:[#allocation11_spill] sm:$0xff] }
 0x1fb   : > { %v6675_v40 = vpop.xlane.xlu1 %1779  ;;  %v6677_v21 = vpop.xlane.xlu0 %1776 }
 0x1fc   : > { %9459 = vst [vmem:[#allocation154_spill] sm:$0xff] %v6698_v34  ;;  %v2191_v14 = vmul.f32 %v6698_v34, %v6698_v34  ;;  %v2265_v10 = vsel %vm1480_vm2, %v2127_v42, 0.0  ;;  %v6734_v45 = vsub.f32 %v5924_v0, %v1941_v47  ;;  %v1875_v42 = vmul.f32 0.015625, %v6330_v60 }
 0x1fe   : > { %2272 = vadd.xlane.f32.xlu1 %v2271_v39  ;;  %2269 = vadd.xlane.f32.xlu0 %v2268_v31  ;;  %v2126_v39 = vmul.f32 %v6688_v3, %v6688_v3  ;;  %v1940_v31 = vmul.f32 0.015625, %v6318_v12  ;;  %9463 = vst [vmem:[#allocation158_spill] sm:$0xff] %v6734_v45  ;;  %v2133_v12 = vmul.f32 %v6716_v15, %v6716_v15  ;;  %v9485_v3 = vld [vmem:[#allocation92_spill] sm:$0xff] }
 0x1ff   : > { %v6693_v27 = vpop.xlane.xlu1 %1581  ;;  %v6695_v48 = vpop.xlane.xlu0 %1578  ;;  %v2197_v60 = vmul.f32 %v6734_v45, %v6734_v45 }
 0x200   : > { %v6741_v18 = vsub.f32 %v5921_v63, %v1940_v31  ;;  %v2283_v63 = vsel %vm1480_vm2, %v2133_v12, 0.0  ;;  %v9468_v12 = vld [vmem:[#allocation6_spill] sm:$0xff] }
 0x202   : > { %2464 = vadd.xlane.f32.xlu1 %v2463_v56  ;;  %2461 = vadd.xlane.f32.xlu0 %v2460_v23  ;;  %v2262_v56 = vsel %vm1480_vm2, %v2126_v39, 0.0  ;;  %v2457_v23 = vsel %vm1480_vm2, %v2191_v14, 0.0  ;;  %9464 = vst [vmem:[#allocation159_spill] sm:$0xff] %v6741_v18  ;;  %v1874_v39 = vmul.f32 0.015625, %v6332_v36  ;;  %v1939_v14 = vmul.f32 0.015625, %v6344_v1 }
 0x203   : > { %v6711_v53 = vpop.xlane.xlu1 %1773  ;;  %v6713_v52 = vpop.xlane.xlu0 %1770  ;;  %v6757_v36 = vsub.f32 %v5934_v7, %v1875_v42  ;;  %v6773_v7 = vsub.f32 %v9468_v12, %v1938_v55  ;;  %v9470_v42 = vld [vmem:[#allocation79_spill] sm:$0xff]  ;;  %v9472_v55 = vld [vmem:[#allocation8_spill] sm:$0xff] }
 0x204   : > { %v6760_v31 = vsub.f32 %v5931_v5, %v1874_v39  ;;  %v1881_v5 = vmul.f32 0.015625, %v9470_v42  ;;  %v2475_v39 = vsel %vm1480_vm2, %v2197_v60, 0.0  ;;  %v9474_v60 = vld [vmem:[#allocation83_spill] sm:$0xff] }
 0x205   : > { %9465 = vst [vmem:[#allocation160_spill] sm:$0xff] %v6757_v36  ;;  %9469 = vst [vmem:[#allocation6_spill] sm:$0xff] %v6773_v7  ;;  %v1945_v42 = vmul.f32 0.015625, %v9474_v60  ;;  %v9478_v60 = vld [vmem:[#allocation10_spill] sm:$0xff] }
 0x206   : > { %2266 = vadd.xlane.f32.xlu1 %v2265_v10  ;;  %2263 = vadd.xlane.f32.xlu0 %v2262_v56  ;;  %v2132_v10 = vmul.f32 %v6724_v44, %v6724_v44  ;;  %9466 = vst [vmem:[#allocation161_spill] sm:$0xff] %v6760_v31  ;;  %v6788_v12 = vsub.f32 %v9472_v55, %v1881_v5 }
 0x207   : > { %v6729_v59 = vpop.xlane.xlu1 %1599  ;;  %v6731_v37 = vpop.xlane.xlu0 %1596 }
 0x208   : > { %v2280_v56 = vsel %vm1480_vm2, %v2132_v10, 0.0  ;;  %v9471_v10 = vld [vmem:[#allocation80_spill] sm:$0xff]  ;;  %9473 = vst [vmem:[#allocation79_spill] sm:$0xff] %v6788_v12 }
 0x209   : > { %v1880_v45 = vmul.f32 0.015625, %v9471_v10  ;;  %v2194_v10 = vmul.f32 %v6773_v7, %v6773_v7 }
 0x20a   : > { %2458 = vadd.xlane.f32.xlu1 %v2457_v23  ;;  %2455 = vadd.xlane.f32.xlu0 %v2454_v58  ;;  %v2196_v23 = vmul.f32 %v6741_v18, %v6741_v18  ;;  %v6770_v58 = vsub.f32 %v5944_v17, %v1939_v14 }
 0x20b   : > { %v6747_v0 = vpop.xlane.xlu1 %1791  ;;  %v6749_v47 = vpop.xlane.xlu0 %1788 }
 0x20c   : > { %9467 = vst [vmem:[#allocation162_spill] sm:$0xff] %v6770_v58  ;;  %v2472_v18 = vsel %vm1480_vm2, %v2196_v23, 0.0  ;;  %v2195_v23 = vmul.f32 %v6770_v58, %v6770_v58  ;;  %v6806_v58 = vsub.f32 %v9478_v60, %v1945_v42 }
 0x20e   : > { %2284 = vadd.xlane.f32.xlu1 %v2283_v63  ;;  %2281 = vadd.xlane.f32.xlu0 %v2280_v56  ;;  %v2131_v63 = vmul.f32 %v6757_v36, %v6757_v36  ;;  %v2130_v56 = vmul.f32 %v6760_v31, %v6760_v31  ;;  %v9475_v36 = vld [vmem:[#allocation7_spill] sm:$0xff]  ;;  %9479 = vst [vmem:[#allocation8_spill] sm:$0xff] %v6806_v58  ;;  %v2469_v7 = vsel %vm1480_vm2, %v2195_v23, 0.0 }
 0x20f   : > { %v6765_v1 = vpop.xlane.xlu1 %1593  ;;  %v6767_v61 = vpop.xlane.xlu0 %1590  ;;  %v6796_v44 = vsub.f32 %v9475_v36, %v1880_v45  ;;  %v2466_v45 = vsel %vm1480_vm2, %v2194_v10, 0.0  ;;  %v2137_v36 = vmul.f32 %v6788_v12, %v6788_v12  ;;  %v9484_v10 = vld [vmem:[#allocation91_spill] sm:$0xff]  ;;  %v1942_v12 = vmul.f32 0.015625, %v9485_v3 }
 0x210   : > { %v2277_v31 = vsel %vm1480_vm2, %v2131_v63, 0.0  ;;  %v2274_v15 = vsel %vm1480_vm2, %v2130_v56, 0.0  ;;  %v9482_v56 = vld [vmem:[#allocation87_spill] sm:$0xff]  ;;  %v1943_v60 = vmul.f32 0.015625, %v9484_v10 }
 0x211   : > { %9476 = vst [vmem:[#allocation80_spill] sm:$0xff] %v6796_v44  ;;  %v2136_v34 = vmul.f32 %v6796_v44, %v6796_v44 }
 0x212   : > { %2476 = vadd.xlane.f32.xlu1 %v2475_v39  ;;  %2473 = vadd.xlane.f32.xlu0 %v2472_v18  ;;  %v9477_v39 = vld [vmem:[#allocation84_spill] sm:$0xff] }
 0x213   : > { %v6783_v17 = vpop.xlane.xlu1 %1785  ;;  %v6785_v14 = vpop.xlane.xlu0 %1782  ;;  %v1944_v18 = vmul.f32 0.015625, %v9477_v39  ;;  %v9480_v39 = vld [vmem:[#allocation9_spill] sm:$0xff] }
 0x215   : > { %v6813_v63 = vsub.f32 %v9480_v39, %v1944_v18  ;;  %v2295_v18 = vsel %vm1480_vm2, %v2137_v36, 0.0  ;;  %v2201_v39 = vmul.f32 %v6806_v58, %v6806_v58  ;;  %v9490_v36 = vld [vmem:[#allocation14_spill] sm:$0xff]  ;;  %v9492_v58 = vld [vmem:[#allocation13_spill] sm:$0xff] }
 0x216   : > { %2278 = vadd.xlane.f32.xlu1 %v2277_v31  ;;  %2275 = vadd.xlane.f32.xlu0 %v2274_v15  ;;  %v1879_v31 = vmul.f32 0.015625, %v9482_v56  ;;  %v9483_v15 = vld [vmem:[#allocation88_spill] sm:$0xff]  ;;  %v6842_v25 = vsub.f32 %v9490_v36, %v1943_v60 }
 0x217   : > { %v6801_v5 = vpop.xlane.xlu1 %1611  ;;  %v6803_v55 = vpop.xlane.xlu0 %1608  ;;  %9481 = vst [vmem:[#allocation83_spill] sm:$0xff] %v6813_v63  ;;  %v1878_v46 = vmul.f32 0.015625, %v9483_v15  ;;  %v9486_v56 = vld [vmem:[#allocation12_spill] sm:$0xff] }
 0x218   : > { %v6829_v15 = vsub.f32 %v9486_v56, %v1879_v31  ;;  %9491 = vst [vmem:[#allocation10_spill] sm:$0xff] %v6842_v25  ;;  %v6845_v31 = vsub.f32 %v9492_v58, %v1942_v12  ;;  %v9494_v56 = vld [vmem:[#allocation95_spill] sm:$0xff]  ;;  %v9496_v12 = vld [vmem:[#allocation16_spill] sm:$0xff] }
 0x219   : > { %v6832_v44 = vsub.f32 %v9488_v38, %v1878_v46  ;;  %v1885_v38 = vmul.f32 0.015625, %v9494_v56  ;;  %v2487_v46 = vsel %vm1480_vm2, %v2201_v39, 0.0  ;;  %v9498_v39 = vld [vmem:[#allocation99_spill] sm:$0xff] }
 0x21a   : > { %2470 = vadd.xlane.f32.xlu1 %v2469_v7  ;;  %2467 = vadd.xlane.f32.xlu0 %v2466_v45  ;;  %9487 = vst [vmem:[#allocation7_spill] sm:$0xff] %v6829_v15  ;;  %v2292_v7 = vsel %vm1480_vm2, %v2136_v34, 0.0  ;;  %v2200_v45 = vmul.f32 %v6813_v63, %v6813_v63  ;;  %9493 = vst [vmem:[#allocation9_spill] sm:$0xff] %v6845_v31  ;;  %v9495_v34 = vld [vmem:[#allocation96_spill] sm:$0xff]  ;;  %v1949_v56 = vmul.f32 0.015625, %v9498_v39  ;;  %v9502_v39 = vld [vmem:[#allocation18_spill] sm:$0xff] }
 0x21b   : > { %v6819_v42 = vpop.xlane.xlu1 %1803  ;;  %v6821_v23 = vpop.xlane.xlu0 %1800  ;;  %9489 = vst [vmem:[#allocation84_spill] sm:$0xff] %v6832_v44  ;;  %v1884_v28 = vmul.f32 0.015625, %v9495_v34  ;;  %v6860_v36 = vsub.f32 %v9496_v12, %v1885_v38  ;;  %v2198_v34 = vmul.f32 %v6845_v31, %v6845_v31 }
 0x21c   : > { %v2484_v63 = vsel %vm1480_vm2, %v2200_v45, 0.0  ;;  %v2199_v45 = vmul.f32 %v6842_v25, %v6842_v25  ;;  %v6878_v25 = vsub.f32 %v9502_v39, %v1949_v56 }
 0x21d   : > { %9497 = vst [vmem:[#allocation87_spill] sm:$0xff] %v6860_v36 }
 0x21e   : > { %2296 = vadd.xlane.f32.xlu1 %v2295_v18  ;;  %2293 = vadd.xlane.f32.xlu0 %v2292_v7  ;;  %v2135_v18 = vmul.f32 %v6829_v15, %v6829_v15  ;;  %v2134_v7 = vmul.f32 %v6832_v44, %v6832_v44  ;;  %v9499_v15 = vld [vmem:[#allocation15_spill] sm:$0xff]  ;;  %9503 = vst [vmem:[#allocation91_spill] sm:$0xff] %v6878_v25  ;;  %v2481_v31 = vsel %vm1480_vm2, %v2199_v45, 0.0 }
 0x21f   : > { %v6837_v10 = vpop.xlane.xlu1 %1605  ;;  %v6839_v3 = vpop.xlane.xlu0 %1602  ;;  %v6868_v62 = vsub.f32 %v9499_v15, %v1884_v28  ;;  %v2478_v28 = vsel %vm1480_vm2, %v2198_v34, 0.0  ;;  %v2141_v15 = vmul.f32 %v6860_v36, %v6860_v36  ;;  %v9508_v34 = vld [vmem:[#allocation107_spill] sm:$0xff]  ;;  %v1946_v36 = vmul.f32 0.015625, %v9509_v26 }
 0x220   : > { %v2289_v44 = vsel %vm1480_vm2, %v2135_v18, 0.0  ;;  %v2286_v41 = vsel %vm1480_vm2, %v2134_v7, 0.0  ;;  %v9506_v7 = vld [vmem:[#allocation103_spill] sm:$0xff]  ;;  %v1947_v39 = vmul.f32 0.015625, %v9508_v34 }
 0x221   : > { %9500 = vst [vmem:[#allocation88_spill] sm:$0xff] %v6868_v62  ;;  %v2140_v11 = vmul.f32 %v6868_v62, %v6868_v62 }
 0x222   : > { %2488 = vadd.xlane.f32.xlu1 %v2487_v46  ;;  %2485 = vadd.xlane.f32.xlu0 %v2484_v63  ;;  %v9501_v46 = vld [vmem:[#allocation100_spill] sm:$0xff] }
 0x223   : > { %v6855_v60 = vpop.xlane.xlu1 %1797  ;;  %v6857_v58 = vpop.xlane.xlu0 %1794  ;;  %v1948_v63 = vmul.f32 0.015625, %v9501_v46  ;;  %v9504_v46 = vld [vmem:[#allocation17_spill] sm:$0xff] }
 0x225   : > { %v6885_v18 = vsub.f32 %v9504_v46, %v1948_v63  ;;  %v2307_v63 = vsel %vm1480_vm2, %v2141_v15, 0.0  ;;  %v2205_v46 = vmul.f32 %v6878_v25, %v6878_v25  ;;  %v9514_v15 = vld [vmem:[#allocation22_spill] sm:$0xff]  ;;  %v9516_v25 = vld [vmem:[#allocation21_spill] sm:$0xff] }
 0x226   : > { %2290 = vadd.xlane.f32.xlu1 %v2289_v44  ;;  %2287 = vadd.xlane.f32.xlu0 %v2286_v41  ;;  %v1883_v44 = vmul.f32 0.015625, %v9506_v7  ;;  %v9507_v41 = vld [vmem:[#allocation104_spill] sm:$0xff]  ;;  %v6914_v51 = vsub.f32 %v9514_v15, %v1947_v39 }
 0x227   : > { %v6873_v38 = vpop.xlane.xlu1 %1623  ;;  %v6875_v12 = vpop.xlane.xlu0 %1620  ;;  %9505 = vst [vmem:[#allocation92_spill] sm:$0xff] %v6885_v18  ;;  %v1882_v9 = vmul.f32 0.015625, %v9507_v41  ;;  %v9510_v7 = vld [vmem:[#allocation20_spill] sm:$0xff] }
 0x228   : > { %v6901_v41 = vsub.f32 %v9510_v7, %v1883_v44  ;;  %9515 = vst [vmem:[#allocation14_spill] sm:$0xff] %v6914_v51  ;;  %v6917_v44 = vsub.f32 %v9516_v25, %v1946_v36  ;;  %v9518_v7 = vld [vmem:[#allocation111_spill] sm:$0xff]  ;;  %v9520_v36 = vld [vmem:[#allocation24_spill] sm:$0xff] }
 0x229   : > { %v6904_v62 = vsub.f32 %v9512_v33, %v1882_v9  ;;  %v1889_v33 = vmul.f32 0.015625, %v9518_v7  ;;  %v2499_v9 = vsel %vm1480_vm2, %v2205_v46, 0.0  ;;  %v9522_v46 = vld [vmem:[#allocation115_spill] sm:$0xff] }
 0x22a   : > { %2482 = vadd.xlane.f32.xlu1 %v2481_v31  ;;  %2479 = vadd.xlane.f32.xlu0 %v2478_v28  ;;  %9511 = vst [vmem:[#allocation12_spill] sm:$0xff] %v6901_v41  ;;  %v2304_v31 = vsel %vm1480_vm2, %v2140_v11, 0.0  ;;  %v2204_v28 = vmul.f32 %v6885_v18, %v6885_v18  ;;  %9517 = vst [vmem:[#allocation13_spill] sm:$0xff] %v6917_v44  ;;  %v9519_v11 = vld [vmem:[#allocation112_spill] sm:$0xff]  ;;  %v1953_v7 = vmul.f32 0.015625, %v9522_v46  ;;  %v9527_v46 = vld [vmem:[#allocation26_spill] sm:$0xff] }
 0x22b   : > { %v6891_v56 = vpop.xlane.xlu1 %1815  ;;  %v6893_v45 = vpop.xlane.xlu0 %1812  ;;  %9513 = vst [vmem:[#allocation11_spill] sm:$0xff] %v6904_v62  ;;  %v1888_v22 = vmul.f32 0.015625, %v9519_v11  ;;  %v6932_v15 = vsub.f32 %v9520_v36, %v1889_v33  ;;  %v2202_v11 = vmul.f32 %v6917_v44, %v6917_v44 }
 0x22c   : > { %v2496_v18 = vsel %vm1480_vm2, %v2204_v28, 0.0  ;;  %v2203_v28 = vmul.f32 %v6914_v51, %v6914_v51  ;;  %v6950_v51 = vsub.f32 %v9527_v46, %v1953_v7 }
 0x22d   : > { %9521 = vst [vmem:[#allocation95_spill] sm:$0xff] %v6932_v15 }
 0x22e   : > { %2308 = vadd.xlane.f32.xlu1 %v2307_v63  ;;  %2305 = vadd.xlane.f32.xlu0 %v2304_v31  ;;  %v2139_v63 = vmul.f32 %v6901_v41, %v6901_v41  ;;  %v2138_v31 = vmul.f32 %v6904_v62, %v6904_v62  ;;  %v9523_v41 = vld [vmem:[#allocation23_spill] sm:$0xff]  ;;  %9528 = vst [vmem:[#allocation99_spill] sm:$0xff] %v6950_v51  ;;  %v2493_v44 = vsel %vm1480_vm2, %v2203_v28, 0.0 }
 0x22f   : > { %v6909_v34 = vpop.xlane.xlu1 %1617  ;;  %v6911_v26 = vpop.xlane.xlu0 %1614  ;;  %v6940_v54 = vsub.f32 %v9523_v41, %v1888_v22  ;;  %v2490_v22 = vsel %vm1480_vm2, %v2202_v11, 0.0  ;;  %v2145_v41 = vmul.f32 %v6932_v15, %v6932_v15  ;;  %v9535_v11 = vld [vmem:[#allocation123_spill] sm:$0xff]  ;;  %v1950_v15 = vmul.f32 0.015625, %v9536_v16 }
 0x230   : > { %v2301_v62 = vsel %vm1480_vm2, %v2139_v63, 0.0  ;;  %v2298_v6 = vsel %vm1480_vm2, %v2138_v31, 0.0  ;;  %v9531_v31 = vld [vmem:[#allocation119_spill] sm:$0xff]  ;;  %v1951_v46 = vmul.f32 0.015625, %v9535_v11 }
 0x231   : > { %9524 = vst [vmem:[#allocation96_spill] sm:$0xff] %v6940_v54  ;;  %v2144_v4 = vmul.f32 %v6940_v54, %v6940_v54 }
 0x232   : > { %2500 = vadd.xlane.f32.xlu1 %v2499_v9  ;;  %2497 = vadd.xlane.f32.xlu0 %v2496_v18  ;;  %v9525_v9 = vld [vmem:[#allocation116_spill] sm:$0xff] }
 0x233   : > { %v6927_v39 = vpop.xlane.xlu1 %1809  ;;  %v6929_v25 = vpop.xlane.xlu0 %1806  ;;  %v1952_v18 = vmul.f32 0.015625, %v9525_v9  ;;  %v9529_v9 = vld [vmem:[#allocation25_spill] sm:$0xff] }
 0x235   : > { %v6957_v63 = vsub.f32 %v9529_v9, %v1952_v18  ;;  %v2319_v18 = vsel %vm1480_vm2, %v2145_v41, 0.0  ;;  %v2209_v9 = vmul.f32 %v6950_v51, %v6950_v51  ;;  %v9542_v41 = vld [vmem:[#allocation30_spill] sm:$0xff]  ;;  %v9544_v51 = vld [vmem:[#allocation29_spill] sm:$0xff] }
 0x236   : > { %2302 = vadd.xlane.f32.xlu1 %v2301_v62  ;;  %2299 = vadd.xlane.f32.xlu0 %v2298_v6  ;;  %v1887_v62 = vmul.f32 0.015625, %v9531_v31  ;;  %v9532_v6 = vld [vmem:[#allocation120_spill] sm:$0xff] }
 0x237   : > { %v6945_v33 = vpop.xlane.xlu1 %1635  ;;  %v6947_v36 = vpop.xlane.xlu0 %1632  ;;  %9530 = vst [vmem:[#allocation15_spill] sm:$0xff] %v6957_v63  ;;  %v1886_v49 = vmul.f32 0.015625, %v9532_v6  ;;  %v9537_v31 = vld [vmem:[#allocation28_spill] sm:$0xff] }
 0x238   : > { %9526 = vst [vmem:[#allocation16_spill] sm:$0xff] %v6947_v36  ;;  %v6973_v6 = vsub.f32 %v9537_v31, %v1887_v62  ;;  %v9539_v36 = vld [vmem:[#allocation27_spill] sm:$0xff]  ;;  %v6989_v62 = vsub.f32 %v9544_v51, %v1950_v15  ;;  %v9549_v15 = vld [vmem:[#allocation32_spill] sm:$0xff] }
 0x239   : > { %v6976_v54 = vsub.f32 %v9539_v36, %v1886_v49  ;;  %v9546_v31 = vld [vmem:[#allocation127_spill] sm:$0xff]  ;;  %v2511_v36 = vsel %vm1480_vm2, %v2209_v9, 0.0 }
 0x23a   : > { %2494 = vadd.xlane.f32.xlu1 %v2493_v44  ;;  %2491 = vadd.xlane.f32.xlu0 %v2490_v22  ;;  %9538 = vst [vmem:[#allocation17_spill] sm:$0xff] %v6973_v6  ;;  %v2316_v44 = vsel %vm1480_vm2, %v2144_v4, 0.0  ;;  %v2208_v22 = vmul.f32 %v6957_v63, %v6957_v63  ;;  %9545 = vst [vmem:[#allocation108_spill] sm:$0xff] %v6989_v62  ;;  %v1893_v49 = vmul.f32 0.015625, %v9546_v31  ;;  %v9547_v4 = vld [vmem:[#allocation128_spill] sm:$0xff]  ;;  %v9551_v9 = vld [vmem:[#allocation131_spill] sm:$0xff] }
 0x23b   : > { %v6963_v7 = vpop.xlane.xlu1 %1827  ;;  %v6965_v28 = vpop.xlane.xlu0 %1824  ;;  %9540 = vst [vmem:[#allocation103_spill] sm:$0xff] %v6976_v54  ;;  %v1957_v31 = vmul.f32 0.015625, %v9551_v9  ;;  %v9556_v9 = vld [vmem:[#allocation34_spill] sm:$0xff] }
 0x23c   : > { %9533 = vst [vmem:[#allocation100_spill] sm:$0xff] %v6963_v7  ;;  %9534 = vst [vmem:[#allocation18_spill] sm:$0xff] %v6965_v28  ;;  %v6986_v28 = vsub.f32 %v9542_v41, %v1951_v46  ;;  %v1892_v7 = vmul.f32 0.015625, %v9547_v4  ;;  %v2508_v63 = vsel %vm1480_vm2, %v2208_v22, 0.0  ;;  %v7004_v41 = vsub.f32 %v9549_v15, %v1893_v49 }
 0x23d   : > { %v2206_v4 = vmul.f32 %v6989_v62, %v6989_v62 }
 0x23e   : > { %2320 = vadd.xlane.f32.xlu1 %v2319_v18  ;;  %2317 = vadd.xlane.f32.xlu0 %v2316_v44  ;;  %9543 = vst [vmem:[#allocation107_spill] sm:$0xff] %v6986_v28  ;;  %v2143_v18 = vmul.f32 %v6973_v6, %v6973_v6  ;;  %v2142_v44 = vmul.f32 %v6976_v54, %v6976_v54  ;;  %9550 = vst [vmem:[#allocation19_spill] sm:$0xff] %v7004_v41  ;;  %v9552_v6 = vld [vmem:[#allocation31_spill] sm:$0xff] }
 0x23f   : > { %v6981_v11 = vpop.xlane.xlu1 %1629  ;;  %v6983_v16 = vpop.xlane.xlu0 %1626  ;;  %v2207_v22 = vmul.f32 %v6986_v28, %v6986_v28  ;;  %v7022_v28 = vsub.f32 %v9556_v9, %v1957_v31  ;;  %v1954_v9 = vmul.f32 0.015625, %v6565_v57 }
 0x240   : > { %9541 = vst [vmem:[#allocation104_spill] sm:$0xff] %v6983_v16  ;;  %v7012_v16 = vsub.f32 %v9552_v6, %v1892_v7  ;;  %v2313_v54 = vsel %vm1480_vm2, %v2143_v18, 0.0  ;;  %v2502_v7 = vsel %vm1480_vm2, %v2206_v4, 0.0  ;;  %v2149_v6 = vmul.f32 %v7004_v41, %v7004_v41  ;;  %v9564_v41 = vld [vmem:[#allocation35_spill] sm:$0xff] }
 0x241   : > { %9557 = vst [vmem:[#allocation111_spill] sm:$0xff] %v7022_v28  ;;  %v2505_v62 = vsel %vm1480_vm2, %v2207_v22, 0.0  ;;  %v1955_v4 = vmul.f32 0.015625, %v6563_v19 }
 0x242   : > { %2512 = vadd.xlane.f32.xlu1 %v2511_v36  ;;  %2509 = vadd.xlane.f32.xlu0 %v2508_v63  ;;  %9553 = vst [vmem:[#allocation22_spill] sm:$0xff] %v7012_v16  ;;  %v9554_v36 = vld [vmem:[#allocation132_spill] sm:$0xff] }
 0x243   : > { %v6999_v46 = vpop.xlane.xlu1 %1821  ;;  %v7001_v51 = vpop.xlane.xlu0 %1818  ;;  %v1956_v63 = vmul.f32 0.015625, %v9554_v36  ;;  %v9558_v36 = vld [vmem:[#allocation33_spill] sm:$0xff] }
 0x244   : > { %9548 = vst [vmem:[#allocation20_spill] sm:$0xff] %v7001_v51  ;;  %v2310_v51 = vsel %vm1480_vm2, %v2142_v44, 0.0  ;;  %v9560_v44 = vld [vmem:[#allocation135_spill] sm:$0xff] }
 0x245   : > { %v7029_v18 = vsub.f32 %v9558_v36, %v1956_v63  ;;  %v2331_v63 = vsel %vm1480_vm2, %v2149_v6, 0.0  ;;  %v9562_v36 = vld [vmem:[#allocation36_spill] sm:$0xff]  ;;  %v9566_v6 = vld [vmem:[#allocation38_spill] sm:$0xff] }
 0x246   : > { %2314 = vadd.xlane.f32.xlu1 %v2313_v54  ;;  %2311 = vadd.xlane.f32.xlu0 %v2310_v51  ;;  %v1891_v54 = vmul.f32 0.015625, %v6549_v32  ;;  %v1890_v51 = vmul.f32 0.015625, %v9560_v44  ;;  %v2213_v32 = vmul.f32 %v7022_v28, %v7022_v28  ;;  %v9568_v28 = vld [vmem:[#allocation37_spill] sm:$0xff] }
 0x247   : > { %v7017_v49 = vpop.xlane.xlu1 %1647  ;;  %v7019_v15 = vpop.xlane.xlu0 %1644  ;;  %9559 = vst [vmem:[#allocation112_spill] sm:$0xff] %v7029_v18 }
 0x248   : > { %9555 = vst [vmem:[#allocation21_spill] sm:$0xff] %v7019_v15  ;;  %v2148_v15 = vmul.f32 %v7012_v16, %v7012_v16  ;;  %v7045_v44 = vsub.f32 %v9562_v36, %v1891_v54  ;;  %v7048_v16 = vsub.f32 %v9564_v41, %v1890_v51  ;;  %v7061_v54 = vsub.f32 %v9568_v28, %v1954_v9  ;;  %v9570_v9 = vld [vmem:[#allocation40_spill] sm:$0xff] }
 0x249   : > { %v1897_v41 = vmul.f32 0.015625, %v6583_v50  ;;  %v2523_v51 = vsel %vm1480_vm2, %v2213_v32, 0.0  ;;  %v1961_v32 = vmul.f32 0.015625, %v6603_v24 }
 0x24a   : > { %2506 = vadd.xlane.f32.xlu1 %v2505_v62  ;;  %2503 = vadd.xlane.f32.xlu0 %v2502_v7  ;;  %9563 = vst [vmem:[#allocation115_spill] sm:$0xff] %v7045_v44  ;;  %9565 = vst [vmem:[#allocation23_spill] sm:$0xff] %v7048_v16  ;;  %v2328_v62 = vsel %vm1480_vm2, %v2148_v15, 0.0  ;;  %v2212_v7 = vmul.f32 %v7029_v18, %v7029_v18  ;;  %v1896_v15 = vmul.f32 0.015625, %v6585_v43 }
 0x24b   : > { %v7035_v31 = vpop.xlane.xlu1 %1839  ;;  %v7037_v22 = vpop.xlane.xlu0 %1836  ;;  %9569 = vst [vmem:[#allocation26_spill] sm:$0xff] %v7061_v54  ;;  %v7076_v50 = vsub.f32 %v9570_v9, %v1897_v41  ;;  %v9574_v9 = vld [vmem:[#allocation42_spill] sm:$0xff] }
 0x24c   : > { %9561 = vst [vmem:[#allocation24_spill] sm:$0xff] %v7037_v22  ;;  %v7058_v22 = vsub.f32 %v9566_v6, %v1955_v4  ;;  %v2520_v36 = vsel %vm1480_vm2, %v2212_v7, 0.0  ;;  %v2210_v7 = vmul.f32 %v7061_v54, %v7061_v54  ;;  %v9572_v6 = vld [vmem:[#allocation39_spill] sm:$0xff] }
 0x24d   : > { %9571 = vst [vmem:[#allocation25_spill] sm:$0xff] %v7076_v50  ;;  %v7084_v18 = vsub.f32 %v9572_v6, %v1896_v15  ;;  %v9576_v6 = vld [vmem:[#allocation41_spill] sm:$0xff] }
 0x24e   : > { %2332 = vadd.xlane.f32.xlu1 %v2331_v63  ;;  %2329 = vadd.xlane.f32.xlu0 %v2328_v62  ;;  %9567 = vst [vmem:[#allocation116_spill] sm:$0xff] %v7058_v22  ;;  %v2147_v63 = vmul.f32 %v7045_v44, %v7045_v44  ;;  %v2146_v62 = vmul.f32 %v7048_v16, %v7048_v16  ;;  %v2514_v15 = vsel %vm1480_vm2, %v2210_v7, 0.0  ;;  %v1959_v7 = vmul.f32 0.015625, %v6639_v20 }
 0x24f   : > { %v7053_v19 = vpop.xlane.xlu1 %1641  ;;  %v7055_v57 = vpop.xlane.xlu0 %1638  ;;  %v2211_v43 = vmul.f32 %v7058_v22, %v7058_v22  ;;  %9573 = vst [vmem:[#allocation119_spill] sm:$0xff] %v7084_v18  ;;  %v7094_v22 = vsub.f32 %v9574_v9, %v1961_v32  ;;  %v1958_v9 = vmul.f32 0.015625, %v6641_v29 }
 0x250   : > { %v2322_v16 = vsel %vm1480_vm2, %v2146_v62, 0.0  ;;  %v1895_v62 = vmul.f32 0.015625, %v6621_v13 }
 0x251   : > { %9575 = vst [vmem:[#allocation120_spill] sm:$0xff] %v7094_v22  ;;  %v2517_v54 = vsel %vm1480_vm2, %v2211_v43, 0.0  ;;  %v2217_v13 = vmul.f32 %v7094_v22, %v7094_v22  ;;  %v9584_v22 = vld [vmem:[#allocation45_spill] sm:$0xff] }
 0x252   : > { %2524 = vadd.xlane.f32.xlu1 %v2523_v51  ;;  %2521 = vadd.xlane.f32.xlu0 %v2520_v36  ;;  %v1960_v51 = vmul.f32 0.015625, %v6605_v8  ;;  %v2325_v36 = vsel %vm1480_vm2, %v2147_v63, 0.0  ;;  %v2153_v8 = vmul.f32 %v7076_v50, %v7076_v50  ;;  %v9580_v50 = vld [vmem:[#allocation43_spill] sm:$0xff] }
 0x253   : > { %v7071_v4 = vpop.xlane.xlu1 %1833  ;;  %v7073_v28 = vpop.xlane.xlu0 %1830 }
 0x254   : > { %v7101_v63 = vsub.f32 %v9576_v6, %v1960_v51  ;;  %v2343_v51 = vsel %vm1480_vm2, %v2153_v8, 0.0  ;;  %v9578_v6 = vld [vmem:[#allocation44_spill] sm:$0xff]  ;;  %v9582_v8 = vld [vmem:[#allocation46_spill] sm:$0xff] }
 0x255   : > { %v7130_v44 = vsub.f32 %v9582_v8, %v1959_v7  ;;  %v9588_v8 = vld [vmem:[#allocation47_spill] sm:$0xff] }
 0x256   : > { %2326 = vadd.xlane.f32.xlu1 %v2325_v36  ;;  %2323 = vadd.xlane.f32.xlu0 %v2322_v16  ;;  %9577 = vst [vmem:[#allocation123_spill] sm:$0xff] %v7101_v63  ;;  %v1894_v16 = vmul.f32 0.015625, %v6623_v2  ;;  %v2152_v36 = vmul.f32 %v7084_v18, %v7084_v18  ;;  %v7117_v2 = vsub.f32 %v9578_v6, %v1895_v62 }
 0x257   : > { %v7089_v41 = vpop.xlane.xlu1 %1659  ;;  %v7091_v24 = vpop.xlane.xlu0 %1656  ;;  %9583 = vst [vmem:[#allocation27_spill] sm:$0xff] %v7130_v44  ;;  %v7133_v62 = vsub.f32 %v9584_v22, %v1958_v9  ;;  %v9586_v9 = vld [vmem:[#allocation48_spill] sm:$0xff] }
 0x258   : > { %9579 = vst [vmem:[#allocation124_spill] sm:$0xff] %v7117_v2  ;;  %v7120_v18 = vsub.f32 %v9580_v50, %v1894_v16  ;;  %v1901_v50 = vmul.f32 0.015625, %v6657_v35  ;;  %v2535_v16 = vsel %vm1480_vm2, %v2217_v13, 0.0  ;;  %v1965_v13 = vmul.f32 0.015625, %v6675_v40 }
 0x259   : > { %9585 = vst [vmem:[#allocation30_spill] sm:$0xff] %v7133_v62 }
 0x25a   : > { %2518 = vadd.xlane.f32.xlu1 %v2517_v54  ;;  %2515 = vadd.xlane.f32.xlu0 %v2514_v15  ;;  %9581 = vst [vmem:[#allocation28_spill] sm:$0xff] %v7120_v18  ;;  %v2340_v54 = vsel %vm1480_vm2, %v2152_v36, 0.0  ;;  %v2216_v15 = vmul.f32 %v7101_v63, %v7101_v63  ;;  %v1900_v36 = vmul.f32 0.015625, %v6659_v30  ;;  %v7148_v35 = vsub.f32 %v9586_v9, %v1901_v50  ;;  %v9590_v9 = vld [vmem:[#allocation50_spill] sm:$0xff] }
 0x25b   : > { %v7107_v32 = vpop.xlane.xlu1 %1851  ;;  %v7109_v43 = vpop.xlane.xlu0 %1848  ;;  %v2215_v30 = vmul.f32 %v7130_v44, %v7130_v44  ;;  %v7166_v44 = vsub.f32 %v9590_v9, %v1965_v13  ;;  %v1962_v9 = vmul.f32 0.015625, %v6713_v52 }
 0x25c   : > { %v2532_v6 = vsel %vm1480_vm2, %v2216_v15, 0.0  ;;  %9587 = vst [vmem:[#allocation29_spill] sm:$0xff] %v7148_v35  ;;  %v2214_v15 = vmul.f32 %v7133_v62, %v7133_v62  ;;  %v7156_v63 = vsub.f32 %v9588_v8, %v1900_v36  ;;  %v9592_v8 = vld [vmem:[#allocation49_spill] sm:$0xff] }
 0x25d   : > { %9591 = vst [vmem:[#allocation128_spill] sm:$0xff] %v7166_v44  ;;  %v2529_v62 = vsel %vm1480_vm2, %v2215_v30, 0.0 }
 0x25e   : > { %2344 = vadd.xlane.f32.xlu1 %v2343_v51  ;;  %2341 = vadd.xlane.f32.xlu0 %v2340_v54  ;;  %v2151_v51 = vmul.f32 %v7117_v2, %v7117_v2  ;;  %v2150_v54 = vmul.f32 %v7120_v18, %v7120_v18  ;;  %9589 = vst [vmem:[#allocation127_spill] sm:$0xff] %v7156_v63  ;;  %v2526_v36 = vsel %vm1480_vm2, %v2214_v15, 0.0  ;;  %v1963_v15 = vmul.f32 0.015625, %v6711_v53 }
 0x25f   : > { %v7125_v20 = vpop.xlane.xlu1 %1653  ;;  %v7127_v29 = vpop.xlane.xlu0 %1650 }
 0x260   : > { %v2334_v18 = vsel %vm1480_vm2, %v2150_v54, 0.0  ;;  %v1899_v54 = vmul.f32 0.015625, %v6693_v27  ;;  %v2221_v27 = vmul.f32 %v7166_v44, %v7166_v44  ;;  %v9600_v44 = vld [vmem:[#allocation53_spill] sm:$0xff] }
 0x262   : > { %2536 = vadd.xlane.f32.xlu1 %v2535_v16  ;;  %2533 = vadd.xlane.f32.xlu0 %v2532_v6  ;;  %v1964_v16 = vmul.f32 0.015625, %v6677_v21  ;;  %v2337_v6 = vsel %vm1480_vm2, %v2151_v51, 0.0  ;;  %v2157_v21 = vmul.f32 %v7148_v35, %v7148_v35  ;;  %v9596_v35 = vld [vmem:[#allocation51_spill] sm:$0xff] }
 0x263   : > { %v7143_v7 = vpop.xlane.xlu1 %1845  ;;  %v7145_v22 = vpop.xlane.xlu0 %1842 }
 0x264   : > { %v7173_v51 = vsub.f32 %v9592_v8, %v1964_v16  ;;  %v2355_v16 = vsel %vm1480_vm2, %v2157_v21, 0.0  ;;  %v9594_v8 = vld [vmem:[#allocation52_spill] sm:$0xff]  ;;  %v9598_v21 = vld [vmem:[#allocation54_spill] sm:$0xff] }
 0x265   : > { %v7202_v2 = vsub.f32 %v9598_v21, %v1963_v15  ;;  %v9604_v21 = vld [vmem:[#allocation55_spill] sm:$0xff] }
 0x266   : > { %2338 = vadd.xlane.f32.xlu1 %v2337_v6  ;;  %2335 = vadd.xlane.f32.xlu0 %v2334_v18  ;;  %9593 = vst [vmem:[#allocation32_spill] sm:$0xff] %v7173_v51  ;;  %v1898_v18 = vmul.f32 0.015625, %v6695_v48  ;;  %v2156_v6 = vmul.f32 %v7156_v63, %v7156_v63  ;;  %v7189_v48 = vsub.f32 %v9594_v8, %v1899_v54 }
 0x267   : > { %v7161_v50 = vpop.xlane.xlu1 %1671  ;;  %v7163_v40 = vpop.xlane.xlu0 %1668  ;;  %9599 = vst [vmem:[#allocation132_spill] sm:$0xff] %v7202_v2  ;;  %v7205_v54 = vsub.f32 %v9600_v44, %v1962_v9  ;;  %v9602_v9 = vld [vmem:[#allocation56_spill] sm:$0xff] }
 0x268   : > { %9595 = vst [vmem:[#allocation131_spill] sm:$0xff] %v7189_v48  ;;  %v7192_v63 = vsub.f32 %v9596_v35, %v1898_v18  ;;  %v1905_v35 = vmul.f32 0.015625, %v6729_v59  ;;  %v2547_v18 = vsel %vm1480_vm2, %v2221_v27, 0.0  ;;  %v1969_v27 = vmul.f32 0.015625, %v6747_v0 }
 0x269   : > { %9601 = vst [vmem:[#allocation34_spill] sm:$0xff] %v7205_v54 }
 0x26a   : > { %2530 = vadd.xlane.f32.xlu1 %v2529_v62  ;;  %2527 = vadd.xlane.f32.xlu0 %v2526_v36  ;;  %9597 = vst [vmem:[#allocation31_spill] sm:$0xff] %v7192_v63  ;;  %v2352_v62 = vsel %vm1480_vm2, %v2156_v6, 0.0  ;;  %v2220_v36 = vmul.f32 %v7173_v51, %v7173_v51  ;;  %v1904_v6 = vmul.f32 0.015625, %v6731_v37  ;;  %v7220_v59 = vsub.f32 %v9602_v9, %v1905_v35  ;;  %v9606_v9 = vld [vmem:[#allocation58_spill] sm:$0xff] }
 0x26b   : > { %v7179_v13 = vpop.xlane.xlu1 %1863  ;;  %v7181_v30 = vpop.xlane.xlu0 %1860  ;;  %v2219_v37 = vmul.f32 %v7202_v2, %v7202_v2  ;;  %v7238_v2 = vsub.f32 %v9606_v9, %v1969_v27  ;;  %v1966_v9 = vmul.f32 0.015625, %v6785_v14 }
 0x26c   : > { %v2544_v8 = vsel %vm1480_vm2, %v2220_v36, 0.0  ;;  %9603 = vst [vmem:[#allocation33_spill] sm:$0xff] %v7220_v59  ;;  %v2218_v36 = vmul.f32 %v7205_v54, %v7205_v54  ;;  %v7228_v51 = vsub.f32 %v9604_v21, %v1904_v6  ;;  %v9608_v21 = vld [vmem:[#allocation57_spill] sm:$0xff] }
 0x26d   : > { %9607 = vst [vmem:[#allocation36_spill] sm:$0xff] %v7238_v2  ;;  %v2541_v54 = vsel %vm1480_vm2, %v2219_v37, 0.0 }
 0x26e   : > { %2356 = vadd.xlane.f32.xlu1 %v2355_v16  ;;  %2353 = vadd.xlane.f32.xlu0 %v2352_v62  ;;  %v2155_v16 = vmul.f32 %v7189_v48, %v7189_v48  ;;  %v2154_v62 = vmul.f32 %v7192_v63, %v7192_v63  ;;  %9605 = vst [vmem:[#allocation135_spill] sm:$0xff] %v7228_v51  ;;  %v2538_v6 = vsel %vm1480_vm2, %v2218_v36, 0.0  ;;  %v1967_v36 = vmul.f32 0.015625, %v6783_v17 }
 0x26f   : > { %v7197_v53 = vpop.xlane.xlu1 %1665  ;;  %v7199_v52 = vpop.xlane.xlu0 %1662 }
 0x270   : > { %v2346_v63 = vsel %vm1480_vm2, %v2154_v62, 0.0  ;;  %v1903_v62 = vmul.f32 0.015625, %v6765_v1  ;;  %v2225_v1 = vmul.f32 %v7238_v2, %v7238_v2  ;;  %v9616_v2 = vld [vmem:[#allocation61_spill] sm:$0xff] }
 0x272   : > { %2548 = vadd.xlane.f32.xlu1 %v2547_v18  ;;  %2545 = vadd.xlane.f32.xlu0 %v2544_v8  ;;  %v1968_v18 = vmul.f32 0.015625, %v6749_v47  ;;  %v2349_v8 = vsel %vm1480_vm2, %v2155_v16, 0.0  ;;  %v2161_v47 = vmul.f32 %v7220_v59, %v7220_v59  ;;  %v9612_v59 = vld [vmem:[#allocation59_spill] sm:$0xff] }
 0x273   : > { %v7215_v15 = vpop.xlane.xlu1 %1857  ;;  %v7217_v44 = vpop.xlane.xlu0 %1854 }
 0x274   : > { %v7245_v16 = vsub.f32 %v9608_v21, %v1968_v18  ;;  %v2367_v18 = vsel %vm1480_vm2, %v2161_v47, 0.0  ;;  %v9610_v21 = vld [vmem:[#allocation60_spill] sm:$0xff]  ;;  %v9614_v47 = vld [vmem:[#allocation62_spill] sm:$0xff] }
 0x275   : > { %v7274_v48 = vsub.f32 %v9614_v47, %v1967_v36  ;;  %v9620_v47 = vld [vmem:[#allocation63_spill] sm:$0xff] }
 0x276   : > { %2350 = vadd.xlane.f32.xlu1 %v2349_v8  ;;  %2347 = vadd.xlane.f32.xlu0 %v2346_v63  ;;  %9609 = vst [vmem:[#allocation35_spill] sm:$0xff] %v7245_v16  ;;  %v1902_v63 = vmul.f32 0.015625, %v6767_v61  ;;  %v2160_v8 = vmul.f32 %v7228_v51, %v7228_v51  ;;  %v7261_v61 = vsub.f32 %v9610_v21, %v1903_v62 }
 0x277   : > { %v7233_v35 = vpop.xlane.xlu1 %2260  ;;  %v7235_v0 = vpop.xlane.xlu0 %2257  ;;  %9615 = vst [vmem:[#allocation40_spill] sm:$0xff] %v7274_v48  ;;  %v7277_v62 = vsub.f32 %v9616_v2, %v1966_v9  ;;  %v9618_v9 = vld [vmem:[#allocation64_spill] sm:$0xff] }
 0x278   : > { %9611 = vst [vmem:[#allocation38_spill] sm:$0xff] %v7261_v61  ;;  %v7264_v51 = vsub.f32 %v9612_v59, %v1902_v63  ;;  %v1909_v59 = vmul.f32 0.015625, %v6801_v5  ;;  %v2559_v63 = vsel %vm1480_vm2, %v2225_v1, 0.0  ;;  %v1973_v1 = vmul.f32 0.015625, %v6819_v42 }
 0x279   : > { %9617 = vst [vmem:[#allocation39_spill] sm:$0xff] %v7277_v62 }
 0x27a   : > { %2542 = vadd.xlane.f32.xlu1 %v2541_v54  ;;  %2539 = vadd.xlane.f32.xlu0 %v2538_v6  ;;  %9613 = vst [vmem:[#allocation37_spill] sm:$0xff] %v7264_v51  ;;  %v2364_v54 = vsel %vm1480_vm2, %v2160_v8, 0.0  ;;  %v2224_v6 = vmul.f32 %v7245_v16, %v7245_v16  ;;  %v1908_v8 = vmul.f32 0.015625, %v6803_v55  ;;  %v7292_v5 = vsub.f32 %v9618_v9, %v1909_v59  ;;  %v9622_v9 = vld [vmem:[#allocation66_spill] sm:$0xff] }
 0x27b   : > { %v7251_v27 = vpop.xlane.xlu1 %2452  ;;  %v7253_v37 = vpop.xlane.xlu0 %2449  ;;  %v2223_v55 = vmul.f32 %v7274_v48, %v7274_v48  ;;  %v7310_v48 = vsub.f32 %v9622_v9, %v1973_v1  ;;  %v1970_v9 = vmul.f32 0.015625, %v6857_v58 }
 0x27c   : > { %v2556_v21 = vsel %vm1480_vm2, %v2224_v6, 0.0  ;;  %9619 = vst [vmem:[#allocation42_spill] sm:$0xff] %v7292_v5  ;;  %v2222_v6 = vmul.f32 %v7277_v62, %v7277_v62  ;;  %v7300_v16 = vsub.f32 %v9620_v47, %v1908_v8  ;;  %v9624_v47 = vld [vmem:[#allocation65_spill] sm:$0xff] }
 0x27d   : > { %9623 = vst [vmem:[#allocation44_spill] sm:$0xff] %v7310_v48  ;;  %v2553_v62 = vsel %vm1480_vm2, %v2223_v55, 0.0 }
 0x27e   : > { %2368 = vadd.xlane.f32.xlu1 %v2367_v18  ;;  %2365 = vadd.xlane.f32.xlu0 %v2364_v54  ;;  %v2159_v18 = vmul.f32 %v7261_v61, %v7261_v61  ;;  %v2158_v54 = vmul.f32 %v7264_v51, %v7264_v51  ;;  %9621 = vst [vmem:[#allocation41_spill] sm:$0xff] %v7300_v16  ;;  %v2550_v8 = vsel %vm1480_vm2, %v2222_v6, 0.0  ;;  %v1971_v6 = vmul.f32 0.015625, %v6855_v60 }
 0x27f   : > { %v7269_v17 = vpop.xlane.xlu1 %2254  ;;  %v7271_v14 = vpop.xlane.xlu0 %2251 }
 0x280   : > { %v2358_v51 = vsel %vm1480_vm2, %v2158_v54, 0.0  ;;  %v1907_v54 = vmul.f32 0.015625, %v6837_v10  ;;  %v2229_v10 = vmul.f32 %v7310_v48, %v7310_v48  ;;  %v9632_v48 = vld [vmem:[#allocation69_spill] sm:$0xff] }
 0x282   : > { %2560 = vadd.xlane.f32.xlu1 %v2559_v63  ;;  %2557 = vadd.xlane.f32.xlu0 %v2556_v21  ;;  %v1972_v63 = vmul.f32 0.015625, %v6821_v23  ;;  %v2361_v21 = vsel %vm1480_vm2, %v2159_v18, 0.0  ;;  %v2165_v23 = vmul.f32 %v7292_v5, %v7292_v5  ;;  %v9628_v5 = vld [vmem:[#allocation67_spill] sm:$0xff] }
 0x283   : > { %v7287_v36 = vpop.xlane.xlu1 %2446  ;;  %v7289_v2 = vpop.xlane.xlu0 %2443 }
 0x284   : > { %v7317_v18 = vsub.f32 %v9624_v47, %v1972_v63  ;;  %v2379_v63 = vsel %vm1480_vm2, %v2165_v23, 0.0  ;;  %v9626_v47 = vld [vmem:[#allocation68_spill] sm:$0xff]  ;;  %v9630_v23 = vld [vmem:[#allocation70_spill] sm:$0xff] }
 0x285   : > { %v7346_v61 = vsub.f32 %v9630_v23, %v1971_v6  ;;  %v9636_v23 = vld [vmem:[#allocation71_spill] sm:$0xff] }
 0x286   : > { %2362 = vadd.xlane.f32.xlu1 %v2361_v21  ;;  %2359 = vadd.xlane.f32.xlu0 %v2358_v51  ;;  %9625 = vst [vmem:[#allocation43_spill] sm:$0xff] %v7317_v18  ;;  %v1906_v51 = vmul.f32 0.015625, %v6839_v3  ;;  %v2164_v21 = vmul.f32 %v7300_v16, %v7300_v16  ;;  %v7333_v3 = vsub.f32 %v9626_v47, %v1907_v54 }
 0x287   : > { %v7305_v59 = vpop.xlane.xlu1 %2272  ;;  %v7307_v42 = vpop.xlane.xlu0 %2269  ;;  %9631 = vst [vmem:[#allocation48_spill] sm:$0xff] %v7346_v61  ;;  %v7349_v54 = vsub.f32 %v9632_v48, %v1970_v9  ;;  %v9634_v9 = vld [vmem:[#allocation72_spill] sm:$0xff] }
 0x288   : > { %9627 = vst [vmem:[#allocation46_spill] sm:$0xff] %v7333_v3  ;;  %v7336_v16 = vsub.f32 %v9628_v5, %v1906_v51  ;;  %v1913_v5 = vmul.f32 0.015625, %v6873_v38  ;;  %v2571_v51 = vsel %vm1480_vm2, %v2229_v10, 0.0  ;;  %v1977_v10 = vmul.f32 0.015625, %v6891_v56 }
 0x289   : > { %9633 = vst [vmem:[#allocation47_spill] sm:$0xff] %v7349_v54 }
 0x28a   : > { %2554 = vadd.xlane.f32.xlu1 %v2553_v62  ;;  %2551 = vadd.xlane.f32.xlu0 %v2550_v8  ;;  %9629 = vst [vmem:[#allocation45_spill] sm:$0xff] %v7336_v16  ;;  %v2376_v62 = vsel %vm1480_vm2, %v2164_v21, 0.0  ;;  %v2228_v8 = vmul.f32 %v7317_v18, %v7317_v18  ;;  %v1912_v21 = vmul.f32 0.015625, %v6875_v12  ;;  %v7364_v38 = vsub.f32 %v9634_v9, %v1913_v5  ;;  %v9638_v9 = vld [vmem:[#allocation74_spill] sm:$0xff] }
 0x28b   : > { %v7323_v1 = vpop.xlane.xlu1 %2464  ;;  %v7325_v55 = vpop.xlane.xlu0 %2461  ;;  %v2227_v12 = vmul.f32 %v7346_v61, %v7346_v61  ;;  %v7382_v61 = vsub.f32 %v9638_v9, %v1977_v10  ;;  %v1974_v9 = vmul.f32 0.015625, %v6929_v25 }
 0x28c   : > { %v2568_v47 = vsel %vm1480_vm2, %v2228_v8, 0.0  ;;  %9635 = vst [vmem:[#allocation50_spill] sm:$0xff] %v7364_v38  ;;  %v2226_v8 = vmul.f32 %v7349_v54, %v7349_v54  ;;  %v7372_v18 = vsub.f32 %v9636_v23, %v1912_v21  ;;  %v9640_v23 = vld [vmem:[#allocation73_spill] sm:$0xff] }
 0x28d   : > { %9639 = vst [vmem:[#allocation52_spill] sm:$0xff] %v7382_v61  ;;  %v2565_v54 = vsel %vm1480_vm2, %v2227_v12, 0.0 }
 0x28e   : > { %2380 = vadd.xlane.f32.xlu1 %v2379_v63  ;;  %2377 = vadd.xlane.f32.xlu0 %v2376_v62  ;;  %v2163_v63 = vmul.f32 %v7333_v3, %v7333_v3  ;;  %v2162_v62 = vmul.f32 %v7336_v16, %v7336_v16  ;;  %9637 = vst [vmem:[#allocation49_spill] sm:$0xff] %v7372_v18  ;;  %v2562_v21 = vsel %vm1480_vm2, %v2226_v8, 0.0  ;;  %v1975_v8 = vmul.f32 0.015625, %v6927_v39 }
 0x28f   : > { %v7341_v60 = vpop.xlane.xlu1 %2266  ;;  %v7343_v58 = vpop.xlane.xlu0 %2263 }
 0x290   : > { %v2370_v16 = vsel %vm1480_vm2, %v2162_v62, 0.0  ;;  %v1911_v62 = vmul.f32 0.015625, %v6909_v34  ;;  %v2233_v34 = vmul.f32 %v7382_v61, %v7382_v61  ;;  %v9649_v61 = vld [vmem:[#allocation77_spill] sm:$0xff] }
 0x292   : > { %2572 = vadd.xlane.f32.xlu1 %v2571_v51  ;;  %2569 = vadd.xlane.f32.xlu0 %v2568_v47  ;;  %v1976_v51 = vmul.f32 0.015625, %v6893_v45  ;;  %v2373_v47 = vsel %vm1480_vm2, %v2163_v63, 0.0  ;;  %v2169_v45 = vmul.f32 %v7364_v38, %v7364_v38  ;;  %v9644_v38 = vld [vmem:[#allocation75_spill] sm:$0xff] }
 0x293   : > { %v7359_v6 = vpop.xlane.xlu1 %2458  ;;  %v7361_v48 = vpop.xlane.xlu0 %2455 }
 0x294   : > { %v7389_v63 = vsub.f32 %v9640_v23, %v1976_v51  ;;  %v2391_v51 = vsel %vm1480_vm2, %v2169_v45, 0.0  ;;  %v9642_v23 = vld [vmem:[#allocation76_spill] sm:$0xff]  ;;  %v9647_v45 = vld [vmem:[#allocation78_spill] sm:$0xff] }
 0x295   : > { %v7418_v3 = vsub.f32 %v9647_v45, %v1975_v8 }
 0x296   : > { %2374 = vadd.xlane.f32.xlu1 %v2373_v47  ;;  %2371 = vadd.xlane.f32.xlu0 %v2370_v16  ;;  %9641 = vst [vmem:[#allocation51_spill] sm:$0xff] %v7389_v63  ;;  %v1910_v16 = vmul.f32 0.015625, %v6911_v26  ;;  %v2168_v47 = vmul.f32 %v7372_v18, %v7372_v18  ;;  %v7405_v26 = vsub.f32 %v9642_v23, %v1911_v62 }
 0x297   : > { %v7377_v5 = vpop.xlane.xlu1 %2284  ;;  %v7379_v56 = vpop.xlane.xlu0 %2281  ;;  %9648 = vst [vmem:[#allocation55_spill] sm:$0xff] %v7418_v3  ;;  %v7421_v62 = vsub.f32 %v9649_v61, %v1974_v9  ;;  %v9653_v9 = vld [vmem:[#allocation82_spill] sm:$0xff] }
 0x298   : > { %9643 = vst [vmem:[#allocation54_spill] sm:$0xff] %v7405_v26  ;;  %v7408_v18 = vsub.f32 %v9644_v38, %v1910_v16  ;;  %v1917_v38 = vmul.f32 0.015625, %v6945_v33  ;;  %v2583_v16 = vsel %vm1480_vm2, %v2233_v34, 0.0  ;;  %v9655_v34 = vld [vmem:[#allocation100_spill] sm:$0xff] }
 0x299   : > { %9650 = vst [vmem:[#allocation58_spill] sm:$0xff] %v7421_v62  ;;  %v1981_v45 = vmul.f32 0.015625, %v9655_v34  ;;  %v9661_v34 = vld [vmem:[#allocation86_spill] sm:$0xff] }
 0x29a   : > { %2566 = vadd.xlane.f32.xlu1 %v2565_v54  ;;  %2563 = vadd.xlane.f32.xlu0 %v2562_v21  ;;  %9645 = vst [vmem:[#allocation53_spill] sm:$0xff] %v7408_v18  ;;  %v2388_v54 = vsel %vm1480_vm2, %v2168_v47, 0.0  ;;  %v2232_v21 = vmul.f32 %v7389_v63, %v7389_v63  ;;  %v9651_v47 = vld [vmem:[#allocation16_spill] sm:$0xff]  ;;  %v7436_v33 = vsub.f32 %v9653_v9, %v1917_v38 }
 0x29b   : > { %v7395_v10 = vpop.xlane.xlu1 %2476  ;;  %v7397_v12 = vpop.xlane.xlu0 %2473  ;;  %v1916_v23 = vmul.f32 0.015625, %v9651_v47  ;;  %v2230_v47 = vmul.f32 %v7421_v62, %v7421_v62 }
 0x29c   : > { %v2580_v63 = vsel %vm1480_vm2, %v2232_v21, 0.0  ;;  %9654 = vst [vmem:[#allocation60_spill] sm:$0xff] %v7436_v33  ;;  %v2231_v21 = vmul.f32 %v7418_v3, %v7418_v3  ;;  %v7454_v3 = vsub.f32 %v9661_v34, %v1981_v45  ;;  %v1979_v45 = vmul.f32 0.015625, %v6999_v46  ;;  %v9667_v34 = vld [vmem:[#allocation20_spill] sm:$0xff] }
 0x29e   : > { %2392 = vadd.xlane.f32.xlu1 %v2391_v51  ;;  %2389 = vadd.xlane.f32.xlu0 %v2388_v54  ;;  %v2167_v51 = vmul.f32 %v7405_v26, %v7405_v26  ;;  %v2166_v54 = vmul.f32 %v7408_v18, %v7408_v18  ;;  %v9656_v26 = vld [vmem:[#allocation81_spill] sm:$0xff]  ;;  %9662 = vst [vmem:[#allocation64_spill] sm:$0xff] %v7454_v3  ;;  %v2577_v62 = vsel %vm1480_vm2, %v2231_v21, 0.0 }
 0x29f   : > { %v7413_v39 = vpop.xlane.xlu1 %2278  ;;  %v7415_v25 = vpop.xlane.xlu0 %2275 }
 0x2a0   : > { %9646 = vst [vmem:[#allocation56_spill] sm:$0xff] %v7415_v25  ;;  %v7444_v25 = vsub.f32 %v9656_v26, %v1916_v23  ;;  %v2385_v18 = vsel %vm1480_vm2, %v2167_v51, 0.0  ;;  %v2574_v26 = vsel %vm1480_vm2, %v2230_v47, 0.0  ;;  %v2173_v23 = vmul.f32 %v7436_v33, %v7436_v33 }
 0x2a1   : > { %v1978_v33 = vmul.f32 0.015625, %v9667_v34 }
 0x2a2   : > { %2584 = vadd.xlane.f32.xlu1 %v2583_v16  ;;  %2581 = vadd.xlane.f32.xlu0 %v2580_v63  ;;  %9657 = vst [vmem:[#allocation59_spill] sm:$0xff] %v7444_v25  ;;  %v9658_v16 = vld [vmem:[#allocation18_spill] sm:$0xff] }
 0x2a3   : > { %v7431_v8 = vpop.xlane.xlu1 %2470  ;;  %v7433_v61 = vpop.xlane.xlu0 %2467  ;;  %v1980_v63 = vmul.f32 0.015625, %v9658_v16  ;;  %v9663_v16 = vld [vmem:[#allocation85_spill] sm:$0xff] }
 0x2a4   : > { %9652 = vst [vmem:[#allocation57_spill] sm:$0xff] %v7433_v61  ;;  %v2382_v61 = vsel %vm1480_vm2, %v2166_v54, 0.0  ;;  %v9665_v54 = vld [vmem:[#allocation104_spill] sm:$0xff] }
 0x2a5   : > { %v7461_v51 = vsub.f32 %v9663_v16, %v1980_v63  ;;  %v2403_v63 = vsel %vm1480_vm2, %v2173_v23, 0.0  ;;  %v9668_v16 = vld [vmem:[#allocation90_spill] sm:$0xff] }
 0x2a6   : > { %2386 = vadd.xlane.f32.xlu1 %v2385_v18  ;;  %2383 = vadd.xlane.f32.xlu0 %v2382_v61  ;;  %v1915_v18 = vmul.f32 0.015625, %v6981_v11  ;;  %v1914_v61 = vmul.f32 0.015625, %v9665_v54  ;;  %v2237_v11 = vmul.f32 %v7454_v3, %v7454_v3  ;;  %v9675_v3 = vld [vmem:[#allocation93_spill] sm:$0xff] }
 0x2a7   : > { %v7449_v38 = vpop.xlane.xlu1 %2296  ;;  %v7451_v9 = vpop.xlane.xlu0 %2293  ;;  %9664 = vst [vmem:[#allocation63_spill] sm:$0xff] %v7461_v51  ;;  %v2236_v46 = vmul.f32 %v7461_v51, %v7461_v51 }
 0x2a8   : > { %9659 = vst [vmem:[#allocation62_spill] sm:$0xff] %v7449_v38  ;;  %9660 = vst [vmem:[#allocation61_spill] sm:$0xff] %v7451_v9  ;;  %v2172_v9 = vmul.f32 %v7444_v25, %v7444_v25  ;;  %v7477_v54 = vsub.f32 %v9668_v16, %v1915_v18  ;;  %v9670_v38 = vld [vmem:[#allocation89_spill] sm:$0xff]  ;;  %v7493_v18 = vsub.f32 %v9675_v3, %v1978_v33  ;;  %v9678_v3 = vld [vmem:[#allocation24_spill] sm:$0xff] }
 0x2a9   : > { %v7480_v25 = vsub.f32 %v9670_v38, %v1914_v61  ;;  %v1921_v38 = vmul.f32 0.015625, %v7017_v49  ;;  %v2595_v61 = vsel %vm1480_vm2, %v2237_v11, 0.0  ;;  %v2592_v51 = vsel %vm1480_vm2, %v2236_v46, 0.0 }
 0x2aa   : > { %2578 = vadd.xlane.f32.xlu1 %v2577_v62  ;;  %2575 = vadd.xlane.f32.xlu0 %v2574_v26  ;;  %9669 = vst [vmem:[#allocation65_spill] sm:$0xff] %v7477_v54  ;;  %v2400_v62 = vsel %vm1480_vm2, %v2172_v9, 0.0  ;;  %v9672_v26 = vld [vmem:[#allocation94_spill] sm:$0xff]  ;;  %9676 = vst [vmem:[#allocation69_spill] sm:$0xff] %v7493_v18  ;;  %v9677_v9 = vld [vmem:[#allocation21_spill] sm:$0xff]  ;;  %v1984_v33 = vmul.f32 0.015625, %v9678_v3 }
 0x2ab   : > { %v7468_v21 = vpop.xlane.xlu1 %2488  ;;  %v7470_v47 = vpop.xlane.xlu0 %2485  ;;  %9671 = vst [vmem:[#allocation68_spill] sm:$0xff] %v7480_v25  ;;  %v7486_v34 = vsub.f32 %v9672_v26, %v1979_v45  ;;  %v1920_v16 = vmul.f32 0.015625, %v9677_v9  ;;  %v2170_v45 = vmul.f32 %v7480_v25, %v7480_v25  ;;  %v1919_v49 = vmul.f32 0.015625, %v7053_v19  ;;  %v9681_v9 = vld [vmem:[#allocation98_spill] sm:$0xff] }
 0x2ac   : > { %9666 = vst [vmem:[#allocation66_spill] sm:$0xff] %v7470_v47  ;;  %v1918_v25 = vmul.f32 0.015625, %v7055_v57 }
 0x2ad   : > { %9673 = vst [vmem:[#allocation67_spill] sm:$0xff] %v7486_v34  ;;  %v2235_v46 = vmul.f32 %v7486_v34, %v7486_v34  ;;  %v2394_v3 = vsel %vm1480_vm2, %v2170_v45, 0.0  ;;  %v9687_v34 = vld [vmem:[#allocation101_spill] sm:$0xff]  ;;  %v1925_v45 = vmul.f32 0.015625, %v7089_v41 }
 0x2ae   : > { %2404 = vadd.xlane.f32.xlu1 %v2403_v63  ;;  %2401 = vadd.xlane.f32.xlu0 %v2400_v62  ;;  %v2171_v63 = vmul.f32 %v7477_v54, %v7477_v54  ;;  %v1985_v62 = vmul.f32 0.015625, %v7035_v31  ;;  %v7513_v54 = vsub.f32 %v9681_v9, %v1921_v38  ;;  %v2234_v31 = vmul.f32 %v7493_v18, %v7493_v18  ;;  %v9689_v9 = vld [vmem:[#allocation106_spill] sm:$0xff] }
 0x2af   : > { %v7488_v23 = vpop.xlane.xlu1 %2290  ;;  %v7490_v47 = vpop.xlane.xlu0 %2287  ;;  %v7527_v38 = vsub.f32 %v9687_v34, %v1984_v33  ;;  %v7530_v57 = vsub.f32 %v9689_v9, %v1919_v49  ;;  %v1983_v33 = vmul.f32 0.015625, %v7071_v4  ;;  %v1982_v49 = vmul.f32 0.015625, %v7073_v28 }
 0x2b0   : > { %9674 = vst [vmem:[#allocation70_spill] sm:$0xff] %v7490_v47  ;;  %9682 = vst [vmem:[#allocation74_spill] sm:$0xff] %v7513_v54  ;;  %v2397_v19 = vsel %vm1480_vm2, %v2171_v63, 0.0  ;;  %v9691_v63 = vld [vmem:[#allocation105_spill] sm:$0xff]  ;;  %v2177_v34 = vmul.f32 %v7513_v54, %v7513_v54 }
 0x2b1   : > { %9688 = vst [vmem:[#allocation75_spill] sm:$0xff] %v7527_v38  ;;  %9690 = vst [vmem:[#allocation78_spill] sm:$0xff] %v7530_v57  ;;  %v2175_v4 = vmul.f32 %v7530_v57, %v7530_v57  ;;  %v2240_v28 = vmul.f32 %v7527_v38, %v7527_v38  ;;  %v9702_v38 = vld [vmem:[#allocation122_spill] sm:$0xff] }
 0x2b2   : > { %2596 = vadd.xlane.f32.xlu1 %v2595_v61  ;;  %2593 = vadd.xlane.f32.xlu0 %v2592_v51  ;;  %v9683_v51 = vld [vmem:[#allocation97_spill] sm:$0xff] }
 0x2b3   : > { %v7506_v26 = vpop.xlane.xlu1 %2482  ;;  %v7508_v11 = vpop.xlane.xlu0 %2479  ;;  %v7519_v61 = vsub.f32 %v9683_v51, %v1920_v16  ;;  %v2589_v16 = vsel %vm1480_vm2, %v2235_v46, 0.0  ;;  %v7538_v51 = vsub.f32 %v9691_v63, %v1918_v25  ;;  %v1923_v46 = vmul.f32 0.015625, %v7125_v20  ;;  %v9696_v63 = vld [vmem:[#allocation110_spill] sm:$0xff] }
 0x2b4   : > { %9679 = vst [vmem:[#allocation72_spill] sm:$0xff] %v7506_v26  ;;  %9680 = vst [vmem:[#allocation71_spill] sm:$0xff] %v7508_v11  ;;  %v9685_v26 = vld [vmem:[#allocation102_spill] sm:$0xff]  ;;  %v1922_v25 = vmul.f32 0.015625, %v7127_v29  ;;  %v2415_v20 = vsel %vm1480_vm2, %v2177_v34, 0.0  ;;  %v7568_v29 = vsub.f32 %v9696_v63, %v1983_v33  ;;  %v9704_v33 = vld [vmem:[#allocation121_spill] sm:$0xff] }
 0x2b5   : > { %9684 = vst [vmem:[#allocation73_spill] sm:$0xff] %v7519_v61  ;;  %v7524_v11 = vsub.f32 %v9685_v26, %v1985_v62  ;;  %9692 = vst [vmem:[#allocation77_spill] sm:$0xff] %v7538_v51  ;;  %v2586_v62 = vsel %vm1480_vm2, %v2234_v31, 0.0  ;;  %v1924_v26 = vmul.f32 0.015625, %v7091_v24  ;;  %v9694_v24 = vld [vmem:[#allocation114_spill] sm:$0xff] }
 0x2b6   : > { %2398 = vadd.xlane.f32.xlu1 %v2397_v19  ;;  %2395 = vadd.xlane.f32.xlu0 %v2394_v3  ;;  %v2176_v19 = vmul.f32 %v7519_v61, %v7519_v61  ;;  %v7562_v9 = vsub.f32 %v9694_v24, %v1925_v45  ;;  %9697 = vst [vmem:[#allocation100_spill] sm:$0xff] %v7568_v29  ;;  %v9700_v61 = vld [vmem:[#allocation113_spill] sm:$0xff]  ;;  %v2637_v45 = vmul.f32 0.015625, %v7233_v35  ;;  %v1928_v35 = vmul.f32 0.015625, %v7163_v40 }
 0x2b7   : > { %9686 = vst [vmem:[#allocation76_spill] sm:$0xff] %v7524_v11  ;;  %v7532_v47 = vpop.xlane.xlu1 %2308  ;;  %v7534_v18 = vpop.xlane.xlu0 %2305  ;;  %v2241_v41 = vmul.f32 %v7524_v11, %v7524_v11  ;;  %v7574_v54 = vsub.f32 %v9700_v61, %v1924_v26  ;;  %v7585_v24 = vsub.f32 %v9704_v33, %v1922_v25  ;;  %v2409_v26 = vsel %vm1480_vm2, %v2175_v4, 0.0 }
 0x2b8   : > { %9695 = vst [vmem:[#allocation82_spill] sm:$0xff] %v7562_v9  ;;  %v2412_v57 = vsel %vm1480_vm2, %v2176_v19, 0.0  ;;  %v2239_v25 = vmul.f32 %v7568_v29, %v7568_v29  ;;  %v1989_v40 = vmul.f32 0.015625, %v7107_v32 }
 0x2b9   : > { %9701 = vst [vmem:[#allocation18_spill] sm:$0xff] %v7574_v54  ;;  %v7582_v34 = vsel %vm1480_vm2, %v2241_v41, 0.0  ;;  %9705 = vst [vmem:[#allocation85_spill] sm:$0xff] %v7585_v24  ;;  %v2180_v41 = vmul.f32 %v7574_v54, %v7574_v54  ;;  %v2178_v32 = vmul.f32 %v7585_v24, %v7585_v24  ;;  %v1988_v54 = vmul.f32 0.015625, %v7109_v43  ;;  %v9751_v24 = vld [vmem:[#allocation154_spill] sm:$0xff] }
 0x2ba   : > { %2590 = vadd.xlane.f32.xlu1 %v2589_v16  ;;  %2587 = vadd.xlane.f32.xlu0 %v2586_v62  ;;  %v2174_v16 = vmul.f32 %v7538_v51, %v7538_v51  ;;  %v9698_v62 = vld [vmem:[#allocation109_spill] sm:$0xff] }
 0x2bb   : > { %v7553_v31 = vpop.xlane.xlu1 %2500  ;;  %v7555_v3 = vpop.xlane.xlu0 %2497  ;;  %v7571_v11 = vsub.f32 %v9698_v62, %v1982_v49  ;;  %v2636_v49 = vmul.f32 0.015625, %v7235_v0  ;;  %v2700_v0 = vmul.f32 0.015625, %v7253_v37  ;;  %v2634_v62 = vmul.f32 0.015625, %v7271_v14 }
 0x2bc   : > { %9693 = vst [vmem:[#allocation16_spill] sm:$0xff] %v7555_v3  ;;  %v7578_v3 = vsub.f32 %v9702_v38, %v1923_v46  ;;  %v7594_v38 = vsel %vm1480_vm2, %v2240_v28, 0.0  ;;  %v2406_v19 = vsel %vm1480_vm2, %v2174_v16, 0.0  ;;  %v2181_v46 = vmul.f32 %v7562_v9, %v7562_v9 }
 0x2bd   : > { %9699 = vst [vmem:[#allocation81_spill] sm:$0xff] %v7571_v11  ;;  %v7608_v4 = vmul.f32 %v7571_v11, %v7571_v11  ;;  %v2635_v28 = vmul.f32 0.015625, %v7269_v17  ;;  %v2764_v16 = vadd.f32 1e-05, %v2636_v49  ;;  %v2828_v49 = vadd.f32 1e-05, %v2700_v0 }
 0x2be   : > { %9703 = vst [vmem:[#allocation86_spill] sm:$0xff] %v7578_v3  ;;  %2416 = vadd.xlane.f32.xlu1 %v2415_v20  ;;  %2413 = vadd.xlane.f32.xlu0 %v2412_v57  ;;  %v2701_v57 = vmul.f32 0.015625, %v7251_v27  ;;  %v2765_v27 = vadd.f32 1e-05, %v2637_v45  ;;  %v2179_v37 = vmul.f32 %v7578_v3, %v7578_v3  ;;  %v1929_v20 = vmul.f32 0.015625, %v7161_v50  ;;  %v9706_v45 = vld [vmem:[#allocation129_spill] sm:$0xff] }
 0x2bf   : > { %v7588_v63 = vpop.xlane.xlu1 %2302  ;;  %v7590_v61 = vpop.xlane.xlu0 %2299  ;;  %v7623_v11 = vsub.f32 %v9706_v45, %v1928_v35  ;;  %v1926_v50 = vmul.f32 0.015625, %v7199_v52  ;;  %v2698_v14 = vmul.f32 0.015625, %v7289_v2  ;;  %v2424_v3 = vsel %vm1480_vm2, %v2180_v41, 0.0  ;;  %v9710_v41 = vld [vmem:[#allocation136_spill] sm:$0xff] }
 0x2c0   : > { %v2829_v17 = vadd.f32 1e-05, %v2701_v57  ;;  %5277 = vrsqrt.f32 %v2765_v27  ;;  %v2763_v9 = vadd.f32 1e-05, %v2635_v28  ;;  %v2421_v35 = vsel %vm1480_vm2, %v2179_v37, 0.0  ;;  %v9708_v57 = vld [vmem:[#allocation130_spill] sm:$0xff] }
 0x2c1   : > { %9707 = vst [vmem:[#allocation104_spill] sm:$0xff] %v7623_v11  ;;  %v7633_v45 = vsub.f32 %v9708_v57, %v1929_v20  ;;  %5279 = vrsqrt.f32 %v2764_v16  ;;  %v2418_v2 = vsel %vm1480_vm2, %v2178_v32, 0.0  ;;  %v1927_v0 = vmul.f32 0.015625, %v7197_v53  ;;  %v9712_v20 = vld [vmem:[#allocation118_spill] sm:$0xff]  ;;  %v9714_v32 = vld [vmem:[#allocation117_spill] sm:$0xff] }
 0x2c2   : > { %2410 = vadd.xlane.f32.xlu1 %v2409_v26  ;;  %2407 = vadd.xlane.f32.xlu0 %v2406_v19  ;;  %v2699_v26 = vmul.f32 0.015625, %v7287_v36  ;;  %v2427_v19 = vsel %vm1480_vm2, %v2181_v46, 0.0  ;;  %v2762_v36 = vadd.f32 1e-05, %v2634_v62  ;;  %5281 = vrsqrt.f32 %v2829_v17  ;;  %v9718_v57 = vld [vmem:[#allocation126_spill] sm:$0xff] }
 0x2c3   : > { %v7616_v33 = vpop.xlane.xlu1 %2494  ;;  %v7618_v29 = vpop.xlane.xlu0 %2491  ;;  %9709 = vst [vmem:[#allocation20_spill] sm:$0xff] %v7633_v45  ;;  %v7644_v27 = vsub.f32 %v9710_v41, %v1926_v50  ;;  %5283 = vrsqrt.f32 %v2828_v49  ;;  %v2826_v28 = vadd.f32 1e-05, %v2698_v14  ;;  %v2641_v37 = vmul.f32 0.015625, %v7305_v59 }
 0x2c4   : > { %v2827_v43 = vadd.f32 1e-05, %v2699_v26  ;;  %v7648_v16 = vsub.f32 %v9712_v20, %v1989_v40  ;;  %5285 = vrsqrt.f32 %v2763_v9  ;;  %v2640_v62 = vmul.f32 0.015625, %v7307_v42  ;;  %v9716_v40 = vld [vmem:[#allocation137_spill] sm:$0xff] }
 0x2c5   : > { %9711 = vst [vmem:[#allocation90_spill] sm:$0xff] %v7644_v27  ;;  %v2601_v53 = vsel %vm1480_vm2, %v2239_v25, 0.0  ;;  %v7653_v17 = vsub.f32 %v9714_v32, %v1988_v54  ;;  %v1987_v26 = vmul.f32 0.015625, %v7143_v7  ;;  %5287 = vrsqrt.f32 %v2762_v36 }
 0x2c6   : > { %2428 = vadd.xlane.f32.xlu1 %v2427_v19  ;;  %2425 = vadd.xlane.f32.xlu0 %v2424_v3  ;;  %v2184_v3 = vmul.f32 %v7623_v11, %v7623_v11  ;;  %9713 = vst [vmem:[#allocation89_spill] sm:$0xff] %v7648_v16  ;;  %v1986_v19 = vmul.f32 0.015625, %v7145_v22  ;;  %v1993_v9 = vmul.f32 0.015625, %v7179_v13  ;;  %5289 = vrsqrt.f32 %v2827_v43 }
 0x2c7   : > { %v7635_v46 = vpop.xlane.xlu1 %2320  ;;  %v7637_v52 = vpop.xlane.xlu0 %2317  ;;  %9715 = vst [vmem:[#allocation94_spill] sm:$0xff] %v7653_v17  ;;  %v2185_v25 = vmul.f32 %v7633_v45, %v7633_v45  ;;  %v7666_v54 = vsub.f32 %v9716_v40, %v1927_v0  ;;  %5291 = vrsqrt.f32 %v2826_v28  ;;  %v2769_v7 = vadd.f32 1e-05, %v2641_v37  ;;  %v9722_v28 = vld [vmem:[#allocation134_spill] sm:$0xff] }
 0x2c8   : > { %v2436_v42 = vsel %vm1480_vm2, %v2184_v3, 0.0  ;;  %v2182_v22 = vmul.f32 %v7644_v27, %v7644_v27  ;;  %v2768_v49 = vadd.f32 1e-05, %v2640_v62  ;;  %v2705_v14 = vmul.f32 0.015625, %v7323_v1 }
 0x2c9   : > { %9717 = vst [vmem:[#allocation93_spill] sm:$0xff] %v7666_v54  ;;  %v2598_v13 = vsel %vm1480_vm2, %v7608_v4, 0.0  ;;  %v7676_v36 = vsub.f32 %v9718_v57, %v1987_v26  ;;  %v2704_v43 = vmul.f32 0.015625, %v7325_v55  ;;  %v2244_v1 = vmul.f32 %v7653_v17, %v7653_v17 }
 0x2ca   : > { %2422 = vadd.xlane.f32.xlu1 %v2421_v35  ;;  %2419 = vadd.xlane.f32.xlu0 %v2418_v2  ;;  %v2245_v35 = vmul.f32 %v7648_v16, %v7648_v16  ;;  %v9720_v2 = vld [vmem:[#allocation125_spill] sm:$0xff]  ;;  %v7689_v4 = vsub.f32 %v9722_v28, %v1993_v9  ;;  %v1992_v37 = vmul.f32 0.015625, %v7181_v30  ;;  %v1991_v20 = vmul.f32 0.015625, %v7215_v15 }
 0x2cb   : > { %v7657_v50 = vpop.xlane.xlu1 %2512  ;;  %v7659_v59 = vpop.xlane.xlu0 %2509  ;;  %9719 = vst [vmem:[#allocation21_spill] sm:$0xff] %v7676_v36  ;;  %v7679_v0 = vsub.f32 %v9720_v2, %v1986_v19  ;;  %v2439_v62 = vsel %vm1480_vm2, %v2185_v25, 0.0  ;;  %5293 = vrsqrt.f32 %v2769_v7  ;;  %v2430_v55 = vsel %vm1480_vm2, %v2182_v22, 0.0  ;;  %v9724_v22 = vld [vmem:[#allocation133_spill] sm:$0xff]  ;;  %v9726_v2 = vld [vmem:[#allocation139_spill] sm:$0xff] }
 0x2cc   : > { %9723 = vst [vmem:[#allocation98_spill] sm:$0xff] %v7689_v4  ;;  %v2183_v32 = vmul.f32 %v7666_v54, %v7666_v54  ;;  %v1990_v26 = vmul.f32 0.015625, %v7217_v44  ;;  %5295 = vrsqrt.f32 %v2768_v49  ;;  %v2833_v19 = vadd.f32 1e-05, %v2705_v14 }
 0x2cd   : > { %9721 = vst [vmem:[#allocation24_spill] sm:$0xff] %v7679_v0  ;;  %v2638_v9 = vmul.f32 0.015625, %v7343_v58  ;;  %v5278_v30 = vpop.eup %5277  ;;  %v2832_v15 = vadd.f32 1e-05, %v2704_v43  ;;  %v2243_v40 = vmul.f32 %v7676_v36, %v7676_v36  ;;  %v7708_v7 = vsel %vm1480_vm2, %v2245_v35, 0.0 }
 0x2ce   : > { %2602 = vadd.xlane.f32.xlu1 %v2601_v53  ;;  %2437 = vadd.xlane.f32.xlu0 %v2436_v42  ;;  %v2639_v53 = vmul.f32 0.015625, %v7341_v60  ;;  %v2703_v42 = vmul.f32 0.015625, %v7359_v6  ;;  %v5280_v44 = vpop.eup %5279  ;;  %v7711_v49 = vsub.f32 %v9724_v22, %v1992_v37  ;;  %v2702_v58 = vmul.f32 0.015625, %v7361_v48  ;;  %v9728_v37 = vld [vmem:[#allocation138_spill] sm:$0xff] }
 0x2cf   : > { %v7682_v3 = vpop.xlane.xlu1 %2314  ;;  %v7684_v41 = vpop.xlane.xlu0 %2311  ;;  %v2242_v14 = vmul.f32 %v7679_v0, %v7679_v0  ;;  %v2249_v6 = vmul.f32 %v7689_v4, %v7689_v4  ;;  %v7719_v43 = vsub.f32 %v9726_v2, %v1991_v20  ;;  %v2645_v35 = vmul.f32 0.015625, %v7377_v5 }
 0x2d0   : > { %9725 = vst [vmem:[#allocation97_spill] sm:$0xff] %v7711_v49  ;;  %v5282_v57 = vpop.eup %5281  ;;  %v2767_v28 = vadd.f32 1e-05, %v2639_v53  ;;  %v7724_v22 = vsub.f32 %v9728_v37, %v1990_v26  ;;  %5297 = vrsqrt.f32 %v2833_v19  ;;  %v2766_v48 = vadd.f32 1e-05, %v2638_v9  ;;  %v9731_v37 = vld [vmem:[#allocation140_spill] sm:$0xff] }
 0x2d1   : > { %9727 = vst [vmem:[#allocation102_spill] sm:$0xff] %v7719_v43  ;;  %v2644_v16 = vmul.f32 0.015625, %v7379_v56  ;;  %5299 = vrsqrt.f32 %v2832_v15  ;;  %v2831_v17 = vadd.f32 1e-05, %v2703_v42  ;;  %v2616_v5 = vsel %vm1480_vm2, %v2244_v1, 0.0 }
 0x2d2   : > { %2440 = vadd.xlane.f32.xlu1 %v2439_v62  ;;  %2431 = vadd.xlane.f32.xlu0 %v2430_v55  ;;  %v2433_v62 = vsel %vm1480_vm2, %v2183_v32, 0.0  ;;  %v5284_v55 = vpop.eup %5283  ;;  %9729 = vst [vmem:[#allocation101_spill] sm:$0xff] %v7724_v22  ;;  %v9730_v32 = vld [vmem:[#allocation141_spill] sm:$0xff]  ;;  %v2830_v26 = vadd.f32 1e-05, %v2702_v58  ;;  %v2613_v19 = vsel %vm1480_vm2, %v2243_v40, 0.0  ;;  %v2248_v56 = vmul.f32 %v7711_v49, %v7711_v49 }
 0x2d3   : > { %v7701_v25 = vpop.xlane.xlu1 %2506  ;;  %v7703_v60 = vpop.xlane.xlu0 %2503  ;;  %v3021_v2 = vmul.f32 %v5278_v30, %v9730_v32  ;;  %v2610_v9 = vsel %vm1480_vm2, %v2242_v14, 0.0  ;;  %5301 = vrsqrt.f32 %v2767_v28  ;;  %v2773_v15 = vadd.f32 1e-05, %v2645_v35 }
 0x2d4   : > { %v5286_v4 = vpop.eup %5285  ;;  %v2247_v42 = vmul.f32 %v7719_v43, %v7719_v43  ;;  %5303 = vrsqrt.f32 %v2766_v48  ;;  %v2772_v30 = vadd.f32 1e-05, %v2644_v16  ;;  %v2709_v58 = vmul.f32 0.015625, %v7395_v10  ;;  %v7756_v10 = vld [vmem:[%s9072_s3] ss:$0 sm:$0xff]  ;;  %v9733_v16 = vld [vmem:[#allocation142_spill] sm:$0xff] }
 0x2d5   : > { %v5288_v36 = vpop.eup %5287  ;;  %v2246_v40 = vmul.f32 %v7724_v22, %v7724_v22  ;;  %5305 = vrsqrt.f32 %v2831_v17  ;;  %v2708_v14 = vmul.f32 0.015625, %v7397_v12  ;;  %v3020_v48 = vmul.f32 %v5280_v44, %v9731_v37  ;;  %v9734_v17 = vld [vmem:[#allocation145_spill] sm:$0xff]  ;;  %v9735_v12 = vld [vmem:[#allocation144_spill] sm:$0xff]  ;;  %v9736_v22 = vld [vmem:[#allocation147_spill] sm:$0xff] }
 0x2d6   : > { %2434 = vadd.xlane.f32.xlu1 %v2433_v62  ;;  %2599 = vadd.xlane.f32.xlu0 %v2598_v13  ;;  %v5290_v13 = vpop.eup %5289  ;;  %v7740_v62 = vsel %vm1480_vm2, %v2249_v6, 0.0  ;;  %v3149_v6 = vmax.f32 %v3021_v2, 0.0  ;;  %5307 = vrsqrt.f32 %v2830_v26  ;;  %v3084_v32 = vmul.f32 %v5284_v55, %v9733_v16  ;;  %v9737_v2 = vld [vmem:[#allocation146_spill] sm:$0xff] }
 0x2d7   : > { %v7727_v20 = vpop.xlane.xlu1 %2332  ;;  %v7729_v53 = vpop.xlane.xlu0 %2329  ;;  %v3019_v49 = vmul.f32 %v5286_v4, %v9734_v17  ;;  %5309 = vrsqrt.f32 %v2773_v15  ;;  %v3018_v43 = vmul.f32 %v5288_v36, %v9735_v12  ;;  %v3083_v0 = vmul.f32 %v5290_v13, %v9736_v22  ;;  %v9739_v12 = vld [vmem:[#allocation148_spill] sm:$0xff] }
 0x2d8   : > { %v5292_v1 = vpop.eup %5291  ;;  %5311 = vrsqrt.f32 %v2772_v30  ;;  %v2837_v26 = vadd.f32 1e-05, %v2709_v58  ;;  %v2643_v37 = vmul.f32 0.015625, %v7413_v39  ;;  %v2625_v36 = vsel %vm1480_vm2, %v2247_v42, 0.0 }
 0x2d9   : > { %v3082_v54 = vmul.f32 %v5292_v1, %v9737_v2  ;;  %v5294_v44 = vpop.eup %5293  ;;  %v3284_v22 = vmul.f32 %v7756_v10, %v3149_v6  ;;  %v3148_v13 = vmax.f32 %v3020_v48, 0.0  ;;  %v2622_v1 = vsel %vm1480_vm2, %v2246_v40, 0.0  ;;  %v9740_v2 = vld [vmem:[#allocation149_spill] sm:$0xff] }
 0x2da   : > { %2608 = vadd.xlane.f32.xlu1 %v7582_v34  ;;  %2605 = vadd.xlane.f32.xlu0 %v7594_v38  ;;  %v9732_v34 = vld [vmem:[#allocation143_spill] sm:$0xff]  ;;  %v5296_v55 = vpop.eup %5295  ;;  %v3212_v39 = vmax.f32 %v3084_v32, 0.0  ;;  %v3211_v16 = vmax.f32 %v3083_v0, 0.0  ;;  %5313 = vrsqrt.f32 %v2837_v26  ;;  %v3025_v42 = vmul.f32 %v5294_v44, %v9739_v12  ;;  %v9743_v32 = vld [vmem:[#allocation57_spill] sm:$0xff]  ;;  %v9744_v12 = vld [vmem:[#allocation150_spill] sm:$0xff] }
 0x2db   : > { %v7748_v28 = vpop.xlane.xlu1 %2524  ;;  %v7750_v35 = vpop.xlane.xlu0 %2521  ;;  %v3085_v38 = vmul.f32 %v5282_v57, %v9732_v34  ;;  %v7766_v57 = vsel %vm1480_vm2, %v2248_v56, 0.0  ;;  %v2836_v34 = vadd.f32 1e-05, %v2708_v14  ;;  %v3146_v56 = vmax.f32 %v3018_v43, 0.0 }
 0x2dc   : > { %v3210_v17 = vmax.f32 %v3082_v54, 0.0  ;;  %v2771_v14 = vadd.f32 1e-05, %v2643_v37  ;;  %v3024_v6 = vmul.f32 %v5296_v55, %v9740_v2  ;;  %v2707_v40 = vmul.f32 0.015625, %v7431_v8 }
 0x2dd   : > { %v3213_v30 = vmax.f32 %v3085_v38, 0.0  ;;  %v5298_v48 = vpop.eup %5297  ;;  %5315 = vrsqrt.f32 %v2836_v34  ;;  %v3418_v0 = vsel %vm1480_vm2, %v3284_v22, 0.0  ;;  %v3283_v54 = vmul.f32 %v7756_v10, %v3148_v13 }
 0x2de   : > { %2614 = vadd.xlane.f32.xlu1 %v2613_v19  ;;  %2611 = vadd.xlane.f32.xlu0 %v2610_v9  ;;  %v3147_v19 = vmax.f32 %v3019_v49, 0.0  ;;  %v9738_v9 = vld [vmem:[#allocation56_spill] sm:$0xff]  ;;  %v5300_v43 = vpop.eup %5299  ;;  %v3347_v44 = vmul.f32 %v7756_v10, %v3212_v39  ;;  %v3281_v8 = vmul.f32 %v7756_v10, %v3146_v56  ;;  %v3346_v55 = vmul.f32 %v7756_v10, %v3211_v16  ;;  %v9745_v39 = vld [vmem:[#allocation62_spill] sm:$0xff]  ;;  %v9746_v16 = vld [vmem:[#allocation151_spill] sm:$0xff] }
 0x2df   : > { %v7768_v4 = vpop.xlane.xlu1 %2326  ;;  %v7770_v15 = vpop.xlane.xlu0 %2323  ;;  %v2642_v58 = vmul.f32 0.015625, %v9738_v9  ;;  %v3345_v34 = vmul.f32 %v7756_v10, %v3210_v17  ;;  %5317 = vrsqrt.f32 %v2771_v14  ;;  %v3153_v22 = vmax.f32 %v3025_v42, 0.0 }
 0x2e0   : > { %v3282_v26 = vmul.f32 %v7756_v10, %v3147_v19  ;;  %v5302_v9 = vpop.eup %5301  ;;  %v3152_v13 = vmax.f32 %v3024_v6, 0.0  ;;  %v3089_v2 = vmul.f32 %v5298_v48, %v9744_v12  ;;  %v2649_v27 = vmul.f32 0.015625, %v9745_v39  ;;  %v9747_v48 = vld [vmem:[#allocation61_spill] sm:$0xff] }
 0x2e1   : > { %v2770_v37 = vadd.f32 1e-05, %v2642_v58  ;;  %v3415_v56 = vsel %vm1480_vm2, %v3283_v54, 0.0  ;;  %v3088_v17 = vmul.f32 %v5300_v43, %v9746_v16  ;;  %v7808_v12 = vsel %vm1480_vm2, %v3281_v8, 0.0  ;;  %v9749_v16 = vld [vmem:[#allocation152_spill] sm:$0xff] }
 0x2e2   : > { %2620 = vadd.xlane.f32.xlu1 %v7708_v7  ;;  %2617 = vadd.xlane.f32.xlu0 %v2616_v5  ;;  %v2706_v7 = vmul.f32 0.015625, %v9743_v32  ;;  %v3348_v5 = vmul.f32 %v7756_v10, %v3213_v30  ;;  %v5304_v30 = vpop.eup %5303  ;;  %v2835_v32 = vadd.f32 1e-05, %v2707_v40  ;;  %v7804_v42 = vsel %vm1480_vm2, %v3282_v26, 0.0 }
 0x2e3   : > { %v7780_v38 = vpop.xlane.xlu1 %2518  ;;  %v7782_v49 = vpop.xlane.xlu0 %2515  ;;  %5319 = vrsqrt.f32 %v2770_v37  ;;  %v2648_v40 = vmul.f32 0.015625, %v9747_v48  ;;  %v7811_v54 = vsel %vm1480_vm2, %v3346_v55, 0.0  ;;  %v3217_v26 = vmax.f32 %v3089_v2, 0.0 }
 0x2e4   : > { %9741 = vst [vmem:[#allocation106_spill] sm:$0xff] %v7780_v38  ;;  %9742 = vst [vmem:[#allocation105_spill] sm:$0xff] %v7782_v49  ;;  %v5306_v45 = vpop.eup %5305  ;;  %v2834_v14 = vadd.f32 1e-05, %v2706_v7  ;;  %v7816_v7 = vsel %vm1480_vm2, %v3345_v34, 0.0  ;;  %5321 = vrsqrt.f32 %v2835_v32  ;;  %v3023_v48 = vmul.f32 %v5302_v9, %v9749_v16  ;;  %v9750_v34 = vld [vmem:[#allocation153_spill] sm:$0xff] }
 0x2e5   : > { %v5308_v6 = vpop.eup %5307  ;;  %v2777_v8 = vadd.f32 1e-05, %v2649_v27  ;;  %v3022_v11 = vmul.f32 %v5304_v30, %v9750_v34  ;;  %v2776_v51 = vadd.f32 1e-05, %v2648_v40  ;;  %v9753_v49 = vld [vmem:[#allocation155_spill] sm:$0xff]  ;;  %v9754_v27 = vld [vmem:[#allocation156_spill] sm:$0xff]  ;;  %v3352_v30 = vmul.f32 %v7756_v10, %v3217_v26 }
 0x2e6   : > { %2626 = vadd.xlane.f32.xlu1 %v2625_v36  ;;  %2623 = vadd.xlane.f32.xlu0 %v2622_v1  ;;  %v3610_v36 = vsel %vm1480_vm2, %v3348_v5, 0.0  ;;  %v3607_v1 = vsel %vm1480_vm2, %v3347_v44, 0.0  ;;  %v5310_v43 = vpop.eup %5309  ;;  %v3288_v5 = vmul.f32 %v7756_v10, %v3153_v22  ;;  %v3287_v44 = vmul.f32 %v7756_v10, %v3152_v13  ;;  %v9752_v13 = vld [vmem:[#allocation66_spill] sm:$0xff] }
 0x2e7   : > { %v7795_v19 = vpop.xlane.xlu1 %2344  ;;  %v7797_v58 = vpop.xlane.xlu0 %2341  ;;  %5323 = vrsqrt.f32 %v2834_v14  ;;  %v3087_v22 = vmul.f32 %v5306_v45, %v9751_v24  ;;  %v2712_v2 = vmul.f32 0.015625, %v9752_v13  ;;  %v3086_v32 = vmul.f32 %v5308_v6, %v9753_v49  ;;  %v9756_v24 = vld [vmem:[#allocation70_spill] sm:$0xff] }
 0x2e8   : > { %v5312_v37 = vpop.eup %5311  ;;  %v3029_v38 = vmul.f32 %v5310_v43, %v9754_v27  ;;  %v7833_v9 = vsel %vm1480_vm2, %v3288_v5, 0.0  ;;  %5325 = vrsqrt.f32 %v2777_v8  ;;  %v2646_v45 = vmul.f32 0.015625, %v9756_v24 }
 0x2e9   : > { %v5314_v14 = vpop.eup %5313  ;;  %v3151_v6 = vmax.f32 %v3023_v48, 0.0  ;;  %v7844_v43 = vsel %vm1480_vm2, %v3287_v44, 0.0  ;;  %v3150_v5 = vmax.f32 %v3022_v11, 0.0  ;;  %5327 = vrsqrt.f32 %v2776_v51  ;;  %v9757_v48 = vld [vmem:[#allocation158_spill] sm:$0xff] }
 0x2ea   : > { %2632 = vadd.xlane.f32.xlu1 %v7740_v62  ;;  %2629 = vadd.xlane.f32.xlu0 %v7766_v57  ;;  %v3216_v62 = vmax.f32 %v3088_v17, 0.0  ;;  %v2713_v57 = vmul.f32 0.015625, %v7468_v21  ;;  %v9755_v17 = vld [vmem:[#allocation157_spill] sm:$0xff]  ;;  %v2840_v26 = vadd.f32 1e-05, %v2712_v2  ;;  %v3214_v16 = vmax.f32 %v3086_v32, 0.0 }
 0x2eb   : > { %v7820_v39 = vpop.xlane.xlu1 %2536  ;;  %v7822_v55 = vpop.xlane.xlu0 %2533  ;;  %v3028_v21 = vmul.f32 %v5312_v37, %v9755_v17  ;;  %v3215_v37 = vmax.f32 %v3087_v22, 0.0  ;;  %v3157_v8 = vmax.f32 %v3029_v38, 0.0  ;;  %v7847_v27 = vsel %vm1480_vm2, %v3352_v30, 0.0  ;;  %v9759_v38 = vld [vmem:[#allocation159_spill] sm:$0xff] }
 0x2ec   : > { %9748 = vst [vmem:[#allocation114_spill] sm:$0xff] %v7820_v39  ;;  %v2647_v39 = vmul.f32 0.015625, %v7488_v23  ;;  %v3351_v23 = vmul.f32 %v7756_v10, %v3216_v62  ;;  %v3093_v62 = vmul.f32 %v5314_v14, %v9757_v48  ;;  %v3286_v11 = vmul.f32 %v7756_v10, %v3151_v6  ;;  %v9761_v48 = vld [vmem:[#allocation161_spill] sm:$0xff] }
 0x2ed   : > { %v3156_v13 = vmax.f32 %v3028_v21, 0.0  ;;  %v3350_v22 = vmul.f32 %v7756_v10, %v3215_v37  ;;  %v2652_v2 = vmul.f32 0.015625, %v7534_v18  ;;  %v3349_v32 = vmul.f32 %v7756_v10, %v3214_v16 }
 0x2ee   : > { %3419 = vadd.xlane.f32.xlu1 %v3418_v0  ;;  %3416 = vadd.xlane.f32.xlu0 %v3415_v56  ;;  %v5316_v0 = vpop.eup %5315  ;;  %v2841_v56 = vadd.f32 1e-05, %v2713_v57  ;;  %v2775_v34 = vadd.f32 1e-05, %v2647_v39  ;;  %v2774_v57 = vadd.f32 1e-05, %v2646_v45  ;;  %v3285_v39 = vmul.f32 %v7756_v10, %v3150_v5 }
 0x2ef   : > { %v7838_v40 = vpop.xlane.xlu1 %2338  ;;  %v7840_v49 = vpop.xlane.xlu0 %2335  ;;  %v7856_v51 = vsel %vm1480_vm2, %v3351_v23, 0.0  ;;  %v3292_v21 = vmul.f32 %v7756_v10, %v3157_v8  ;;  %v3291_v14 = vmul.f32 %v7756_v10, %v3156_v13  ;;  %v3221_v6 = vmax.f32 %v3093_v62, 0.0 }
 0x2f0   : > { %v5318_v17 = vpop.eup %5317  ;;  %9758 = vst [vmem:[#allocation110_spill] sm:$0xff] %v7856_v51  ;;  %5329 = vrsqrt.f32 %v2841_v56  ;;  %v2651_v23 = vmul.f32 0.015625, %v7588_v63  ;;  %v3424_v56 = vsel %vm1480_vm2, %v3286_v11, 0.0  ;;  %v7878_v16 = vsel %vm1480_vm2, %v3350_v22, 0.0 }
 0x2f1   : > { %5331 = vrsqrt.f32 %v2840_v26  ;;  %v5320_v30 = vpop.eup %5319  ;;  %v7881_v63 = vsel %vm1480_vm2, %v3349_v32, 0.0  ;;  %v7884_v13 = vsel %vm1480_vm2, %v3292_v21, 0.0  ;;  %v2654_v51 = vmul.f32 0.015625, %v7684_v41 }
 0x2f2   : > { %3611 = vadd.xlane.f32.xlu1 %v3610_v36  ;;  %3608 = vadd.xlane.f32.xlu0 %v3607_v1  ;;  %v3092_v36 = vmul.f32 %v5316_v0, %v9759_v38  ;;  %v2653_v1 = vmul.f32 0.015625, %v7532_v47  ;;  %5333 = vrsqrt.f32 %v2775_v34  ;;  %v9760_v47 = vld [vmem:[#allocation160_spill] sm:$0xff]  ;;  %v5322_v37 = vpop.eup %5321  ;;  %v2780_v34 = vadd.f32 1e-05, %v2652_v2  ;;  %v9763_v2 = vld [vmem:[#allocation162_spill] sm:$0xff] }
 0x2f3   : > { %v7850_v24 = vpop.xlane.xlu1 %2530  ;;  %v7852_v44 = vpop.xlane.xlu0 %2527  ;;  %v3027_v45 = vmul.f32 %v5318_v17, %v9760_v47  ;;  %5335 = vrsqrt.f32 %v2774_v57  ;;  %v3026_v62 = vmul.f32 %v5320_v30, %v9761_v48  ;;  %v9762_v17 = vld [vmem:[#allocation72_spill] sm:$0xff]  ;;  %v3356_v38 = vmul.f32 %v7756_v10, %v3221_v6 }
 0x2f4   : > { %v3220_v5 = vmax.f32 %v3092_v36, 0.0  ;;  %v2781_v26 = vadd.f32 1e-05, %v2653_v1  ;;  %v5324_v8 = vpop.eup %5323  ;;  %v2711_v57 = vmul.f32 0.015625, %v9762_v17  ;;  %v2779_v36 = vadd.f32 1e-05, %v2651_v23 }
 0x2f5   : > { %v3155_v11 = vmax.f32 %v3027_v45, 0.0  ;;  %v2657_v1 = vmul.f32 0.015625, %v7635_v46  ;;  %v3091_v32 = vmul.f32 %v5322_v37, %v9763_v2  ;;  %v2656_v30 = vmul.f32 0.015625, %v7637_v52  ;;  %v9765_v45 = vld [vmem:[#allocation71_spill] sm:$0xff] }
 0x2f6   : > { %3413 = vadd.xlane.f32.xlu1 %v7804_v42  ;;  %3410 = vadd.xlane.f32.xlu0 %v7808_v12  ;;  %v2650_v42 = vmul.f32 0.015625, %v7590_v61  ;;  %v3421_v12 = vsel %vm1480_vm2, %v3285_v39, 0.0  ;;  %v7891_v61 = vsel %vm1480_vm2, %v3291_v14, 0.0  ;;  %v3355_v21 = vmul.f32 %v7756_v10, %v3220_v5  ;;  %v9764_v14 = vld [vmem:[#allocation6_spill] sm:$0xff] }
 0x2f7   : > { %v7870_v0 = vpop.xlane.xlu1 %2356  ;;  %v7872_v18 = vpop.xlane.xlu0 %2353  ;;  %5337 = vrsqrt.f32 %v2781_v26  ;;  %v3090_v47 = vmul.f32 %v5324_v8, %v9764_v14  ;;  %v2710_v6 = vmul.f32 0.015625, %v9765_v45  ;;  %v2655_v46 = vmul.f32 0.015625, %v7682_v3  ;;  %v9766_v3 = vld [vmem:[#allocation79_spill] sm:$0xff] }
 0x2f8   : > { %5339 = vrsqrt.f32 %v2780_v34  ;;  %v3154_v23 = vmax.f32 %v3026_v62, 0.0  ;;  %v2839_v17 = vadd.f32 1e-05, %v2711_v57  ;;  %v3290_v5 = vmul.f32 %v7756_v10, %v3155_v11 }
 0x2f9   : > { %v7910_v52 = vsel %vm1480_vm2, %v3356_v38, 0.0  ;;  %5341 = vrsqrt.f32 %v2779_v36  ;;  %v2785_v37 = vadd.f32 1e-05, %v2657_v1  ;;  %v3219_v34 = vmax.f32 %v3091_v32, 0.0  ;;  %v9767_v36 = vld [vmem:[#allocation80_spill] sm:$0xff] }
 0x2fa   : > { %3605 = vadd.xlane.f32.xlu1 %v7811_v54  ;;  %3602 = vadd.xlane.f32.xlu0 %v7816_v7  ;;  %v5326_v54 = vpop.eup %5325  ;;  %v2778_v7 = vadd.f32 1e-05, %v2650_v42  ;;  %v2784_v41 = vadd.f32 1e-05, %v2656_v30  ;;  %v3218_v62 = vmax.f32 %v3090_v47, 0.0  ;;  %v3289_v38 = vmul.f32 %v7756_v10, %v3154_v23 }
 0x2fb   : > { %v7895_v39 = vpop.xlane.xlu1 %2548  ;;  %v7897_v22 = vpop.xlane.xlu0 %2545  ;;  %v3033_v8 = vmul.f32 %v5326_v54, %v9766_v3  ;;  %v2838_v57 = vadd.f32 1e-05, %v2710_v6  ;;  %v2783_v11 = vadd.f32 1e-05, %v2655_v46  ;;  %v2782_v14 = vadd.f32 1e-05, %v2654_v51 }
 0x2fc   : > { %v5328_v48 = vpop.eup %5327  ;;  %5343 = vrsqrt.f32 %v2778_v7  ;;  %v2661_v45 = vmul.f32 0.015625, %v7727_v20  ;;  %v7924_v32 = vsel %vm1480_vm2, %v3290_v5, 0.0  ;;  %v3354_v6 = vmul.f32 %v7756_v10, %v3219_v34  ;;  %v9768_v51 = vld [vmem:[#allocation16_spill] sm:$0xff] }
 0x2fd   : > { %v3032_v1 = vmul.f32 %v5328_v48, %v9767_v36  ;;  %5345 = vrsqrt.f32 %v2839_v17  ;;  %v3161_v47 = vmax.f32 %v3033_v8, 0.0  ;;  %v2716_v23 = vmul.f32 0.015625, %v9768_v51  ;;  %v9770_v17 = vld [vmem:[#allocation83_spill] sm:$0xff]  ;;  %v9772_v36 = vld [vmem:[#allocation84_spill] sm:$0xff] }
 0x2fe   : > { %3431 = vadd.xlane.f32.xlu1 %v7833_v9  ;;  %3428 = vadd.xlane.f32.xlu0 %v7844_v43  ;;  %v7918_v9 = vsel %vm1480_vm2, %v3355_v21, 0.0  ;;  %v5330_v43 = vpop.eup %5329  ;;  %v2717_v21 = vmul.f32 0.015625, %v7553_v31  ;;  %5347 = vrsqrt.f32 %v2785_v37  ;;  %v3353_v20 = vmul.f32 %v7756_v10, %v3218_v62  ;;  %v9771_v8 = vld [vmem:[#allocation7_spill] sm:$0xff] }
 0x2ff   : > { %v7912_v26 = vpop.xlane.xlu1 %2350  ;;  %v7914_v42 = vpop.xlane.xlu0 %2347  ;;  %5349 = vrsqrt.f32 %v2784_v41  ;;  %v2660_v48 = vmul.f32 0.015625, %v7729_v53  ;;  %v3160_v31 = vmax.f32 %v3032_v1, 0.0  ;;  %v2789_v37 = vadd.f32 1e-05, %v2661_v45 }
 0x300   : > { %v5332_v2 = vpop.eup %5331  ;;  %5351 = vrsqrt.f32 %v2783_v11  ;;  %v2659_v3 = vmul.f32 0.015625, %v7768_v4  ;;  %v2845_v41 = vadd.f32 1e-05, %v2717_v21  ;;  %v2658_v62 = vmul.f32 0.015625, %v7770_v15 }
 0x301   : > { %v5334_v54 = vpop.eup %5333  ;;  %v3096_v5 = vmul.f32 %v5332_v2, %v9770_v17  ;;  %5353 = vrsqrt.f32 %v2782_v14  ;;  %v3296_v53 = vmul.f32 %v7756_v10, %v3161_v47  ;;  %v2844_v2 = vadd.f32 1e-05, %v2716_v23 }
 0x302   : > { %3425 = vadd.xlane.f32.xlu1 %v3424_v56  ;;  %3422 = vadd.xlane.f32.xlu0 %v3421_v12  ;;  %v5336_v46 = vpop.eup %5335  ;;  %v9769_v56 = vld [vmem:[#allocation8_spill] sm:$0xff]  ;;  %v3031_v34 = vmul.f32 %v5334_v54, %v9771_v8  ;;  %5355 = vrsqrt.f32 %v2838_v57  ;;  %v3433_v4 = vsel %vm1480_vm2, %v3289_v38, 0.0  ;;  %v7950_v45 = vsel %vm1480_vm2, %v3354_v6, 0.0 }
 0x303   : > { %v7927_v7 = vpop.xlane.xlu1 %2542  ;;  %v7929_v30 = vpop.xlane.xlu0 %2539  ;;  %v3097_v12 = vmul.f32 %v5330_v43, %v9769_v56  ;;  %v3030_v1 = vmul.f32 %v5336_v46, %v9772_v36  ;;  %v7953_v15 = vsel %vm1480_vm2, %v3353_v20, 0.0  ;;  %v3224_v54 = vmax.f32 %v3096_v5, 0.0  ;;  %v9774_v5 = vld [vmem:[#allocation88_spill] sm:$0xff] }
 0x304   : > { %v5338_v14 = vpop.eup %5337  ;;  %5357 = vrsqrt.f32 %v2789_v37  ;;  %v2787_v51 = vadd.f32 1e-05, %v2659_v3  ;;  %v3295_v57 = vmul.f32 %v7756_v10, %v3160_v31  ;;  %v3159_v38 = vmax.f32 %v3031_v34, 0.0 }
 0x305   : > { %v5340_v21 = vpop.eup %5339  ;;  %5359 = vrsqrt.f32 %v2845_v41  ;;  %v2786_v47 = vadd.f32 1e-05, %v2658_v62  ;;  %v3454_v23 = vsel %vm1480_vm2, %v3296_v53, 0.0  ;;  %v3158_v20 = vmax.f32 %v3030_v1, 0.0  ;;  %v9775_v1 = vld [vmem:[#allocation12_spill] sm:$0xff] }
 0x306   : > { %3617 = vadd.xlane.f32.xlu1 %v7878_v16  ;;  %3614 = vadd.xlane.f32.xlu0 %v7881_v63  ;;  %v3225_v16 = vmax.f32 %v3097_v12, 0.0  ;;  %v2788_v63 = vadd.f32 1e-05, %v2660_v48  ;;  %v5342_v56 = vpop.eup %5341  ;;  %5361 = vrsqrt.f32 %v2844_v2  ;;  %v2665_v12 = vmul.f32 0.015625, %v7795_v19  ;;  %v9773_v48 = vld [vmem:[#allocation87_spill] sm:$0xff] }
 0x307   : > { %v7942_v43 = vpop.xlane.xlu1 %2368  ;;  %v7944_v11 = vpop.xlane.xlu0 %2365  ;;  %v2664_v31 = vmul.f32 0.015625, %v7797_v58  ;;  %v3036_v37 = vmul.f32 %v5340_v21, %v9774_v5  ;;  %v3359_v3 = vmul.f32 %v7756_v10, %v3224_v54  ;;  %v2715_v8 = vmul.f32 0.015625, %v7616_v33 }
 0x308   : > { %5363 = vrsqrt.f32 %v2788_v63  ;;  %v2663_v34 = vmul.f32 0.015625, %v7838_v40  ;;  %v3294_v19 = vmul.f32 %v7756_v10, %v3159_v38  ;;  %v2662_v62 = vmul.f32 0.015625, %v7840_v49 }
 0x309   : > { %v5344_v17 = vpop.eup %5343  ;;  %5365 = vrsqrt.f32 %v2787_v51  ;;  %v3293_v36 = vmul.f32 %v7756_v10, %v3158_v20  ;;  %v3035_v33 = vmul.f32 %v5342_v56, %v9775_v1  ;;  %v3451_v40 = vsel %vm1480_vm2, %v3295_v57, 0.0 }
 0x30a   : > { %3443 = vadd.xlane.f32.xlu1 %v7884_v13  ;;  %3440 = vadd.xlane.f32.xlu0 %v7891_v61  ;;  %v3037_v13 = vmul.f32 %v5338_v14, %v9773_v48  ;;  %v3360_v61 = vmul.f32 %v7756_v10, %v3225_v16  ;;  %v5346_v41 = vpop.eup %5345  ;;  %5367 = vrsqrt.f32 %v2786_v47  ;;  %v2793_v16 = vadd.f32 1e-05, %v2665_v12 }
 0x30b   : > { %v7958_v46 = vpop.xlane.xlu1 %2560  ;;  %v7960_v6 = vpop.xlane.xlu0 %2557  ;;  %v2714_v54 = vmul.f32 0.015625, %v7618_v29  ;;  %v2792_v21 = vadd.f32 1e-05, %v2664_v31  ;;  %v3164_v49 = vmax.f32 %v3036_v37, 0.0  ;;  %v2843_v47 = vadd.f32 1e-05, %v2715_v8 }
 0x30c   : > { %v5348_v2 = vpop.eup %5347  ;;  %v7984_v51 = vsel %vm1480_vm2, %v3360_v61, 0.0  ;;  %v2791_v20 = vadd.f32 1e-05, %v2663_v34  ;;  %v3448_v56 = vsel %vm1480_vm2, %v3294_v19, 0.0  ;;  %v7988_v57 = vsel %vm1480_vm2, %v3359_v3, 0.0  ;;  %v9777_v37 = vld [vmem:[#allocation95_spill] sm:$0xff] }
 0x30d   : > { %v5350_v63 = vpop.eup %5349  ;;  %v2790_v48 = vadd.f32 1e-05, %v2662_v62  ;;  %v3445_v61 = vsel %vm1480_vm2, %v3293_v36, 0.0  ;;  %v3163_v31 = vmax.f32 %v3035_v33, 0.0  ;;  %5369 = vrsqrt.f32 %v2793_v16  ;;  %v9779_v36 = vld [vmem:[#allocation17_spill] sm:$0xff]  ;;  %v9780_v16 = vld [vmem:[#allocation103_spill] sm:$0xff] }
 0x30e   : > { %3437 = vadd.xlane.f32.xlu1 %v7924_v32  ;;  %3434 = vadd.xlane.f32.xlu0 %v3433_v4  ;;  %v3165_v32 = vmax.f32 %v3037_v13, 0.0  ;;  %v9776_v4 = vld [vmem:[#allocation11_spill] sm:$0xff]  ;;  %v5352_v38 = vpop.eup %5351  ;;  %v2669_v13 = vmul.f32 0.015625, %v7870_v0  ;;  %v3041_v8 = vmul.f32 %v5348_v2, %v9777_v37  ;;  %5371 = vrsqrt.f32 %v2792_v21  ;;  %v9778_v0 = vld [vmem:[#allocation96_spill] sm:$0xff] }
 0x30f   : > { %v7974_v53 = vpop.xlane.xlu1 %2362  ;;  %v7976_v58 = vpop.xlane.xlu0 %2359  ;;  %v3034_v14 = vmul.f32 %v5344_v17, %v9776_v4  ;;  %v2668_v3 = vmul.f32 0.015625, %v7872_v18  ;;  %v3299_v19 = vmul.f32 %v7756_v10, %v3164_v49  ;;  %v3040_v62 = vmul.f32 %v5350_v63, %v9778_v0  ;;  %v9782_v0 = vld [vmem:[#allocation19_spill] sm:$0xff] }
 0x310   : > { %v5354_v12 = vpop.eup %5353  ;;  %v2842_v1 = vadd.f32 1e-05, %v2714_v54  ;;  %5373 = vrsqrt.f32 %v2791_v20  ;;  %v3039_v33 = vmul.f32 %v5352_v38, %v9779_v36  ;;  %v2797_v4 = vadd.f32 1e-05, %v2669_v13  ;;  %v9781_v20 = vld [vmem:[#allocation10_spill] sm:$0xff] }
 0x311   : > { %v3162_v5 = vmax.f32 %v3034_v14, 0.0  ;;  %v5356_v34 = vpop.eup %5355  ;;  %5375 = vrsqrt.f32 %v2790_v48  ;;  %v2667_v2 = vmul.f32 0.015625, %v7912_v26  ;;  %v3298_v21 = vmul.f32 %v7756_v10, %v3163_v31 }
 0x312   : > { %3455 = vadd.xlane.f32.xlu1 %v3454_v23  ;;  %3452 = vadd.xlane.f32.xlu0 %v3451_v40  ;;  %v3300_v23 = vmul.f32 %v7756_v10, %v3165_v32  ;;  %v3038_v40 = vmul.f32 %v5354_v12, %v9780_v16  ;;  %v5358_v32 = vpop.eup %5357  ;;  %v2666_v54 = vmul.f32 0.015625, %v7914_v42  ;;  %v3169_v38 = vmax.f32 %v3041_v8, 0.0 }
 0x313   : > { %v7991_v29 = vpop.xlane.xlu1 %2554  ;;  %v7993_v17 = vpop.xlane.xlu0 %2551  ;;  %v3297_v49 = vmul.f32 %v7756_v10, %v3162_v5  ;;  %v2796_v48 = vadd.f32 1e-05, %v2668_v3  ;;  %v3463_v13 = vsel %vm1480_vm2, %v3299_v19, 0.0  ;;  %5377 = vrsqrt.f32 %v2843_v47  ;;  %v9783_v3 = vld [vmem:[#allocation9_spill] sm:$0xff] }
 0x314   : > { %v8009_v63 = vpop.eup %5359  ;;  %v3466_v26 = vsel %vm1480_vm2, %v3300_v23, 0.0  ;;  %v3167_v31 = vmax.f32 %v3039_v33, 0.0  ;;  %v3166_v42 = vmax.f32 %v3038_v40, 0.0  ;;  %v3045_v5 = vmul.f32 %v5358_v32, %v9782_v0 }
 0x315   : > { %v8016_v12 = vpop.eup %5361  ;;  %5379 = vrsqrt.f32 %v2797_v4  ;;  %v3460_v23 = vsel %vm1480_vm2, %v3298_v21, 0.0  ;;  %v8027_v19 = vmul.f32 %v5356_v34, %v9783_v3  ;;  %v2794_v47 = vadd.f32 1e-05, %v2666_v54 }
 0x316   : > { %3449 = vadd.xlane.f32.xlu1 %v3448_v56  ;;  %3446 = vadd.xlane.f32.xlu0 %v3445_v61  ;;  %v8014_v56 = vmul.f32 %v5346_v41, %v9781_v20  ;;  %v3168_v61 = vmax.f32 %v3040_v62, 0.0  ;;  %v5364_v37 = vpop.eup %5363  ;;  %v2795_v41 = vadd.f32 1e-05, %v2667_v2  ;;  %v2673_v20 = vmul.f32 0.015625, %v7942_v43  ;;  %v9784_v2 = vld [vmem:[#allocation22_spill] sm:$0xff] }
 0x317   : > { %v8004_v14 = vpop.xlane.xlu1 %2380  ;;  %v8006_v18 = vpop.xlane.xlu0 %2377  ;;  %v3457_v33 = vsel %vm1480_vm2, %v3297_v49, 0.0  ;;  %v3304_v40 = vmul.f32 %v7756_v10, %v3169_v38  ;;  %5381 = vrsqrt.f32 %v2796_v48  ;;  %v2672_v32 = vmul.f32 0.015625, %v7944_v11  ;;  %v9785_v48 = vld [vmem:[#allocation115_spill] sm:$0xff] }
 0x318   : > { %v5366_v8 = vpop.eup %5365  ;;  %v3303_v4 = vmul.f32 %v7756_v10, %v3168_v61  ;;  %5383 = vrsqrt.f32 %v2842_v1  ;;  %v3302_v34 = vmul.f32 %v7756_v10, %v3167_v31  ;;  %v3301_v21 = vmul.f32 %v7756_v10, %v3166_v42  ;;  %v9786_v11 = vld [vmem:[#allocation23_spill] sm:$0xff] }
 0x319   : > { %v5368_v62 = vpop.eup %5367  ;;  %v3173_v54 = vmax.f32 %v3045_v5, 0.0  ;;  %5385 = vrsqrt.f32 %v2795_v41  ;;  %v2671_v43 = vmul.f32 0.015625, %v7974_v53  ;;  %v2801_v61 = vadd.f32 1e-05, %v2673_v20 }
 0x31a   : > { %3467 = vadd.xlane.f32.xlu1 %v3466_v26  ;;  %3464 = vadd.xlane.f32.xlu0 %v3463_v13  ;;  %v3044_v26 = vmul.f32 %v5364_v37, %v9784_v2  ;;  %v3043_v13 = vmul.f32 %v5366_v8, %v9785_v48  ;;  %v3042_v0 = vmul.f32 %v5368_v62, %v9786_v11  ;;  %5387 = vrsqrt.f32 %v2794_v47  ;;  %v9788_v11 = vld [vmem:[#allocation119_spill] sm:$0xff] }
 0x31b   : > { %v8021_v36 = vpop.xlane.xlu1 %2572  ;;  %v8023_v16 = vpop.xlane.xlu0 %2569  ;;  %v2670_v1 = vmul.f32 0.015625, %v7976_v58  ;;  %v3223_v37 = vmax.f32 %v8014_v56, 0.0  ;;  %v2800_v31 = vadd.f32 1e-05, %v2672_v32  ;;  %v3478_v42 = vsel %vm1480_vm2, %v3304_v40, 0.0 }
 0x31c   : > { %v3475_v5 = vsel %vm1480_vm2, %v3303_v4, 0.0  ;;  %v3172_v41 = vmax.f32 %v3044_v26, 0.0  ;;  %v2721_v3 = vmul.f32 0.015625, %v7657_v50  ;;  %v3472_v8 = vsel %vm1480_vm2, %v3302_v34, 0.0  ;;  %v9787_v34 = vld [vmem:[#allocation25_spill] sm:$0xff] }
 0x31d   : > { %v3469_v62 = vsel %vm1480_vm2, %v3301_v21, 0.0  ;;  %v2799_v56 = vadd.f32 1e-05, %v2671_v43  ;;  %v3308_v40 = vmul.f32 %v7756_v10, %v3173_v54  ;;  %v3171_v32 = vmax.f32 %v3043_v13, 0.0  ;;  %v9789_v54 = vld [vmem:[#allocation124_spill] sm:$0xff] }
 0x31e   : > { %3461 = vadd.xlane.f32.xlu1 %v3460_v23  ;;  %3458 = vadd.xlane.f32.xlu0 %v3457_v33  ;;  %v5370_v23 = vpop.eup %5369  ;;  %v3170_v4 = vmax.f32 %v3042_v0, 0.0  ;;  %5389 = vrsqrt.f32 %v2801_v61  ;;  %v2798_v50 = vadd.f32 1e-05, %v2670_v1  ;;  %v2677_v26 = vmul.f32 0.015625, %v8004_v14 }
 0x31f   : > { %v2375_v49 = vpop.xlane.xlu1 %2374  ;;  %v2372_v38 = vpop.xlane.xlu0 %2371  ;;  %v3049_v48 = vmul.f32 %v5370_v23, %v9787_v34  ;;  %5391 = vrsqrt.f32 %v2800_v31  ;;  %v2676_v21 = vmul.f32 0.015625, %v8006_v18  ;;  %v3307_v43 = vmul.f32 %v7756_v10, %v3172_v41  ;;  %v9790_v31 = vld [vmem:[#allocation28_spill] sm:$0xff] }
 0x320   : > { %v5372_v53 = vpop.eup %5371  ;;  %v2675_v58 = vmul.f32 0.015625, %v2375_v49  ;;  %v8060_v0 = vmul.f32 %v7756_v10, %v3223_v37  ;;  %5393 = vrsqrt.f32 %v2799_v56  ;;  %v2674_v14 = vmul.f32 0.015625, %v2372_v38 }
 0x321   : > { %v5374_v47 = vpop.eup %5373  ;;  %v3306_v18 = vmul.f32 %v7756_v10, %v3171_v32  ;;  %5395 = vrsqrt.f32 %v2798_v50  ;;  %v2805_v49 = vadd.f32 1e-05, %v2677_v26  ;;  %v3490_v37 = vsel %vm1480_vm2, %v3308_v40, 0.0 }
 0x322   : > { %3479 = vadd.xlane.f32.xlu1 %v3478_v42  ;;  %3476 = vadd.xlane.f32.xlu0 %v3475_v5  ;;  %v5376_v2 = vpop.eup %5375  ;;  %v3048_v42 = vmul.f32 %v5372_v53, %v9788_v11  ;;  %v2849_v5 = vadd.f32 1e-05, %v2721_v3  ;;  %v3047_v13 = vmul.f32 %v5374_v47, %v9789_v54  ;;  %v3305_v3 = vmul.f32 %v7756_v10, %v3170_v4 }
 0x323   : > { %v8048_v20 = vpop.xlane.xlu1 %2566  ;;  %v8050_v33 = vpop.xlane.xlu0 %2563  ;;  %v3046_v41 = vmul.f32 %v5376_v2, %v9790_v31  ;;  %v3487_v47 = vsel %vm1480_vm2, %v3307_v43, 0.0  ;;  %v2720_v38 = vmul.f32 0.015625, %v7659_v59  ;;  %v2803_v11 = vadd.f32 1e-05, %v2675_v58  ;;  %v9794_v31 = vld [vmem:[#allocation127_spill] sm:$0xff] }
 0x324   : > { %v8062_v61 = vpop.eup %5377  ;;  %v3176_v34 = vmax.f32 %v3048_v42, 0.0  ;;  %5397 = vrsqrt.f32 %v2849_v5  ;;  %v3175_v32 = vmax.f32 %v3047_v13, 0.0  ;;  %v2802_v50 = vadd.f32 1e-05, %v2674_v14 }
 0x325   : > { %v5380_v53 = vpop.eup %5379  ;;  %v3484_v40 = vsel %vm1480_vm2, %v3306_v18, 0.0  ;;  %5399 = vrsqrt.f32 %v2805_v49  ;;  %v3481_v59 = vsel %vm1480_vm2, %v3305_v3, 0.0 }
 0x326   : > { %3473 = vadd.xlane.f32.xlu1 %v3472_v8  ;;  %3470 = vadd.xlane.f32.xlu0 %v3469_v62  ;;  %v3177_v8 = vmax.f32 %v3049_v48, 0.0  ;;  %v2804_v62 = vadd.f32 1e-05, %v2676_v21  ;;  %v5382_v56 = vpop.eup %5381  ;;  %v3174_v48 = vmax.f32 %v3046_v41, 0.0  ;;  %v9793_v21 = vld [vmem:[#allocation29_spill] sm:$0xff]  ;;  %v3311_v14 = vmul.f32 %v7756_v10, %v3176_v34  ;;  %v9795_v41 = vld [vmem:[#allocation92_spill] sm:$0xff] }
 0x327   : > { %v2393_v1 = vpop.xlane.xlu1 %2392  ;;  %v2390_v23 = vpop.xlane.xlu0 %2389  ;;  %v3053_v43 = vmul.f32 %v5380_v53, %v9793_v21  ;;  %v3310_v18 = vmul.f32 %v7756_v10, %v3175_v32 }
 0x328   : > { %v8070_v2 = vpop.eup %5383  ;;  %v2681_v5 = vmul.f32 0.015625, %v2393_v1  ;;  %v3312_v58 = vmul.f32 %v7756_v10, %v3177_v8  ;;  %5401 = vrsqrt.f32 %v2804_v62  ;;  %v2680_v13 = vmul.f32 0.015625, %v2390_v23  ;;  %v9796_v23 = vld [vmem:[#allocation131_spill] sm:$0xff] }
 0x329   : > { %v5386_v42 = vpop.eup %5385  ;;  %5403 = vrsqrt.f32 %v2803_v11  ;;  %v3100_v1 = vmul.f32 %v8016_v12, %v9795_v41  ;;  %v3309_v3 = vmul.f32 %v7756_v10, %v3174_v48  ;;  %v3181_v8 = vmax.f32 %v3053_v43, 0.0 }
 0x32a   : > { %3491 = vadd.xlane.f32.xlu1 %v3490_v37  ;;  %3488 = vadd.xlane.f32.xlu0 %v3487_v47  ;;  %v5388_v54 = vpop.eup %5387  ;;  %v3052_v37 = vmul.f32 %v5382_v56, %v9794_v31  ;;  %v2848_v47 = vadd.f32 1e-05, %v2720_v38  ;;  %5405 = vrsqrt.f32 %v2802_v50  ;;  %v3051_v62 = vmul.f32 %v5386_v42, %v9796_v23  ;;  %v9797_v38 = vld [vmem:[#allocation31_spill] sm:$0xff] }
 0x32b   : > { %v8072_v26 = vpop.xlane.xlu1 %2584  ;;  %v8074_v4 = vpop.xlane.xlu0 %2581  ;;  %v2809_v34 = vadd.f32 1e-05, %v2681_v5  ;;  %v3050_v11 = vmul.f32 %v5388_v54, %v9797_v38  ;;  %v3502_v32 = vsel %vm1480_vm2, %v3312_v58, 0.0  ;;  %v3499_v31 = vsel %vm1480_vm2, %v3311_v14, 0.0  ;;  %v9799_v42 = vld [vmem:[#allocation91_spill] sm:$0xff] }
 0x32c   : > { %9791 = vst [vmem:[#allocation109_spill] sm:$0xff] %v8072_v26  ;;  %9792 = vst [vmem:[#allocation113_spill] sm:$0xff] %v8074_v4  ;;  %v3180_v12 = vmax.f32 %v3052_v37, 0.0  ;;  %5407 = vrsqrt.f32 %v2848_v47  ;;  %v9798_v48 = vmax.f32 %v8027_v19, 0.0  ;;  %v8095_v5 = vmul.f32 %v8009_v63, %v9799_v42 }
 0x32d   : > { %v3496_v14 = vsel %vm1480_vm2, %v3310_v18, 0.0  ;;  %v3179_v37 = vmax.f32 %v3051_v62, 0.0  ;;  %v3228_v47 = vmax.f32 %v3100_v1, 0.0  ;;  %5409 = vrsqrt.f32 %v2809_v34 }
 0x32e   : > { %3485 = vadd.xlane.f32.xlu1 %v3484_v40  ;;  %3482 = vadd.xlane.f32.xlu0 %v3481_v59  ;;  %v5390_v40 = vpop.eup %5389  ;;  %v2808_v59 = vadd.f32 1e-05, %v2680_v13  ;;  %v3357_v43 = vmul.f32 %v7756_v10, %v9798_v48  ;;  %v3316_v19 = vmul.f32 %v7756_v10, %v3181_v8  ;;  %v3178_v23 = vmax.f32 %v3050_v11, 0.0 }
 0x32f   : > { %v2387_v53 = vpop.xlane.xlu1 %2386  ;;  %v2384_v49 = vpop.xlane.xlu0 %2383  ;;  %v3315_v63 = vmul.f32 %v7756_v10, %v3180_v12  ;;  %v8109_v18 = vsel %vm1480_vm2, %v8060_v0, 0.0  ;;  %v3314_v11 = vmul.f32 %v7756_v10, %v3179_v37  ;;  %v8122_v12 = vld [vmem:[%s9072_s3] ss:$0 sm:$0xff] }
 0x330   : > { %v2679_v21 = vmul.f32 0.015625, %v2387_v53  ;;  %v2678_v56 = vmul.f32 0.015625, %v2384_v49  ;;  %v5392_v50 = vpop.eup %5391  ;;  %v3493_v49 = vsel %vm1480_vm2, %v3309_v3, 0.0  ;;  %5411 = vrsqrt.f32 %v2808_v59 }
 0x331   : > { %v5394_v53 = vpop.eup %5393  ;;  %v8112_v1 = vsel %vm1480_vm2, %v3357_v43, 0.0  ;;  %v3229_v3 = vmax.f32 %v8095_v5, 0.0  ;;  %v3363_v0 = vmul.f32 %v8122_v12, %v3228_v47  ;;  %v3313_v48 = vmul.f32 %v8122_v12, %v3178_v23  ;;  %v9805_v43 = vld [vmem:[#allocation37_spill] sm:$0xff]  ;;  %v9806_v47 = vld [vmem:[#allocation14_spill] sm:$0xff] }
 0x332   : > { %v2807_v41 = vadd.f32 1e-05, %v2679_v21  ;;  %3503 = vadd.xlane.f32.xlu1 %v3502_v32  ;;  %3500 = vadd.xlane.f32.xlu0 %v3499_v31  ;;  %v2806_v54 = vadd.f32 1e-05, %v2678_v56  ;;  %v5396_v21 = vpop.eup %5395  ;;  %v9802_v56 = vld [vmem:[#allocation33_spill] sm:$0xff]  ;;  %v9803_v32 = vld [vmem:[#allocation135_spill] sm:$0xff] }
 0x333   : > { %v8097_v13 = vpop.xlane.xlu1 %2578  ;;  %v8099_v58 = vpop.xlane.xlu0 %2575  ;;  %v3057_v38 = vmul.f32 %v5390_v40, %v9802_v56  ;;  %v3056_v31 = vmul.f32 %v5392_v50, %v9803_v32  ;;  %v9804_v40 = vld [vmem:[#allocation38_spill] sm:$0xff]  ;;  %v3054_v42 = vmul.f32 %v5396_v21, %v9805_v43  ;;  %v3511_v10 = vsel %vm1480_vm2, %v3315_v63, 0.0 }
 0x334   : > { %9800 = vst [vmem:[#allocation122_spill] sm:$0xff] %v8097_v13  ;;  %9801 = vst [vmem:[#allocation121_spill] sm:$0xff] %v8099_v58  ;;  %5413 = vrsqrt.f32 %v2807_v41  ;;  %v8115_v8 = vpop.eup %5397  ;;  %v3055_v59 = vmul.f32 %v5394_v53, %v9804_v40  ;;  %v2718_v21 = vmul.f32 0.015625, %v7703_v60  ;;  %v3508_v63 = vsel %vm1480_vm2, %v3314_v11, 0.0  ;;  %v9808_v43 = vld [vmem:[#allocation42_spill] sm:$0xff] }
 0x335   : > { %5415 = vrsqrt.f32 %v2806_v54  ;;  %v5400_v5 = vpop.eup %5399  ;;  %v3514_v54 = vsel %vm1480_vm2, %v3316_v19, 0.0  ;;  %v3184_v37 = vmax.f32 %v3056_v31, 0.0  ;;  %v9807_v31 = vld [vmem:[#allocation13_spill] sm:$0xff] }
 0x336   : > { %3497 = vadd.xlane.f32.xlu1 %v3496_v14  ;;  %3494 = vadd.xlane.f32.xlu0 %v3493_v49  ;;  %v3185_v14 = vmax.f32 %v3057_v38, 0.0  ;;  %v5402_v53 = vpop.eup %5401  ;;  %v2719_v49 = vmul.f32 0.015625, %v7701_v25  ;;  %v3183_v38 = vmax.f32 %v3055_v59, 0.0  ;;  %v3098_v25 = vmul.f32 %v8070_v2, %v9807_v31 }
 0x337   : > { %v2405_v62 = vpop.xlane.xlu1 %2404  ;;  %v2402_v34 = vpop.xlane.xlu0 %2401  ;;  %v8146_v2 = vsel %vm1480_vm2, %v3363_v0, 0.0  ;;  %v3364_v59 = vmul.f32 %v8122_v12, %v3229_v3 }
 0x338   : > { %v2685_v50 = vmul.f32 0.015625, %v2405_v62  ;;  %v2684_v41 = vmul.f32 0.015625, %v2402_v34  ;;  %v3099_v62 = vmul.f32 %v8062_v61, %v9806_v47  ;;  %v5404_v23 = vpop.eup %5403  ;;  %v3061_v61 = vmul.f32 %v5400_v5, %v9808_v43 }
 0x339   : > { %v5406_v40 = vpop.eup %5405  ;;  %v3320_v60 = vmul.f32 %v8122_v12, %v3185_v14  ;;  %v2847_v13 = vadd.f32 1e-05, %v2719_v49  ;;  %v9810_v14 = vld [vmem:[#allocation46_spill] sm:$0xff]  ;;  %v2846_v43 = vadd.f32 1e-05, %v2718_v21 }
 0x33a   : > { %v2813_v56 = vadd.f32 1e-05, %v2685_v50  ;;  %v2812_v32 = vadd.f32 1e-05, %v2684_v41  ;;  %3515 = vadd.xlane.f32.xlu1 %v3514_v54  ;;  %3512 = vadd.xlane.f32.xlu0 %v3511_v10  ;;  %v3505_v50 = vsel %vm1480_vm2, %v3313_v48, 0.0  ;;  %v3182_v41 = vmax.f32 %v3054_v42, 0.0  ;;  %v8149_v48 = vpop.eup %5407 }
 0x33b   : > { %v8133_v34 = vpop.xlane.xlu1 %2596  ;;  %v8135_v19 = vpop.xlane.xlu0 %2593  ;;  %v3319_v54 = vmul.f32 %v8122_v12, %v3184_v37  ;;  %v9809_v10 = vld [vmem:[#allocation41_spill] sm:$0xff]  ;;  %v3227_v11 = vmax.f32 %v3099_v62, 0.0  ;;  %v3526_v3 = vsel %vm1480_vm2, %v3320_v60, 0.0 }
 0x33c   : > { %5417 = vrsqrt.f32 %v2813_v56  ;;  %v3060_v47 = vmul.f32 %v5402_v53, %v9809_v10  ;;  %v3318_v56 = vmul.f32 %v8122_v12, %v3183_v38  ;;  %v9811_v37 = vld [vmem:[#allocation45_spill] sm:$0xff]  ;;  %v3226_v53 = vmax.f32 %v3098_v25, 0.0  ;;  %v5410_v0 = vpop.eup %5409 }
 0x33d   : > { %5419 = vrsqrt.f32 %v2812_v32  ;;  %v3059_v32 = vmul.f32 %v5404_v23, %v9810_v14  ;;  %v3058_v31 = vmul.f32 %v5406_v40, %v9811_v37  ;;  %v3317_v62 = vmul.f32 %v8122_v12, %v3182_v41  ;;  %v5412_v58 = vpop.eup %5411  ;;  %v9813_v37 = vld [vmem:[#allocation49_spill] sm:$0xff] }
 0x33e   : > { %3509 = vadd.xlane.f32.xlu1 %v3508_v63  ;;  %3506 = vadd.xlane.f32.xlu0 %v3505_v50  ;;  %v3189_v50 = vmax.f32 %v3061_v61, 0.0  ;;  %v3523_v10 = vsel %vm1480_vm2, %v3319_v54, 0.0  ;;  %v3188_v4 = vmax.f32 %v3060_v47, 0.0  ;;  %5421 = vrsqrt.f32 %v2847_v13 }
 0x33f   : > { %v2399_v42 = vpop.xlane.xlu1 %2398  ;;  %v2396_v5 = vpop.xlane.xlu0 %2395  ;;  %v3362_v23 = vmul.f32 %v8122_v12, %v3227_v11  ;;  %v2724_v40 = vmul.f32 0.015625, %v7750_v35  ;;  %v3187_v21 = vmax.f32 %v3059_v32, 0.0  ;;  %v3186_v60 = vmax.f32 %v3058_v31, 0.0  ;;  %v9812_v35 = vld [vmem:[#allocation50_spill] sm:$0xff] }
 0x340   : > { %v2683_v49 = vmul.f32 0.015625, %v2399_v42  ;;  %v2682_v63 = vmul.f32 0.015625, %v2396_v5  ;;  %v3361_v54 = vmul.f32 %v8122_v12, %v3226_v53  ;;  %v3520_v13 = vsel %vm1480_vm2, %v3318_v56, 0.0 }
 0x341   : > { %v5414_v25 = vpop.eup %5413  ;;  %v3517_v42 = vsel %vm1480_vm2, %v3317_v62, 0.0  ;;  %v3324_v5 = vmul.f32 %v8122_v12, %v3189_v50  ;;  %v3323_v11 = vmul.f32 %v8122_v12, %v3188_v4  ;;  %v3065_v14 = vmul.f32 %v5410_v0, %v9812_v35  ;;  %v9814_v62 = vld [vmem:[#allocation54_spill] sm:$0xff] }
 0x342   : > { %v2811_v38 = vadd.f32 1e-05, %v2683_v49  ;;  %v2810_v26 = vadd.f32 1e-05, %v2682_v63  ;;  %3527 = vadd.xlane.f32.xlu1 %v3526_v3  ;;  %3524 = vadd.xlane.f32.xlu0 %v3523_v10  ;;  %v5416_v47 = vpop.eup %5415  ;;  %v3064_v49 = vmul.f32 %v5412_v58, %v9813_v37  ;;  %v2725_v32 = vmul.f32 0.015625, %v7748_v28  ;;  %v9815_v58 = vld [vmem:[#allocation53_spill] sm:$0xff] }
 0x343   : > { %v8159_v41 = vpop.xlane.xlu1 %2590  ;;  %v8161_v61 = vpop.xlane.xlu0 %2587  ;;  %v8172_v31 = vsel %vm1480_vm2, %v3362_v23, 0.0  ;;  %v8175_v56 = vsel %vm1480_vm2, %v3364_v59, 0.0  ;;  %v3321_v4 = vmul.f32 %v8122_v12, %v3186_v60  ;;  %v3063_v50 = vmul.f32 %v5414_v25, %v9814_v62  ;;  %v9816_v25 = vld [vmem:[#allocation15_spill] sm:$0xff] }
 0x344   : > { %5423 = vrsqrt.f32 %v2811_v38  ;;  %v3062_v0 = vmul.f32 %v5416_v47, %v9815_v58  ;;  %v8182_v10 = vsel %vm1480_vm2, %v3361_v54, 0.0  ;;  %v3538_v59 = vsel %vm1480_vm2, %v3324_v5, 0.0  ;;  %v9817_v47 = vld [vmem:[#allocation99_spill] sm:$0xff]  ;;  %v9818_v58 = vld [vmem:[#allocation60_spill] sm:$0xff] }
 0x345   : > { %5425 = vrsqrt.f32 %v2810_v26  ;;  %v3322_v26 = vmul.f32 %v8122_v12, %v3187_v21  ;;  %v3535_v23 = vsel %vm1480_vm2, %v3323_v11, 0.0  ;;  %v8192_v54 = vmul.f32 %v8115_v8, %v9817_v47  ;;  %v9819_v8 = vld [vmem:[#allocation59_spill] sm:$0xff] }
 0x346   : > { %5427 = vrsqrt.f32 %v2846_v43  ;;  %3521 = vadd.xlane.f32.xlu1 %v3520_v13  ;;  %3518 = vadd.xlane.f32.xlu0 %v3517_v42  ;;  %v2852_v43 = vadd.f32 1e-05, %v2724_v40  ;;  %v3193_v13 = vmax.f32 %v3065_v14, 0.0  ;;  %v3192_v42 = vmax.f32 %v3064_v49, 0.0 }
 0x347   : > { %v2417_v53 = vpop.xlane.xlu1 %2416  ;;  %v2414_v63 = vpop.xlane.xlu0 %2413  ;;  %v8188_v40 = vmul.f32 %v8149_v48, %v9816_v25  ;;  %v3532_v5 = vsel %vm1480_vm2, %v3322_v26, 0.0  ;;  %v3529_v11 = vsel %vm1480_vm2, %v3321_v4, 0.0  ;;  %v3191_v14 = vmax.f32 %v3063_v50, 0.0 }
 0x348   : > { %v2689_v28 = vmul.f32 0.015625, %v2417_v53  ;;  %v2688_v3 = vmul.f32 0.015625, %v2414_v63  ;;  %v3190_v49 = vmax.f32 %v3062_v0, 0.0  ;;  %v3328_v48 = vmul.f32 %v8122_v12, %v3193_v13 }
 0x349   : > { %v5418_v38 = vpop.eup %5417  ;;  %v3233_v13 = vmax.f32 %v8192_v54, 0.0 }
 0x34a   : > { %v5420_v21 = vpop.eup %5419  ;;  %v2817_v35 = vadd.f32 1e-05, %v2689_v28  ;;  %v2816_v60 = vadd.f32 1e-05, %v2688_v3  ;;  %3539 = vadd.xlane.f32.xlu1 %v3538_v59  ;;  %3536 = vadd.xlane.f32.xlu0 %v3535_v23  ;;  %v3069_v28 = vmul.f32 %v5418_v38, %v9818_v58  ;;  %v3327_v3 = vmul.f32 %v8122_v12, %v3192_v42  ;;  %v9822_v58 = vld [vmem:[#allocation105_spill] sm:$0xff] }
 0x34b   : > { %v2411_v37 = vpop.xlane.xlu1 %2410  ;;  %v2408_v53 = vpop.xlane.xlu0 %2407  ;;  %v3068_v59 = vmul.f32 %v5420_v21, %v9819_v8  ;;  %v2853_v23 = vadd.f32 1e-05, %v2725_v32  ;;  %v3325_v38 = vmul.f32 %v8122_v12, %v3190_v49  ;;  %v3550_v47 = vsel %vm1480_vm2, %v3328_v48, 0.0 }
 0x34c   : > { %5429 = vrsqrt.f32 %v2817_v35  ;;  %v2687_v63 = vmul.f32 0.015625, %v2411_v37  ;;  %v2686_v62 = vmul.f32 0.015625, %v2408_v53  ;;  %v5422_v4 = vpop.eup %5421  ;;  %v3326_v35 = vmul.f32 %v8122_v12, %v3191_v14 }
 0x34d   : > { %5431 = vrsqrt.f32 %v2816_v60  ;;  %v3232_v60 = vmax.f32 %v8188_v40, 0.0  ;;  %v3197_v32 = vmax.f32 %v3069_v28, 0.0  ;;  %v3547_v37 = vsel %vm1480_vm2, %v3327_v3, 0.0  ;;  %v9821_v40 = vld [vmem:[#allocation65_spill] sm:$0xff]  ;;  %v9823_v3 = vld [vmem:[#allocation68_spill] sm:$0xff] }
 0x34e   : > { %5433 = vrsqrt.f32 %v2852_v43  ;;  %v2815_v25 = vadd.f32 1e-05, %v2687_v63  ;;  %v2814_v26 = vadd.f32 1e-05, %v2686_v62  ;;  %3533 = vadd.xlane.f32.xlu1 %v3532_v5  ;;  %3530 = vadd.xlane.f32.xlu0 %v3529_v11  ;;  %v3196_v53 = vmax.f32 %v3068_v59, 0.0  ;;  %v9820_v11 = vld [vmem:[#allocation106_spill] sm:$0xff] }
 0x34f   : > { %v2429_v50 = vpop.xlane.xlu1 %2428  ;;  %v2426_v0 = vpop.xlane.xlu0 %2425  ;;  %v2723_v14 = vmul.f32 0.015625, %v9820_v11  ;;  %v2722_v8 = vmul.f32 0.015625, %v9822_v58  ;;  %v3541_v48 = vsel %vm1480_vm2, %v3325_v38, 0.0  ;;  %v9824_v58 = vld [vmem:[#allocation108_spill] sm:$0xff] }
 0x350   : > { %5435 = vrsqrt.f32 %v2815_v25  ;;  %v2693_v42 = vmul.f32 0.015625, %v2429_v50  ;;  %v2692_v21 = vmul.f32 0.015625, %v2426_v0 }
 0x351   : > { %v5424_v43 = vpop.eup %5423  ;;  %5437 = vrsqrt.f32 %v2814_v26  ;;  %v3544_v26 = vsel %vm1480_vm2, %v3326_v35, 0.0  ;;  %v3367_v35 = vmul.f32 %v8122_v12, %v3232_v60  ;;  %v2850_v38 = vadd.f32 1e-05, %v2722_v8 }
 0x352   : > { %v5426_v5 = vpop.eup %5425  ;;  %v2821_v63 = vadd.f32 1e-05, %v2693_v42  ;;  %v2820_v49 = vadd.f32 1e-05, %v2692_v21  ;;  %3551 = vadd.xlane.f32.xlu1 %v3550_v47  ;;  %3548 = vadd.xlane.f32.xlu0 %v3547_v37  ;;  %v3067_v54 = vmul.f32 %v5424_v43, %v9821_v40  ;;  %v3332_v42 = vmul.f32 %v8122_v12, %v3197_v32 }
 0x353   : > { %v5428_v62 = vpop.eup %5427  ;;  %v2423_v28 = vpop.xlane.xlu1 %2422  ;;  %v3066_v59 = vmul.f32 %v5426_v5, %v9823_v3  ;;  %v3331_v21 = vmul.f32 %v8122_v12, %v3196_v53  ;;  %v2851_v37 = vadd.f32 1e-05, %v2723_v14  ;;  %v3368_v32 = vmul.f32 %v8122_v12, %v3233_v13  ;;  %v9825_v14 = vld [vmem:[#allocation107_spill] sm:$0xff]  ;;  %v9826_v13 = vld [vmem:[#allocation74_spill] sm:$0xff] }
 0x354   : > { %v2420_v25 = vpop.xlane.xlu0 %2419  ;;  %5439 = vrsqrt.f32 %v2821_v63  ;;  %v2691_v50 = vmul.f32 0.015625, %v2423_v28  ;;  %v3195_v43 = vmax.f32 %v3067_v54, 0.0  ;;  %v3102_v28 = vmul.f32 %v5428_v62, %v9824_v58 }
 0x355   : > { %v2690_v0 = vmul.f32 0.015625, %v2420_v25  ;;  %5441 = vrsqrt.f32 %v2820_v49  ;;  %v3194_v47 = vmax.f32 %v3066_v59, 0.0  ;;  %v3562_v49 = vsel %vm1480_vm2, %v3332_v42, 0.0 }
 0x356   : > { %v2819_v11 = vadd.f32 1e-05, %v2691_v50  ;;  %3545 = vadd.xlane.f32.xlu1 %v3544_v26  ;;  %3542 = vadd.xlane.f32.xlu0 %v3541_v48  ;;  %5443 = vrsqrt.f32 %v2853_v23  ;;  %v3103_v54 = vmul.f32 %v5422_v4, %v9825_v14  ;;  %v3559_v26 = vsel %vm1480_vm2, %v3331_v21, 0.0 }
 0x357   : > { %v2818_v40 = vadd.f32 1e-05, %v2690_v0  ;;  %v8215_v5 = vpop.xlane.xlu1 %2602  ;;  %v3330_v23 = vmul.f32 %v8122_v12, %v3195_v43  ;;  %v3329_v60 = vmul.f32 %v8122_v12, %v3194_v47  ;;  %v8226_v3 = vsel %vm1480_vm2, %v3367_v35, 0.0  ;;  %v9827_v0 = vld [vmem:[#allocation73_spill] sm:$0xff] }
 0x358   : > { %v2438_v63 = vpop.xlane.xlu0 %2437  ;;  %5445 = vrsqrt.f32 %v2819_v11  ;;  %v3230_v21 = vmax.f32 %v3102_v28, 0.0  ;;  %v8232_v43 = vsel %vm1480_vm2, %v3368_v32, 0.0  ;;  %v9829_v32 = vld [vmem:[#allocation78_spill] sm:$0xff] }
 0x359   : > { %v2696_v53 = vmul.f32 0.015625, %v2438_v63  ;;  %v5430_v25 = vpop.eup %5429  ;;  %5447 = vrsqrt.f32 %v2818_v40  ;;  %9828 = vst [vmem:[#allocation129_spill] sm:$0xff] %v8232_v43  ;;  %v3231_v40 = vmax.f32 %v3103_v54, 0.0  ;;  %v3556_v35 = vsel %vm1480_vm2, %v3330_v23, 0.0  ;;  %v9831_v23 = vld [vmem:[#allocation77_spill] sm:$0xff] }
 0x35a   : > { %v5432_v8 = vpop.eup %5431  ;;  %5449 = vrsqrt.f32 %v2851_v37  ;;  %3563 = vadd.xlane.f32.xlu1 %v3562_v49  ;;  %3560 = vadd.xlane.f32.xlu0 %v3559_v26  ;;  %v3073_v62 = vmul.f32 %v5430_v25, %v9826_v13  ;;  %v3553_v58 = vsel %vm1480_vm2, %v3329_v60, 0.0  ;;  %v9830_v26 = vld [vmem:[#allocation114_spill] sm:$0xff]  ;;  %v3365_v60 = vmul.f32 %v8122_v12, %v3230_v21 }
 0x35b   : > { %v2824_v48 = vadd.f32 1e-05, %v2696_v53  ;;  %v8228_v59 = vpop.eup %5433  ;;  %5451 = vrsqrt.f32 %v2850_v38  ;;  %v2441_v4 = vpop.xlane.xlu1 %2440  ;;  %v3072_v42 = vmul.f32 %v5432_v8, %v9827_v0  ;;  %v2729_v8 = vmul.f32 0.015625, %v9830_v26 }
 0x35c   : > { %v2432_v50 = vpop.xlane.xlu0 %2431  ;;  %v2697_v47 = vmul.f32 0.015625, %v2441_v4  ;;  %v3201_v11 = vmax.f32 %v3073_v62, 0.0  ;;  %v2728_v4 = vmul.f32 0.015625, %v7822_v55  ;;  %v3366_v55 = vmul.f32 %v8122_v12, %v3231_v40 }
 0x35d   : > { %v2694_v37 = vmul.f32 0.015625, %v2432_v50  ;;  %v5436_v63 = vpop.eup %5435  ;;  %5453 = vrsqrt.f32 %v2824_v48  ;;  %v3200_v53 = vmax.f32 %v3072_v42, 0.0 }
 0x35e   : > { %v5438_v38 = vpop.eup %5437  ;;  %v2825_v49 = vadd.f32 1e-05, %v2697_v47  ;;  %3557 = vadd.xlane.f32.xlu1 %v3556_v35  ;;  %3554 = vadd.xlane.f32.xlu0 %v3553_v58  ;;  %v3336_v28 = vmul.f32 %v8122_v12, %v3201_v11  ;;  %v3071_v25 = vmul.f32 %v5436_v63, %v9829_v32  ;;  %v2732_v35 = vmul.f32 0.015625, %v7897_v22 }
 0x35f   : > { %v2822_v14 = vadd.f32 1e-05, %v2694_v37  ;;  %v2435_v13 = vpop.xlane.xlu1 %2434  ;;  %v3335_v48 = vmul.f32 %v8122_v12, %v3200_v53  ;;  %v3070_v62 = vmul.f32 %v5438_v38, %v9831_v23  ;;  %v9832_v53 = vld [vmem:[#allocation82_spill] sm:$0xff]  ;;  %v2857_v38 = vadd.f32 1e-05, %v2729_v8 }
 0x360   : > { %v8239_v54 = vpop.xlane.xlu0 %2599  ;;  %5455 = vrsqrt.f32 %v2825_v49  ;;  %v2695_v50 = vmul.f32 0.015625, %v2435_v13  ;;  %v3574_v0 = vsel %vm1480_vm2, %v3336_v28, 0.0  ;;  %v3199_v37 = vmax.f32 %v3071_v25, 0.0  ;;  %v9833_v25 = vld [vmem:[#allocation18_spill] sm:$0xff] }
 0x361   : > { %v5440_v42 = vpop.eup %5439  ;;  %5457 = vrsqrt.f32 %v2822_v14  ;;  %v3571_v47 = vsel %vm1480_vm2, %v3335_v48, 0.0  ;;  %v3198_v11 = vmax.f32 %v3070_v62, 0.0  ;;  %v2856_v22 = vadd.f32 1e-05, %v2728_v4  ;;  %v9834_v4 = vld [vmem:[#allocation86_spill] sm:$0xff] }
 0x362   : > { %v5442_v63 = vpop.eup %5441  ;;  %v2823_v58 = vadd.f32 1e-05, %v2695_v50  ;;  %3575 = vadd.xlane.f32.xlu1 %v3574_v0  ;;  %3572 = vadd.xlane.f32.xlu0 %v3571_v47  ;;  %v3077_v21 = vmul.f32 %v5440_v42, %v9832_v53  ;;  %v3334_v14 = vmul.f32 %v8122_v12, %v3199_v37  ;;  %v2733_v48 = vmul.f32 0.015625, %v7895_v39  ;;  %v9835_v39 = vld [vmem:[#allocation112_spill] sm:$0xff] }
 0x363   : > { %v8250_v49 = vpop.xlane.xlu1 %2608  ;;  %v3333_v32 = vmul.f32 %v8122_v12, %v3198_v11  ;;  %v3076_v26 = vmul.f32 %v5442_v63, %v9833_v25  ;;  %v5444_v13 = vpop.eup %5443  ;;  %v8261_v0 = vsel %vm1480_vm2, %v3365_v60, 0.0  ;;  %v2860_v47 = vadd.f32 1e-05, %v2732_v35  ;;  %v9837_v35 = vld [vmem:[#allocation111_spill] sm:$0xff] }
 0x364   : > { %v8252_v28 = vpop.xlane.xlu0 %2605  ;;  %5459 = vrsqrt.f32 %v2823_v58  ;;  %v3205_v23 = vmax.f32 %v3077_v21, 0.0  ;;  %v3568_v40 = vsel %vm1480_vm2, %v3334_v14, 0.0  ;;  %v3108_v63 = vmul.f32 %v8228_v59, %v9835_v39  ;;  %v9836_v14 = vld [vmem:[#allocation85_spill] sm:$0xff] }
 0x365   : > { %v5446_v62 = vpop.eup %5445  ;;  %v3565_v8 = vsel %vm1480_vm2, %v3333_v32, 0.0  ;;  %v3204_v50 = vmax.f32 %v3076_v26, 0.0  ;;  %5461 = vrsqrt.f32 %v2857_v38  ;;  %v3109_v25 = vmul.f32 %v5444_v13, %v9837_v35 }
 0x366   : > { %v5448_v42 = vpop.eup %5447  ;;  %3569 = vadd.xlane.f32.xlu1 %v3568_v40  ;;  %3566 = vadd.xlane.f32.xlu0 %v3565_v8  ;;  %v3340_v37 = vmul.f32 %v8122_v12, %v3205_v23  ;;  %v3075_v11 = vmul.f32 %v5446_v62, %v9834_v4  ;;  %5463 = vrsqrt.f32 %v2856_v22  ;;  %v2861_v23 = vadd.f32 1e-05, %v2733_v48 }
 0x367   : > { %v5450_v58 = vpop.eup %5449  ;;  %v8267_v53 = vpop.xlane.xlu1 %2614  ;;  %v3339_v60 = vmul.f32 %v8122_v12, %v3204_v50  ;;  %v3074_v32 = vmul.f32 %v5448_v42, %v9836_v14  ;;  %v8276_v40 = vsel %vm1480_vm2, %v3366_v55, 0.0  ;;  %v2730_v59 = vmul.f32 0.015625, %v7929_v30 }
 0x368   : > { %v8269_v21 = vpop.xlane.xlu0 %2611  ;;  %v5452_v26 = vpop.eup %5451  ;;  %v3586_v62 = vsel %vm1480_vm2, %v3340_v37, 0.0  ;;  %v3203_v8 = vmax.f32 %v3075_v11, 0.0  ;;  %5465 = vrsqrt.f32 %v2860_v47  ;;  %v2731_v50 = vmul.f32 0.015625, %v7927_v7  ;;  %v9839_v37 = vld [vmem:[#allocation104_spill] sm:$0xff] }
 0x369   : > { %v3583_v38 = vsel %vm1480_vm2, %v3339_v60, 0.0  ;;  %v3202_v4 = vmax.f32 %v3074_v32, 0.0  ;;  %v4051_v13 = vlaneseq  ;;  %v3236_v22 = vmax.f32 %v3108_v63, 0.0  ;;  %v9840_v7 = vld [vmem:[#allocation116_spill] sm:$0xff] }
 0x36a   : > { %v5454_v39 = vpop.eup %5453  ;;  %3587 = vadd.xlane.f32.xlu1 %v3586_v62  ;;  %3584 = vadd.xlane.f32.xlu0 %v3583_v38  ;;  %v3338_v55 = vmul.f32 %v8122_v12, %v3203_v8  ;;  %v3237_v11 = vmax.f32 %v3109_v25, 0.0  ;;  %v2727_v14 = vmul.f32 0.015625, %v7850_v24  ;;  %v2726_v47 = vmul.f32 0.015625, %v7852_v44 }
 0x36b   : > { %v8281_v48 = vpop.xlane.xlu1 %2620  ;;  %v3337_v30 = vmul.f32 %v8122_v12, %v3202_v4  ;;  %v3080_v60 = vmul.f32 %v5454_v39, %v9839_v37  ;;  %5467 = vrsqrt.f32 %v2861_v23  ;;  %v3107_v32 = vmul.f32 %v5450_v58, %v9840_v7  ;;  %v9841_v4 = vld [vmem:[#allocation20_spill] sm:$0xff]  ;;  %v9843_v39 = vld [vmem:[#allocation90_spill] sm:$0xff] }
 0x36c   : > { %9838 = vst [vmem:[#allocation130_spill] sm:$0xff] %v8281_v48  ;;  %v8283_v42 = vpop.xlane.xlu0 %2617  ;;  %v2858_v63 = vadd.f32 1e-05, %v2730_v59  ;;  %v3580_v62 = vsel %vm1480_vm2, %v3338_v55, 0.0  ;;  %v2859_v43 = vadd.f32 1e-05, %v2731_v50  ;;  %v3371_v44 = vmul.f32 %v8122_v12, %v3236_v22 }
 0x36d   : > { %v5456_v35 = vpop.eup %5455  ;;  %v3577_v38 = vsel %vm1480_vm2, %v3337_v30, 0.0  ;;  %v3208_v48 = vmax.f32 %v3080_v60, 0.0  ;;  %v8296_v24 = vand.u32 127, %v4051_v13  ;;  %v9844_v30 = vld [vmem:[#allocation26_spill] sm:$0xff]  ;;  %v8307_v37 = vmul.f32 %v8122_v12, %v3237_v11  ;;  %v9846_v11 = vld [vmem:[#allocation93_spill] sm:$0xff] }
 0x36e   : > { %v5458_v8 = vpop.eup %5457  ;;  %3581 = vadd.xlane.f32.xlu1 %v3580_v62  ;;  %3578 = vadd.xlane.f32.xlu0 %v3577_v38  ;;  %v3081_v25 = vmul.f32 %v5456_v35, %v9841_v4  ;;  %v3106_v50 = vmul.f32 %v5452_v26, %v9844_v30  ;;  %v2855_v60 = vadd.f32 1e-05, %v2727_v14  ;;  %v2854_v7 = vadd.f32 1e-05, %v2726_v47 }
 0x36f   : > { %v8299_v58 = vpop.xlane.xlu1 %2626  ;;  %v3343_v59 = vmul.f32 %v8122_v12, %v3208_v48  ;;  %v3078_v55 = vmul.f32 %v5458_v8, %v9843_v39  ;;  %9845 = vst [vmem:[#allocation118_spill] sm:$0xff] %v8307_v37  ;;  %v3235_v62 = vmax.f32 %v3107_v32, 0.0  ;;  %5469 = vrsqrt.f32 %v2858_v63 }
 0x370   : > { %9842 = vst [vmem:[#allocation136_spill] sm:$0xff] %v8299_v58  ;;  %v8301_v23 = vpop.xlane.xlu0 %2623  ;;  %v3209_v35 = vmax.f32 %v3081_v25, 0.0  ;;  %v8310_v58 = vshrl.u32 %v4051_v13, 7  ;;  %5471 = vrsqrt.f32 %v2859_v43  ;;  %v4071_v48 = vadd.s32 4294967272, %v8296_v24 }
 0x371   : > { %v5460_v38 = vpop.eup %5459  ;;  %v3595_v22 = vsel %vm1480_vm2, %v3343_v59, 0.0  ;;  %v3206_v4 = vmax.f32 %v3078_v55, 0.0  ;;  %v4064_v8 = vadd.s32 4294967280, %v8296_v24  ;;  %v3234_v13 = vmax.f32 %v3106_v50, 0.0 }
 0x372   : > { %3623 = vadd.xlane.f32.xlu1 %v7847_v27  ;;  %3596 = vadd.xlane.f32.xlu0 %v3595_v22  ;;  %v3344_v26 = vmul.f32 %v8122_v12, %v3209_v35  ;;  %v3079_v14 = vmul.f32 %v5460_v38, %v9846_v11  ;;  %v8323_v43 = vsel %vm1480_vm2, %v3371_v44, 0.0  ;;  %v8325_v27 = vpop.eup %5461  ;;  %v2737_v25 = vmul.f32 0.015625, %v7958_v46 }
 0x373   : > { %v8316_v47 = vpop.xlane.xlu1 %2632  ;;  %v3341_v63 = vmul.f32 %v8122_v12, %v3206_v4  ;;  %9849 = vst [vmem:[#allocation126_spill] sm:$0xff] %v8323_v43  ;;  %9850 = vst [vmem:[#allocation125_spill] sm:$0xff] %v8325_v27  ;;  %v4057_v39 = vadd.s32 4294967288, %v8296_v24  ;;  %v3370_v55 = vmul.f32 %v8122_v12, %v3235_v62  ;;  %v8331_v30 = vpop.eup %5463  ;;  %5473 = vrsqrt.f32 %v2855_v60  ;;  %v9856_v43 = vld [vmem:[#allocation34_spill] sm:$0xff] }
 0x374   : > { %9847 = vst [vmem:[#allocation117_spill] sm:$0xff] %v8316_v47  ;;  %v8318_v32 = vpop.xlane.xlu0 %2629  ;;  %v3598_v59 = vsel %vm1480_vm2, %v3344_v26, 0.0  ;;  %9851 = vst [vmem:[#allocation134_spill] sm:$0xff] %v8331_v30  ;;  %v2746_v35 = vmul.f32 0.015625, %v8161_v61  ;;  %v3207_v38 = vmax.f32 %v3079_v14, 0.0  ;;  %5475 = vrsqrt.f32 %v2854_v7  ;;  %v9854_v30 = vld [vmem:[#allocation32_spill] sm:$0xff] }
 0x375   : > { %9848 = vst [vmem:[#allocation137_spill] sm:$0xff] %v8318_v32  ;;  %v3589_v50 = vsel %vm1480_vm2, %v3341_v63, 0.0  ;;  %v2736_v44 = vmul.f32 0.015625, %v7960_v6  ;;  %v8337_v46 = vstv %s8294_s13  ;;  %v8340_v22 = vsub.s32 %v4071_v48, %v8310_v58  ;;  %v5466_v4 = vpop.eup %5465 }
 0x376   : > { %3599 = vadd.xlane.f32.xlu1 %v3598_v59  ;;  %3590 = vadd.xlane.f32.xlu0 %v3589_v50  ;;  %v2747_v62 = vmul.f32 0.015625, %v8159_v41  ;;  %v8344_v60 = vsub.s32 %v4064_v8, %v8310_v58  ;;  %v3342_v11 = vmul.f32 %v8122_v12, %v3207_v38  ;;  %v3369_v7 = vmul.f32 %v8122_v12, %v3234_v13 }
 0x377   : > { %v3420_v26 = vpop.xlane.xlu1 %3419  ;;  %v2865_v6 = vadd.f32 1e-05, %v2737_v25  ;;  %v8349_v14 = vsub.s32 %v4057_v39, %v8310_v58  ;;  %v8353_v48 = vsub.s32 %v8296_v24, %v8310_v58  ;;  %v8356_v63 = vsel %vm1480_vm2, %v3370_v55, 0.0  ;;  %v9853_v25 = vld [vmem:[#allocation110_spill] sm:$0xff] }
 0x378   : > { %v3417_v61 = vpop.xlane.xlu0 %3416  ;;  %9852 = vst [vmem:[#allocation133_spill] sm:$0xff] %v8356_v63  ;;  %v5468_v41 = vpop.eup %5467  ;;  %v2874_v59 = vadd.f32 1e-05, %v2746_v35  ;;  %v3592_v8 = vsel %vm1480_vm2, %v3342_v11, 0.0  ;;  %v4099_v50 = vadd.s32 4294967240, %v8296_v24  ;;  %v4092_v38 = vadd.s32 4294967248, %v8296_v24 }
 0x379   : > { %v2864_v13 = vadd.f32 1e-05, %v2736_v44  ;;  %v4085_v39 = vadd.s32 4294967256, %v8296_v24  ;;  %v4078_v27 = vadd.s32 4294967264, %v8296_v24  ;;  %v8365_v37 = vmul.f32 %v5466_v4, %v9854_v30  ;;  %v9855_v44 = vld [vmem:[#allocation128_spill] sm:$0xff] }
 0x37a   : > { %3593 = vadd.xlane.f32.xlu1 %v3592_v8  ;;  %3620 = vadd.xlane.f32.xlu0 %v9853_v25  ;;  %v2748_v55 = vmul.f32 0.015625, %v8135_v19  ;;  %v2875_v35 = vadd.f32 1e-05, %v2747_v62  ;;  %5477 = vrsqrt.f32 %v2865_v6  ;;  %v8369_v8 = vmul.f32 %v5468_v41, %v9855_v44 }
 0x37b   : > { %v3612_v32 = vpop.xlane.xlu1 %3611  ;;  %v8372_v25 = vsel %vm1480_vm2, %v3369_v7, 0.0  ;;  %v2734_v47 = vmul.f32 0.015625, %v7993_v17  ;;  %5479 = vrsqrt.f32 %v2874_v59  ;;  %v8376_v30 = vsub.s32 %v4099_v50, %v8310_v58 }
 0x37c   : > { %v3609_v11 = vpop.xlane.xlu0 %3608  ;;  %v8379_v19 = vsub.s32 %v4092_v38, %v8310_v58  ;;  %v5470_v4 = vpop.eup %5469  ;;  %5481 = vrsqrt.f32 %v2864_v13  ;;  %v8384_v62 = vsub.s32 %v4085_v39, %v8310_v58  ;;  %v8387_v7 = vsub.s32 %v4078_v27, %v8310_v58 }
 0x37d   : > { %v5472_v6 = vpop.eup %5471  ;;  %v2876_v41 = vadd.f32 1e-05, %v2748_v55  ;;  %5483 = vrsqrt.f32 %v2875_v35  ;;  %v3798_v59 = vadd.f32 %v8337_v46, %v3420_v26  ;;  %v3797_v50 = vadd.f32 %v8337_v46, %v3417_v61 }
 0x37e   : > { %3629 = vadd.xlane.f32.xlu1 %v7950_v45  ;;  %3626 = vadd.xlane.f32.xlu0 %v7953_v15  ;;  %v4127_v39 = vadd.s32 4294967208, %v8296_v24  ;;  %v2735_v44 = vmul.f32 0.015625, %v7991_v29  ;;  %v2862_v17 = vadd.f32 1e-05, %v2734_v47  ;;  %v3114_v55 = vmul.f32 %v5470_v4, %v9856_v43 }
 0x37f   : > { %v3414_v38 = vpop.xlane.xlu1 %3413  ;;  %v4120_v35 = vadd.s32 4294967216, %v8296_v24  ;;  %v2749_v61 = vmul.f32 0.015625, %v8133_v34  ;;  %5485 = vrsqrt.f32 %v2876_v41  ;;  %v4075_v47 = vrot.slane %v3798_v59, %v8340_v22 }
 0x380   : > { %v3411_v13 = vpop.xlane.xlu0 %3410  ;;  %v3796_v45 = vadd.f32 %v8337_v46, %v3414_v38  ;;  %v8399_v26 = vpop.eup %5473  ;;  %v4068_v43 = vrot.slane %v3797_v50, %v8344_v60  ;;  %v3861_v4 = vadd.f32 %v8337_v46, %v3609_v11  ;;  %v3242_v41 = vmax.f32 %v3114_v55, 0.0 }
 0x381   : > { %v3795_v15 = vadd.f32 %v8337_v46, %v3411_v13  ;;  %9857 = vst [vmem:[#allocation139_spill] sm:$0xff] %v8399_v26  ;;  %v9858_v13 = vld [vmem:[#allocation132_spill] sm:$0xff]  ;;  %v8407_v29 = vpop.eup %5475  ;;  %v4113_v59 = vadd.s32 4294967224, %v8296_v24  ;;  %5487 = vrsqrt.f32 %v2862_v17 }
 0x382   : > { %v4061_v63 = vrot.slane %v3796_v45, %v8349_v14  ;;  %3635 = vadd.xlane.f32.xlu1 %v7910_v52  ;;  %3632 = vadd.xlane.f32.xlu0 %v7918_v9  ;;  %v3115_v27 = vmul.f32 %v5472_v6, %v9858_v13  ;;  %v3862_v45 = vadd.f32 %v8337_v46, %v3612_v32  ;;  %v2863_v6 = vadd.f32 1e-05, %v2735_v44 }
 0x383   : > { %v4056_v38 = vrot.slane %v3795_v15, %v8353_v48  ;;  %v3606_v34 = vpop.xlane.xlu1 %3605  ;;  %v2740_v44 = vmul.f32 0.015625, %v8023_v16  ;;  %v4411_v55 = vrot.slane %v3861_v4, %v8344_v60  ;;  %v3377_v16 = vmul.f32 %v8122_v12, %v3242_v41 }
 0x384   : > { %v3603_v26 = vpop.xlane.xlu0 %3602  ;;  %v3860_v52 = vadd.f32 %v8337_v46, %v3606_v34  ;;  %v4416_v34 = vrot.slane %v3862_v45, %v8340_v22  ;;  %5489 = vrsqrt.f32 %v2863_v6  ;;  %v8437_v4 = vsub.s32 %v4127_v39, %v8310_v58 }
 0x385   : > { %v4063_v15 = vsel %vm4062_vm3, %v4061_v63, %v4056_v38  ;;  %v3859_v9 = vadd.f32 %v8337_v46, %v3603_v26  ;;  %v3243_v63 = vmax.f32 %v3115_v27, 0.0  ;;  %v2877_v26 = vadd.f32 1e-05, %v2749_v61 }
 0x386   : > { %v4070_v13 = vsel %vm4069_vm4, %v4068_v43, %v4063_v15  ;;  %v4406_v50 = vrot.slane %v3860_v52, %v8349_v14  ;;  %3641 = vadd.xlane.f32.xlu1 %v8109_v18  ;;  %3638 = vadd.xlane.f32.xlu0 %v8112_v1  ;;  %v4106_v18 = vadd.s32 4294967232, %v8296_v24  ;;  %v8443_v41 = vsub.s32 %v4120_v35, %v8310_v58  ;;  %v9859_v35 = vld [vmem:[#allocation69_spill] sm:$0xff] }
 0x387   : > { %v4402_v11 = vrot.slane %v3859_v9, %v8353_v48  ;;  %v4077_v32 = vsel %vm4076_vm5, %v4075_v47, %v4070_v13  ;;  %v3432_v38 = vpop.xlane.xlu1 %3431  ;;  %v8428_v1 = vpop.eup %5477  ;;  %v2750_v47 = vmul.f32 0.015625, %v8239_v54  ;;  %v3378_v45 = vmul.f32 %v8122_v12, %v3243_v63 }
 0x388   : > { %v3429_v43 = vpop.xlane.xlu0 %3428  ;;  %v5480_v27 = vpop.eup %5479  ;;  %v2868_v54 = vadd.f32 1e-05, %v2740_v44  ;;  %5491 = vrsqrt.f32 %v2877_v26  ;;  %v3802_v44 = vadd.f32 %v8337_v46, %v3432_v38  ;;  %v3697_v26 = vsel %vm1480_vm2, %v3377_v16, 0.0 }
 0x389   : > { %v4407_v15 = vsel %vm4062_vm3, %v4406_v50, %v4402_v11  ;;  %v8440_v52 = vpop.eup %5481  ;;  %v3801_v6 = vadd.f32 %v8337_v46, %v3429_v43  ;;  %v8452_v11 = vsub.s32 %v4106_v18, %v8310_v58  ;;  %v2878_v63 = vadd.f32 1e-05, %v2750_v47 }
 0x38a   : > { %v4412_v17 = vsel %vm4069_vm4, %v4411_v55, %v4407_v15  ;;  %3647 = vadd.xlane.f32.xlu1 %v7984_v51  ;;  %3644 = vadd.xlane.f32.xlu0 %v7988_v57  ;;  %v8446_v51 = vsub.s32 %v4113_v59, %v8310_v58  ;;  %v5484_v57 = vpop.eup %5483  ;;  %v3130_v55 = vmul.f32 %v5480_v27, %v9859_v35  ;;  %v3700_v43 = vsel %vm1480_vm2, %v3378_v45, 0.0  ;;  %v9861_v27 = vld [vmem:[#allocation67_spill] sm:$0xff] }
 0x38b   : > { %v4417_v61 = vsel %vm4076_vm5, %v4416_v34, %v4412_v17  ;;  %v3426_v9 = vpop.xlane.xlu1 %3425  ;;  %v9860_v15 = vmax.f32 %v8365_v37, 0.0  ;;  %5493 = vrsqrt.f32 %v2868_v54  ;;  %v2751_v38 = vmul.f32 0.015625, %v8215_v5 }
 0x38c   : > { %v3423_v13 = vpop.xlane.xlu0 %3422  ;;  %v3800_v39 = vadd.f32 %v8337_v46, %v3426_v9  ;;  %v4155_v16 = vadd.s32 4294967176, %v8296_v24  ;;  %v3131_v9 = vmul.f32 %v5484_v57, %v9861_v27  ;;  %5495 = vrsqrt.f32 %v2878_v63 }
 0x38d   : > { %v3799_v50 = vadd.f32 %v8337_v46, %v3423_v13  ;;  %v3379_v18 = vmul.f32 %v8122_v12, %v9860_v15  ;;  %v5486_v13 = vpop.eup %5485  ;;  %v4103_v12 = vrot.slane %v3802_v44, %v8376_v30  ;;  %v3258_v54 = vmax.f32 %v3130_v55, 0.0 }
 0x38e   : > { %v4089_v59 = vrot.slane %v3800_v39, %v8384_v62  ;;  %3653 = vadd.xlane.f32.xlu1 %v8172_v31  ;;  %3650 = vadd.xlane.f32.xlu0 %v8182_v10  ;;  %v4096_v31 = vrot.slane %v3801_v6, %v8379_v19  ;;  %v4148_v6 = vadd.s32 4294967184, %v8296_v24  ;;  %v4141_v55 = vadd.s32 4294967192, %v8296_v24  ;;  %v5488_v15 = vpop.eup %5487 }
 0x38f   : > { %v4082_v34 = vrot.slane %v3799_v50, %v8387_v7  ;;  %v3618_v47 = vpop.xlane.xlu1 %3617  ;;  %v2739_v50 = vmul.f32 0.015625, %v8048_v20  ;;  %v2752_v27 = vmul.f32 0.015625, %v8252_v28  ;;  %v8492_v20 = vld [vmem:[%s9072_s3] ss:$0 sm:$0xff] }
 0x390   : > { %v3615_v17 = vpop.xlane.xlu0 %3614  ;;  %v3864_v45 = vadd.f32 %v8337_v46, %v3618_v47  ;;  %v2879_v47 = vadd.f32 1e-05, %v2751_v38 }
 0x391   : > { %v4084_v10 = vsel %vm4083_vm6, %v4082_v34, %v4077_v32  ;;  %v3863_v37 = vadd.f32 %v8337_v46, %v3615_v17  ;;  %v8486_v17 = vsub.s32 %v4155_v16, %v8310_v58  ;;  %v5490_v28 = vpop.eup %5489  ;;  %v8503_v38 = vadd.f32 1e-05, %v2739_v50 }
 0x392   : > { %v4091_v5 = vsel %vm4090_vm7, %v4089_v59, %v4084_v10  ;;  %v4426_v39 = vrot.slane %v3864_v45, %v8384_v62  ;;  %3698 = vadd.xlane.f32.xlu1 %v3697_v26  ;;  %3656 = vadd.xlane.f32.xlu0 %v8146_v2  ;;  %v9862_v59 = vld [vmem:[#allocation63_spill] sm:$0xff]  ;;  %v3703_v2 = vsel %vm1480_vm2, %v3379_v18, 0.0  ;;  %v3259_v10 = vmax.f32 %v3131_v9, 0.0 }
 0x393   : > { %v4421_v57 = vrot.slane %v3863_v37, %v8387_v7  ;;  %v4098_v32 = vsel %vm4097_vm8, %v4096_v31, %v4091_v5  ;;  %v3444_v63 = vpop.xlane.xlu1 %3443  ;;  %v3132_v34 = vmul.f32 %v5486_v13, %v9862_v59  ;;  %v3393_v31 = vmul.f32 %v8492_v20, %v3258_v54 }
 0x394   : > { %v3441_v44 = vpop.xlane.xlu0 %3440  ;;  %v4105_v35 = vsel %vm4104_vm9, %v4103_v12, %v4098_v32  ;;  %v8501_v18 = vsub.s32 %v4148_v6, %v8310_v58  ;;  %v8506_v9 = vsub.s32 %v4141_v55, %v8310_v58  ;;  %v9863_v12 = vld [vmem:[#allocation39_spill] sm:$0xff]  ;;  %5497 = vrsqrt.f32 %v2879_v47 }
 0x395   : > { %v4422_v26 = vsel %vm4083_vm6, %v4421_v57, %v4417_v61  ;;  %v2738_v61 = vmul.f32 0.015625, %v8050_v33  ;;  %v3260_v37 = vmax.f32 %v3132_v34, 0.0  ;;  %v3118_v5 = vmul.f32 %v5488_v15, %v9863_v12  ;;  %v5492_v33 = vpop.eup %5491 }
 0x396   : > { %v8496_v13 = vsel %vm4090_vm7, %v4426_v39, %v4422_v26  ;;  %3659 = vadd.xlane.f32.xlu1 %v8175_v56  ;;  %3701 = vadd.xlane.f32.xlu0 %v3700_v43  ;;  %v3805_v56 = vadd.f32 %v8337_v46, %v3441_v44  ;;  %v2880_v39 = vadd.f32 1e-05, %v2752_v27  ;;  %v3806_v57 = vadd.f32 %v8337_v46, %v3444_v63  ;;  %v9865_v27 = vld [vmem:[#allocation64_spill] sm:$0xff] }
 0x397   : > { %v3438_v16 = vpop.xlane.xlu1 %3437  ;;  %v3745_v32 = vsel %vm1480_vm2, %v3393_v31, 0.0  ;;  %v3394_v6 = vmul.f32 %v8492_v20, %v3259_v10  ;;  %v2866_v50 = vadd.f32 1e-05, %v2738_v61  ;;  %v4134_v44 = vadd.s32 4294967200, %v8296_v24 }
 0x398   : > { %v3435_v45 = vpop.xlane.xlu0 %3434  ;;  %v3804_v43 = vadd.f32 %v8337_v46, %v3438_v16  ;;  %v9864_v47 = vmax.f32 %v8369_v8, 0.0  ;;  %v3246_v26 = vmax.f32 %v3118_v5, 0.0  ;;  %v3133_v31 = vmul.f32 %v5492_v33, %v9865_v27  ;;  %v8522_v10 = vpop.eup %5493 }
 0x399   : > { %v3803_v54 = vadd.f32 %v8337_v46, %v3435_v45  ;;  %v2753_v61 = vmul.f32 0.015625, %v8250_v49  ;;  %v4124_v16 = vrot.slane %v3805_v56, %v8443_v41  ;;  %v3395_v24 = vmul.f32 %v8492_v20, %v3260_v37  ;;  %v5496_v5 = vpop.eup %5495 }
 0x39a   : > { %v4117_v55 = vrot.slane %v3804_v43, %v8446_v51  ;;  %3746 = vadd.xlane.f32.xlu1 %v3745_v32  ;;  %3704 = vadd.xlane.f32.xlu0 %v3703_v2  ;;  %v3380_v63 = vmul.f32 %v8492_v20, %v9864_v47  ;;  %5499 = vrsqrt.f32 %v2880_v39  ;;  %v4131_v45 = vrot.slane %v3806_v57, %v8437_v4 }
 0x39b   : > { %v4110_v59 = vrot.slane %v3803_v54, %v8452_v11  ;;  %v3456_v34 = vpop.xlane.xlu1 %3455  ;;  %v3748_v12 = vsel %vm1480_vm2, %v3394_v6, 0.0  ;;  %5501 = vrsqrt.f32 %v2866_v50  ;;  %v8534_v33 = vsub.s32 %v4134_v44, %v8310_v58  ;;  %v9867_v44 = vld [vmem:[#allocation81_spill] sm:$0xff] }
 0x39c   : > { %v3453_v15 = vpop.xlane.xlu0 %3452  ;;  %v3706_v39 = vsel %vm1480_vm2, %v3380_v63, 0.0  ;;  %v3381_v57 = vmul.f32 %v8492_v20, %v3246_v26  ;;  %v3261_v32 = vmax.f32 %v3133_v31, 0.0  ;;  %v2881_v6 = vadd.f32 1e-05, %v2753_v61  ;;  %v9868_v61 = vld [vmem:[#allocation35_spill] sm:$0xff] }
 0x39d   : > { %v4112_v2 = vsel %vm4111_vm10, %v4110_v59, %v4105_v35  ;;  %v9866_v35 = vld [vmem:[#allocation40_spill] sm:$0xff]  ;;  %v2754_v58 = vmul.f32 0.015625, %v8269_v21  ;;  %v3751_v59 = vsel %vm1480_vm2, %v3395_v24, 0.0  ;;  %v3134_v47 = vmul.f32 %v5496_v5, %v9867_v44 }
 0x39e   : > { %v4119_v8 = vsel %vm4118_vm11, %v4117_v55, %v4112_v2  ;;  %3662 = vadd.xlane.f32.xlu1 %v8261_v0  ;;  %3749 = vadd.xlane.f32.xlu0 %v3748_v12  ;;  %v3119_v56 = vmul.f32 %v5490_v28, %v9866_v35  ;;  %v3809_v0 = vadd.f32 %v8337_v46, %v3453_v15  ;;  %v3709_v31 = vsel %vm1480_vm2, %v3381_v57, 0.0 }
 0x39f   : > { %v4126_v49 = vsel %vm4125_vm12, %v4124_v16, %v4119_v8  ;;  %v3450_v37 = vpop.xlane.xlu1 %3449  ;;  %v3810_v28 = vadd.f32 %v8337_v46, %v3456_v34  ;;  %v3120_v34 = vmul.f32 %v8440_v52, %v9868_v61  ;;  %5503 = vrsqrt.f32 %v2881_v6 }
 0x3a0   : > { %v4133_v43 = vsel %vm9308_vm13, %v4131_v45, %v4126_v49  ;;  %v3447_v54 = vpop.xlane.xlu0 %3446  ;;  %v3808_v50 = vadd.f32 %v8337_v46, %v3450_v37  ;;  %v3247_v21 = vmax.f32 %v3119_v56, 0.0  ;;  %v4152_v16 = vrot.slane %v3809_v0, %v8501_v18  ;;  %v9869_v56 = vld [vmem:[#allocation30_spill] sm:$0xff]  ;;  %v9870_v0 = vld [vmem:[#allocation100_spill] sm:$0xff] }
 0x3a1   : > { %v3807_v55 = vadd.f32 %v8337_v46, %v3447_v54  ;;  %v3396_v24 = vmul.f32 %v8492_v20, %v3261_v32  ;;  %v5498_v45 = vpop.eup %5497  ;;  %v2882_v8 = vadd.f32 1e-05, %v2754_v58  ;;  %v4159_v12 = vrot.slane %v3810_v28, %v8486_v17 }
 0x3a2   : > { %v4145_v63 = vrot.slane %v3808_v50, %v8506_v9  ;;  %3752 = vadd.xlane.f32.xlu1 %v3751_v59  ;;  %3707 = vadd.xlane.f32.xlu0 %v3706_v39  ;;  %v3262_v49 = vmax.f32 %v3134_v47, 0.0  ;;  %v2741_v35 = vmul.f32 0.015625, %v8021_v36  ;;  %5505 = vrsqrt.f32 %v8503_v38 }
 0x3a3   : > { %v4138_v26 = vrot.slane %v3807_v55, %v8534_v33  ;;  %v3468_v15 = vpop.xlane.xlu1 %3467  ;;  %v8563_v37 = vmul.f32 %v8407_v29, %v9869_v56  ;;  %v3248_v32 = vmax.f32 %v3120_v34, 0.0  ;;  %v3135_v50 = vmul.f32 %v5498_v45, %v9870_v0 }
 0x3a4   : > { %v3465_v27 = vpop.xlane.xlu0 %3464  ;;  %v3814_v38 = vadd.f32 %v8337_v46, %v3468_v15  ;;  %5507 = vrsqrt.f32 %v2882_v8  ;;  %v3754_v29 = vsel %vm1480_vm2, %v3396_v24, 0.0  ;;  %v3382_v55 = vmul.f32 %v8492_v20, %v3247_v21  ;;  %v9871_v21 = vld [vmem:[#allocation36_spill] sm:$0xff] }
 0x3a5   : > { %v4140_v2 = vsel %vm4139_vm14, %v4138_v26, %v4133_v43  ;;  %v2755_v43 = vmul.f32 0.015625, %v8267_v53  ;;  %v3813_v39 = vadd.f32 %v8337_v46, %v3465_v27  ;;  %v3397_v53 = vmul.f32 %v8492_v20, %v3262_v49  ;;  %v9873_v49 = vld [vmem:[#allocation109_spill] sm:$0xff] }
 0x3a6   : > { %v4147_v5 = vsel %vm4146_vm15, %v4145_v63, %v4140_v2  ;;  %3710 = vadd.xlane.f32.xlu1 %v3709_v31  ;;  %3665 = vadd.xlane.f32.xlu0 %v8276_v40  ;;  %v2869_v28 = vadd.f32 1e-05, %v2741_v35  ;;  %v3238_v47 = vmax.f32 %v8563_v37, 0.0  ;;  %v2756_v15 = vmul.f32 0.015625, %v8283_v42 }
 0x3a7   : > { %v4154_v52 = vsel %vm4153_vm0, %v4152_v16, %v4147_v5  ;;  %v3462_v57 = vpop.xlane.xlu1 %3461  ;;  %v5500_v58 = vpop.eup %5499  ;;  %v2883_v26 = vadd.f32 1e-05, %v2755_v43  ;;  %v4174_v27 = vrot.slane %v3813_v39, %v8344_v60  ;;  %v3121_v34 = vmul.f32 %v8428_v1, %v9871_v21  ;;  %v9878_v21 = vld [vmem:[#allocation130_spill] sm:$0xff] }
 0x3a8   : > { %v8567_v54 = vsel %vm4160_vm1, %v4159_v12, %v4154_v52  ;;  %v3459_v36 = vpop.xlane.xlu0 %3458  ;;  %v3812_v6 = vadd.f32 %v8337_v46, %v3462_v57  ;;  %v5502_v63 = vpop.eup %5501  ;;  %v4179_v16 = vrot.slane %v3814_v38, %v8340_v22  ;;  %v3263_v24 = vmax.f32 %v3135_v50, 0.0  ;;  %v9872_v12 = vld [vmem:[#allocation75_spill] sm:$0xff]  ;;  %v9874_v52 = vld [vmem:[#allocation121_spill] sm:$0xff] }
 0x3a9   : > { %v3811_v40 = vadd.f32 %v8337_v46, %v3459_v36  ;;  %v3757_v8 = vsel %vm1480_vm2, %v3397_v53, 0.0  ;;  %v3712_v42 = vsel %vm1480_vm2, %v3382_v55, 0.0  ;;  %v3136_v5 = vmul.f32 %v5500_v58, %v9872_v12  ;;  %v9876_v53 = vld [vmem:[#allocation113_spill] sm:$0xff] }
 0x3aa   : > { %v4169_v59 = vrot.slane %v3812_v6, %v8349_v14  ;;  %3668 = vadd.xlane.f32.xlu1 %v8226_v3  ;;  %3755 = vadd.xlane.f32.xlu0 %v3754_v29  ;;  %v3383_v3 = vmul.f32 %v8492_v20, %v3248_v32  ;;  %5509 = vrsqrt.f32 %v2869_v28  ;;  %v2745_v35 = vmul.f32 0.015625, %v9873_v49  ;;  %v9875_v32 = vld [vmem:[#allocation47_spill] sm:$0xff] }
 0x3ab   : > { %v4165_v44 = vrot.slane %v3811_v40, %v8353_v48  ;;  %v3480_v31 = vpop.xlane.xlu1 %3479  ;;  %v2742_v1 = vmul.f32 0.015625, %v9874_v52  ;;  %5511 = vrsqrt.f32 %v2883_v26  ;;  %v2884_v43 = vadd.f32 1e-05, %v2756_v15  ;;  %v9880_v52 = vld [vmem:[#allocation76_spill] sm:$0xff] }
 0x3ac   : > { %v3477_v61 = vpop.xlane.xlu0 %3476  ;;  %v3249_v36 = vmax.f32 %v3121_v34, 0.0  ;;  %v3122_v38 = vmul.f32 %v5502_v63, %v9875_v32  ;;  %v3398_v50 = vmul.f32 %v8492_v20, %v3263_v24  ;;  %v5504_v29 = vpop.eup %5503  ;;  %v2744_v55 = vmul.f32 0.015625, %v9876_v53 }
 0x3ad   : > { %v4170_v2 = vsel %vm4062_vm3, %v4169_v59, %v4165_v44  ;;  %v3817_v6 = vadd.f32 %v8337_v46, %v3477_v61  ;;  %v3818_v58 = vadd.f32 %v8337_v46, %v3480_v31  ;;  %v3715_v28 = vsel %vm1480_vm2, %v3383_v3, 0.0 }
 0x3ae   : > { %v4175_v45 = vsel %vm4069_vm4, %v4174_v27, %v4170_v2  ;;  %3758 = vadd.xlane.f32.xlu1 %v3757_v8  ;;  %3713 = vadd.xlane.f32.xlu0 %v3712_v42  ;;  %v3264_v59 = vmax.f32 %v3136_v5, 0.0  ;;  %v2873_v44 = vadd.f32 1e-05, %v2745_v35  ;;  %v2870_v26 = vadd.f32 1e-05, %v2742_v1  ;;  %v9877_v27 = vld [vmem:[#allocation129_spill] sm:$0xff] }
 0x3af   : > { %v4180_v56 = vsel %vm4076_vm5, %v4179_v16, %v4175_v45  ;;  %v3474_v39 = vpop.xlane.xlu1 %3473  ;;  %v5506_v61 = vpop.eup %5505  ;;  %v2757_v34 = vmul.f32 0.015625, %v9878_v21  ;;  %v3384_v24 = vmul.f32 %v8492_v20, %v3249_v36  ;;  %v3250_v31 = vmax.f32 %v3122_v38, 0.0  ;;  %v9879_v45 = vld [vmem:[#allocation43_spill] sm:$0xff] }
 0x3b0   : > { %v3471_v57 = vpop.xlane.xlu0 %3470  ;;  %v3816_v40 = vadd.f32 %v8337_v46, %v3474_v39  ;;  %v8610_v3 = vmul.f32 %v8522_v10, %v9879_v45  ;;  %5513 = vrsqrt.f32 %v2884_v43  ;;  %v4194_v8 = vrot.slane %v3817_v6, %v8379_v19 }
 0x3b1   : > { %v3815_v0 = vadd.f32 %v8337_v46, %v3471_v57  ;;  %v3760_v12 = vsel %vm1480_vm2, %v3398_v50, 0.0  ;;  %v4199_v5 = vrot.slane %v3818_v58, %v8376_v30  ;;  %v3399_v35 = vmul.f32 %v8492_v20, %v3264_v59  ;;  %v5508_v39 = vpop.eup %5507  ;;  %v9881_v57 = vld [vmem:[#allocation122_spill] sm:$0xff] }
 0x3b2   : > { %v4189_v63 = vrot.slane %v3816_v40, %v8384_v62  ;;  %3716 = vadd.xlane.f32.xlu1 %v3715_v28  ;;  %3671 = vadd.xlane.f32.xlu0 %v9877_v27  ;;  %v3137_v1 = vmul.f32 %v5504_v29, %v9880_v52  ;;  %v2743_v36 = vmul.f32 0.015625, %v9881_v57  ;;  %5515 = vrsqrt.f32 %v2870_v26  ;;  %v9884_v52 = vld [vmem:[#allocation136_spill] sm:$0xff]  ;;  %v9886_v57 = vld [vmem:[#allocation27_spill] sm:$0xff] }
 0x3b3   : > { %v4184_v15 = vrot.slane %v3815_v0, %v8387_v7  ;;  %v3492_v16 = vpop.xlane.xlu1 %3491  ;;  %v2885_v32 = vadd.f32 1e-05, %v2757_v34  ;;  %v3718_v0 = vsel %vm1480_vm2, %v3384_v24, 0.0  ;;  %v3385_v50 = vmul.f32 %v8492_v20, %v3250_v31 }
 0x3b4   : > { %v3489_v2 = vpop.xlane.xlu0 %3488  ;;  %v2758_v29 = vmul.f32 0.015625, %v8301_v23  ;;  %v3822_v28 = vadd.f32 %v8337_v46, %v3492_v16  ;;  %v3763_v59 = vsel %vm1480_vm2, %v3399_v35, 0.0  ;;  %v3265_v26 = vmax.f32 %v3137_v1, 0.0 }
 0x3b5   : > { %v4185_v42 = vsel %vm4083_vm6, %v4184_v15, %v4180_v56  ;;  %v9882_v56 = vld [vmem:[#allocation48_spill] sm:$0xff]  ;;  %v3821_v53 = vadd.f32 %v8337_v46, %v3489_v2  ;;  %5517 = vrsqrt.f32 %v2873_v44  ;;  %v2872_v27 = vadd.f32 1e-05, %v2744_v55 }
 0x3b6   : > { %v4190_v49 = vsel %vm4090_vm7, %v4189_v63, %v4185_v42  ;;  %3674 = vadd.xlane.f32.xlu1 %v8372_v25  ;;  %3761 = vadd.xlane.f32.xlu0 %v3760_v12  ;;  %v3123_v43 = vmul.f32 %v5506_v61, %v9882_v56  ;;  %v9883_v63 = vld [vmem:[#allocation24_spill] sm:$0xff]  ;;  %v2871_v34 = vadd.f32 1e-05, %v2743_v36  ;;  %v3721_v31 = vsel %vm1480_vm2, %v3385_v50, 0.0  ;;  %v9887_v36 = vld [vmem:[#allocation139_spill] sm:$0xff] }
 0x3b7   : > { %v4195_v10 = vsel %vm4097_vm8, %v4194_v8, %v4190_v49  ;;  %v3486_v38 = vpop.xlane.xlu1 %3485  ;;  %v3138_v15 = vmul.f32 %v5508_v39, %v9883_v63  ;;  %v5510_v23 = vpop.eup %5509  ;;  %v3252_v45 = vmax.f32 %v8610_v3, 0.0  ;;  %5519 = vrsqrt.f32 %v2885_v32  ;;  %v9885_v39 = vld [vmem:[#allocation133_spill] sm:$0xff] }
 0x3b8   : > { %v4200_v6 = vsel %vm4104_vm9, %v4199_v5, %v4195_v10  ;;  %v3483_v40 = vpop.xlane.xlu0 %3482  ;;  %v3820_v25 = vadd.f32 %v8337_v46, %v3486_v38  ;;  %v3251_v16 = vmax.f32 %v3123_v43, 0.0  ;;  %v5512_v8 = vpop.eup %5511  ;;  %v2886_v42 = vadd.f32 1e-05, %v2758_v29  ;;  %v9888_v29 = vld [vmem:[#allocation21_spill] sm:$0xff] }
 0x3b9   : > { %v3819_v58 = vadd.f32 %v8337_v46, %v3483_v40  ;;  %v4214_v55 = vrot.slane %v3821_v53, %v8443_v41  ;;  %v4219_v12 = vrot.slane %v3822_v28, %v8437_v4  ;;  %v3400_v49 = vmul.f32 %v8492_v20, %v3265_v26 }
 0x3ba   : > { %v4209_v61 = vrot.slane %v3820_v25, %v8446_v51  ;;  %3764 = vadd.xlane.f32.xlu1 %v3763_v59  ;;  %3719 = vadd.xlane.f32.xlu0 %v3718_v0  ;;  %v3266_v35 = vmax.f32 %v3138_v15, 0.0  ;;  %5521 = vrsqrt.f32 %v2872_v27  ;;  %v2759_v1 = vmul.f32 0.015625, %v9884_v52  ;;  %v9889_v27 = vld [vmem:[#allocation126_spill] sm:$0xff] }
 0x3bb   : > { %v4204_v21 = vrot.slane %v3819_v58, %v8452_v11  ;;  %v3504_v2 = vpop.xlane.xlu1 %3503  ;;  %v8647_v10 = vmul.f32 %v9887_v36, %v9886_v57  ;;  %5523 = vrsqrt.f32 %v2871_v34  ;;  %v3386_v38 = vmul.f32 %v8492_v20, %v3251_v16  ;;  %v9892_v16 = vld [vmem:[#allocation137_spill] sm:$0xff]  ;;  %v9893_v52 = vld [vmem:[#allocation94_spill] sm:$0xff] }
 0x3bc   : > { %v3501_v24 = vpop.xlane.xlu0 %3500  ;;  %v3139_v53 = vmul.f32 %v5512_v8, %v9888_v29  ;;  %5525 = vrsqrt.f32 %v2886_v42  ;;  %v3826_v58 = vadd.f32 %v8337_v46, %v3504_v2  ;;  %v3766_v28 = vsel %vm1480_vm2, %v3400_v49, 0.0 }
 0x3bd   : > { %v4205_v44 = vsel %vm4111_vm10, %v4204_v21, %v4200_v6  ;;  %v3387_v6 = vmul.f32 %v8492_v20, %v3252_v45  ;;  %v3825_v40 = vadd.f32 %v8337_v46, %v3501_v24  ;;  %v5514_v25 = vpop.eup %5513  ;;  %v3401_v59 = vmul.f32 %v8492_v20, %v3266_v35  ;;  %v9891_v24 = vld [vmem:[#allocation117_spill] sm:$0xff] }
 0x3be   : > { %v4210_v5 = vsel %vm4118_vm11, %v4209_v61, %v4205_v44  ;;  %3722 = vadd.xlane.f32.xlu1 %v3721_v31  ;;  %3677 = vadd.xlane.f32.xlu0 %v9885_v39  ;;  %v2887_v26 = vadd.f32 1e-05, %v2759_v1  ;;  %v9890_v61 = vld [vmem:[#allocation44_spill] sm:$0xff]  ;;  %v2761_v31 = vmul.f32 0.015625, %v9891_v24  ;;  %v2760_v45 = vmul.f32 0.015625, %v9892_v16 }
 0x3bf   : > { %v4215_v3 = vsel %vm4125_vm12, %v4214_v55, %v4210_v5  ;;  %v3498_v56 = vpop.xlane.xlu1 %3497  ;;  %v3125_v21 = vmul.f32 %v5510_v23, %v9890_v61  ;;  %v5516_v34 = vpop.eup %5515  ;;  %v3724_v42 = vsel %vm1480_vm2, %v3386_v38, 0.0  ;;  %v3373_v55 = vmul.f32 %v8492_v20, %v3238_v47  ;;  %v9894_v47 = vld [vmem:[#allocation58_spill] sm:$0xff]  ;;  %v9896_v61 = vld [vmem:[#allocation123_spill] sm:$0xff] }
 0x3c0   : > { %v4220_v43 = vsel %vm9308_vm13, %v4219_v12, %v4215_v3  ;;  %v3495_v32 = vpop.xlane.xlu0 %3494  ;;  %v3824_v0 = vadd.f32 %v8337_v46, %v3498_v56  ;;  %v4234_v44 = vrot.slane %v3825_v40, %v8501_v18  ;;  %vm4715_vm13 = vcmask 1041409  }
 0x3c1   : > { %v3823_v50 = vadd.f32 %v8337_v46, %v3495_v32  ;;  %v3267_v5 = vmax.f32 %v3139_v53, 0.0  ;;  %v4239_v23 = vrot.slane %v3826_v58, %v8486_v17  ;;  %v3769_v35 = vsel %vm1480_vm2, %v3401_v59, 0.0 }
 0x3c2   : > { %v4229_v63 = vrot.slane %v3824_v0, %v8506_v9  ;;  %3680 = vadd.xlane.f32.xlu1 %v9889_v27  ;;  %3767 = vadd.xlane.f32.xlu0 %v3766_v28  ;;  %v3140_v1 = vmul.f32 %v5514_v25, %v9893_v52  ;;  %5527 = vrsqrt.f32 %v2887_v26  ;;  %v3253_v37 = vmax.f32 %v3125_v21, 0.0  ;;  %v8677_v57 = vpop.eup %5517  ;;  %v9895_v28 = vld [vmem:[#allocation118_spill] sm:$0xff] }
 0x3c3   : > { %v4224_v15 = vrot.slane %v3823_v50, %v8534_v33  ;;  %v3516_v2 = vpop.xlane.xlu1 %3515  ;;  %v3126_v3 = vmul.f32 %v5516_v34, %v9894_v47  ;;  %v2889_v36 = vadd.f32 1e-05, %v2761_v31  ;;  %v2888_v56 = vadd.f32 1e-05, %v2760_v45  ;;  %v9897_v21 = vld [vmem:[#allocation134_spill] sm:$0xff] }
 0x3c4   : > { %v3513_v8 = vpop.xlane.xlu0 %3512  ;;  %v3830_v50 = vadd.f32 %v8337_v46, %v3516_v2  ;;  %v5520_v25 = vpop.eup %5519  ;;  %v3727_v58 = vsel %vm1480_vm2, %v3387_v6, 0.0  ;;  %v3682_v59 = vsel %vm1480_vm2, %v9895_v28, 0.0  ;;  %v3402_v26 = vmul.f32 %v8492_v20, %v3267_v5 }
 0x3c5   : > { %v4225_v12 = vsel %vm4139_vm14, %v4224_v15, %v4220_v43  ;;  %v3829_v32 = vadd.f32 %v8337_v46, %v3513_v8  ;;  %v3685_v27 = vsel %vm1480_vm2, %v3373_v55, 0.0  ;;  %v3112_v34 = vmul.f32 %v9897_v21, %v9896_v61 }
 0x3c6   : > { %v4230_v49 = vsel %vm4146_vm15, %v4229_v63, %v4225_v12  ;;  %3770 = vadd.xlane.f32.xlu1 %v3769_v35  ;;  %3725 = vadd.xlane.f32.xlu0 %v3724_v42  ;;  %v3268_v63 = vmax.f32 %v3140_v1, 0.0  ;;  %5529 = vrsqrt.f32 %v2889_v36  ;;  %v3388_v45 = vmul.f32 %v8492_v20, %v3253_v37  ;;  %v9899_v36 = vld [vmem:[#allocation55_spill] sm:$0xff] }
 0x3c7   : > { %v4235_v39 = vsel %vm4153_vm0, %v4234_v44, %v4230_v49  ;;  %v3510_v38 = vpop.xlane.xlu1 %3509  ;;  %v5522_v24 = vpop.eup %5521  ;;  %v4253_v6 = vrot.slane %v3829_v32, %v8344_v60  ;;  %v3239_v2 = vmax.f32 %v8647_v10, 0.0  ;;  %5531 = vrsqrt.f32 %v2888_v56  ;;  %v9898_v49 = vld [vmem:[#allocation89_spill] sm:$0xff] }
 0x3c8   : > { %v4240_v43 = vsel %vm4160_vm1, %v4239_v23, %v4235_v39  ;;  %v3507_v40 = vpop.xlane.xlu0 %3506  ;;  %v3828_v29 = vadd.f32 %v8337_v46, %v3510_v38  ;;  %v5524_v8 = vpop.eup %5523  ;;  %v4258_v42 = vrot.slane %v3830_v50, %v8340_v22  ;;  %v3254_v55 = vmax.f32 %v3126_v3, 0.0 }
 0x3c9   : > { %v8683_v0 = vsel %vm4715_vm13, %v4240_v43, %v8567_v54  ;;  %v3827_v53 = vadd.f32 %v8337_v46, %v3507_v40  ;;  %v3772_v5 = vsel %vm1480_vm2, %v3402_v26, 0.0  ;;  %v3403_v23 = vmul.f32 %v8492_v20, %v3268_v63  ;;  %v5526_v52 = vpop.eup %5525  ;;  %v9901_v26 = vld [vmem:[#allocation51_spill] sm:$0xff] }
 0x3ca   : > { %v4248_v15 = vrot.slane %v3828_v29, %v8349_v14  ;;  %3728 = vadd.xlane.f32.xlu1 %v3727_v58  ;;  %3683 = vadd.xlane.f32.xlu0 %v3682_v59  ;;  %v3141_v35 = vmul.f32 %v5520_v25, %v9898_v49  ;;  %v3730_v37 = vsel %vm1480_vm2, %v3388_v45, 0.0  ;;  %v3374_v47 = vmul.f32 %v8492_v20, %v3239_v2  ;;  %v9900_v25 = vld [vmem:[#allocation101_spill] sm:$0xff] }
 0x3cb   : > { %v4244_v54 = vrot.slane %v3827_v53, %v8353_v48  ;;  %v3528_v31 = vpop.xlane.xlu1 %3527  ;;  %v3240_v3 = vmax.f32 %v3112_v34, 0.0  ;;  %v3127_v56 = vmul.f32 %v5524_v8, %v9899_v36  ;;  %v3389_v40 = vmul.f32 %v8492_v20, %v3254_v55  ;;  %v9902_v34 = vld [vmem:[#allocation120_spill] sm:$0xff] }
 0x3cc   : > { %v3525_v16 = vpop.xlane.xlu0 %3524  ;;  %v3834_v50 = vadd.f32 %v8337_v46, %v3528_v31  ;;  %v3775_v29 = vsel %vm1480_vm2, %v3403_v23, 0.0  ;;  %v3269_v53 = vmax.f32 %v3141_v35, 0.0  ;;  %v3142_v58 = vmul.f32 %v5526_v52, %v9900_v25 }
 0x3cd   : > { %v4249_v44 = vsel %vm4062_vm3, %v4248_v15, %v4244_v54  ;;  %v3833_v43 = vadd.f32 %v8337_v46, %v3525_v16  ;;  %v3128_v63 = vmul.f32 %v5522_v24, %v9901_v26  ;;  %v3688_v61 = vsel %vm1480_vm2, %v3374_v47, 0.0 }
 0x3ce   : > { %v4254_v12 = vsel %vm4069_vm4, %v4253_v6, %v4249_v44  ;;  %3686 = vadd.xlane.f32.xlu1 %v3685_v27  ;;  %3773 = vadd.xlane.f32.xlu0 %v3772_v5  ;;  %v3375_v21 = vmul.f32 %v8492_v20, %v3240_v3  ;;  %v9903_v6 = vld [vmem:[#allocation125_spill] sm:$0xff]  ;;  %v3733_v2 = vsel %vm1480_vm2, %v3389_v40, 0.0  ;;  %v3255_v8 = vmax.f32 %v3127_v56, 0.0 }
 0x3cf   : > { %v4259_v10 = vsel %vm4076_vm5, %v4258_v42, %v4254_v12  ;;  %v3522_v1 = vpop.xlane.xlu1 %3521  ;;  %v5528_v15 = vpop.eup %5527  ;;  %v3113_v31 = vmul.f32 %v9903_v6, %v9902_v34  ;;  %v4273_v16 = vrot.slane %v3833_v43, %v8379_v19  ;;  %v4278_v42 = vrot.slane %v3834_v50, %v8376_v30 }
 0x3d0   : > { %v3519_v39 = vpop.xlane.xlu0 %3518  ;;  %v3832_v32 = vadd.f32 %v8337_v46, %v3522_v1  ;;  %v3404_v44 = vmul.f32 %v8492_v20, %v3269_v53  ;;  %v3270_v55 = vmax.f32 %v3142_v58, 0.0  ;;  %v3256_v5 = vmax.f32 %v3128_v63, 0.0 }
 0x3d1   : > { %v3831_v38 = vadd.f32 %v8337_v46, %v3519_v39  ;;  %v3241_v52 = vmax.f32 %v3113_v31, 0.0  ;;  %v9905_v39 = vld [vmem:[#allocation102_spill] sm:$0xff]  ;;  %v3390_v43 = vmul.f32 %v8492_v20, %v3255_v8  ;;  %v3691_v40 = vsel %vm1480_vm2, %v3375_v21, 0.0 }
 0x3d2   : > { %v4268_v28 = vrot.slane %v3832_v32, %v8384_v62  ;;  %3776 = vadd.xlane.f32.xlu1 %v3775_v29  ;;  %3731 = vadd.xlane.f32.xlu0 %v3730_v37  ;;  %v3143_v37 = vmul.f32 %v5528_v15, %v9905_v39  ;;  %v3778_v50 = vsel %vm1480_vm2, %v3404_v44, 0.0  ;;  %vm9908_vm13 = vcmask 786112  }
 0x3d3   : > { %v4263_v59 = vrot.slane %v3831_v38, %v8387_v7  ;;  %v3540_v54 = vpop.xlane.xlu1 %3539  ;;  %v5530_v47 = vpop.eup %5529 }
 0x3d4   : > { %v3537_v27 = vpop.xlane.xlu0 %3536  ;;  %v5532_v32 = vpop.eup %5531  ;;  %v3838_v38 = vadd.f32 %v8337_v46, %v3540_v54  ;;  %v3271_v63 = vmax.f32 %v3143_v37, 0.0 }
 0x3d5   : > { %v4264_v45 = vsel %vm4083_vm6, %v4263_v59, %v4259_v10  ;;  %v9904_v10 = vld [vmem:[#allocation52_spill] sm:$0xff]  ;;  %v3837_v3 = vadd.f32 %v8337_v46, %v3537_v27  ;;  %v3376_v59 = vmul.f32 %v8492_v20, %v3241_v52  ;;  %v3736_v27 = vsel %vm1480_vm2, %v3390_v43, 0.0 }
 0x3d6   : > { %v4269_v24 = vsel %vm4090_vm7, %v4268_v28, %v4264_v45  ;;  %3734 = vadd.xlane.f32.xlu1 %v3733_v2  ;;  %3689 = vadd.xlane.f32.xlu0 %v3688_v61  ;;  %v3129_v1 = vmul.f32 %v8677_v57, %v9904_v10  ;;  %v3405_v57 = vmul.f32 %v8492_v20, %v3270_v55  ;;  %v9906_v61 = vld [vmem:[#allocation98_spill] sm:$0xff] }
 0x3d7   : > { %v4274_v12 = vsel %vm4097_vm8, %v4273_v16, %v4269_v24  ;;  %v3534_v23 = vpop.xlane.xlu1 %3533  ;;  %v3391_v28 = vmul.f32 %v8492_v20, %v3256_v5  ;;  %v4293_v15 = vrot.slane %v3837_v3, %v8443_v41  ;;  %v3145_v21 = vmul.f32 %v5530_v47, %v9906_v61  ;;  %v9907_v16 = vld [vmem:[#allocation97_spill] sm:$0xff] }
 0x3d8   : > { %v4279_v49 = vsel %vm4104_vm9, %v4278_v42, %v4274_v12  ;;  %v3531_v35 = vpop.xlane.xlu0 %3530  ;;  %v3836_v36 = vadd.f32 %v8337_v46, %v3534_v23  ;;  %v3257_v26 = vmax.f32 %v3129_v1, 0.0  ;;  %v4298_v34 = vrot.slane %v3838_v38, %v8437_v4 }
 0x3d9   : > { %v3835_v56 = vadd.f32 %v8337_v46, %v3531_v35  ;;  %v3781_v31 = vsel %vm1480_vm2, %v3405_v57, 0.0  ;;  %v3144_v45 = vmul.f32 %v5532_v32, %v9907_v16  ;;  %v3406_v55 = vmul.f32 %v8492_v20, %v3271_v63 }
 0x3da   : > { %v4288_v29 = vrot.slane %v3836_v36, %v8446_v51  ;;  %3692 = vadd.xlane.f32.xlu1 %v3691_v40  ;;  %3779 = vadd.xlane.f32.xlu0 %v3778_v50  ;;  %v3392_v44 = vmul.f32 %v8492_v20, %v3257_v26  ;;  %v3739_v52 = vsel %vm1480_vm2, %v3391_v28, 0.0  ;;  %v3694_v10 = vsel %vm1480_vm2, %v3376_v59, 0.0 }
 0x3db   : > { %v4283_v53 = vrot.slane %v3835_v56, %v8452_v11  ;;  %v3552_v25 = vpop.xlane.xlu1 %3551  ;;  %v3272_v1 = vmax.f32 %v3144_v45, 0.0  ;;  %v3784_v32 = vsel %vm1480_vm2, %v3406_v55, 0.0 }
 0x3dc   : > { %v3549_v58 = vpop.xlane.xlu0 %3548  ;;  %v3842_v35 = vadd.f32 %v8337_v46, %v3552_v25  ;;  %v3742_v36 = vsel %vm1480_vm2, %v3392_v44, 0.0 }
 0x3dd   : > { %v4284_v54 = vsel %vm4111_vm10, %v4283_v53, %v4279_v49  ;;  %v3841_v12 = vadd.f32 %v8337_v46, %v3549_v58  ;;  %v3273_v49 = vmax.f32 %v3145_v21, 0.0  ;;  %v3407_v57 = vmul.f32 %v8492_v20, %v3272_v1 }
 0x3de   : > { %v4289_v6 = vsel %vm4118_vm11, %v4288_v29, %v4284_v54  ;;  %3782 = vadd.xlane.f32.xlu1 %v3781_v31  ;;  %3737 = vadd.xlane.f32.xlu0 %v3736_v27  ;;  %v4318_v40 = vrot.slane %v3842_v35, %v8486_v17 }
 0x3df   : > { %v4294_v2 = vsel %vm4125_vm12, %v4293_v15, %v4289_v6  ;;  %v3546_v8 = vpop.xlane.xlu1 %3545  ;;  %v4313_v56 = vrot.slane %v3841_v12, %v8501_v18  ;;  %v3408_v38 = vmul.f32 %v8492_v20, %v3273_v49  ;;  %v3787_v54 = vsel %vm1480_vm2, %v3407_v57, 0.0 }
 0x3e0   : > { %v4299_v42 = vsel %vm9908_vm13, %v4298_v34, %v4294_v2  ;;  %v3543_v24 = vpop.xlane.xlu0 %3542  ;;  %v3840_v5 = vadd.f32 %v8337_v46, %v3546_v8  ;;  %vm4717_vm13 = vcmask 1042434  }
 0x3e1   : > { %v3839_v23 = vadd.f32 %v8337_v46, %v3543_v24  ;;  %v3790_v20 = vsel %vm1480_vm2, %v3408_v38, 0.0  ;;  %vm9909_vm2 = vcmask 786112  }
 0x3e2   : > { %v4308_v39 = vrot.slane %v3840_v5, %v8506_v9  ;;  %3740 = vadd.xlane.f32.xlu1 %v3739_v52  ;;  %3695 = vadd.xlane.f32.xlu0 %v3694_v10 }
 0x3e3   : > { %v4303_v37 = vrot.slane %v3839_v23, %v8534_v33  ;;  %v3564_v47 = vpop.xlane.xlu1 %3563 }
 0x3e4   : > { %v3561_v3 = vpop.xlane.xlu0 %3560  ;;  %v3846_v59 = vadd.f32 %v8337_v46, %v3564_v47 }
 0x3e5   : > { %v4304_v43 = vsel %vm4139_vm14, %v4303_v37, %v4299_v42  ;;  %v3845_v25 = vadd.f32 %v8337_v46, %v3561_v3 }
 0x3e6   : > { %v4309_v50 = vsel %vm4146_vm15, %v4308_v39, %v4304_v43  ;;  %3743 = vadd.xlane.f32.xlu1 %v3742_v36  ;;  %3785 = vadd.xlane.f32.xlu0 %v3784_v32  ;;  %v4337_v31 = vrot.slane %v3846_v59, %v8340_v22 }
 0x3e7   : > { %v4314_v29 = vsel %vm4153_vm0, %v4313_v56, %v4309_v50  ;;  %v3558_v58 = vpop.xlane.xlu1 %3557  ;;  %v4332_v21 = vrot.slane %v3845_v25, %v8344_v60 }
 0x3e8   : > { %v4319_v53 = vsel %vm4160_vm1, %v4318_v40, %v4314_v29  ;;  %v3555_v28 = vpop.xlane.xlu0 %3554  ;;  %v3844_v26 = vadd.f32 %v8337_v46, %v3558_v58 }
 0x3e9   : > { %v3843_v63 = vadd.f32 %v8337_v46, %v3555_v28  ;;  %v8782_v15 = vsel %vm4717_vm13, %v4319_v53, %v8683_v0  ;;  %vm4719_vm13 = vcmask 1043459  }
 0x3ea   : > { %v4327_v27 = vrot.slane %v3844_v26, %v8349_v14  ;;  %3791 = vadd.xlane.f32.xlu1 %v3790_v20  ;;  %3788 = vadd.xlane.f32.xlu0 %v3787_v54 }
 0x3eb   : > { %v4323_v61 = vrot.slane %v3843_v63, %v8353_v48  ;;  %v3576_v34 = vpop.xlane.xlu1 %3575 }
 0x3ec   : > { %v3573_v6 = vpop.xlane.xlu0 %3572  ;;  %v3850_v55 = vadd.f32 %v8337_v46, %v3576_v34 }
 0x3ed   : > { %v4328_v16 = vsel %vm4062_vm3, %v4327_v27, %v4323_v61  ;;  %v3849_v42 = vadd.f32 %v8337_v46, %v3573_v6 }
 0x3ee   : > { %v4333_v0 = vsel %vm4069_vm4, %v4332_v21, %v4328_v16  ;;  %v4357_v10 = vrot.slane %v3850_v55, %v8376_v30 }
 0x3ef   : > { %v4338_v45 = vsel %vm4076_vm5, %v4337_v31, %v4333_v0  ;;  %v3570_v2 = vpop.xlane.xlu1 %3569  ;;  %v4352_v35 = vrot.slane %v3849_v42, %v8379_v19 }
 0x3f0   : > { %v3567_v8 = vpop.xlane.xlu0 %3566  ;;  %v3848_v24 = vadd.f32 %v8337_v46, %v3570_v2 }
 0x3f1   : > { %v3847_v44 = vadd.f32 %v8337_v46, %v3567_v8 }
 0x3f2   : > { %v4347_v12 = vrot.slane %v3848_v24, %v8384_v62 }
 0x3f3   : > { %v4342_v5 = vrot.slane %v3847_v44, %v8387_v7  ;;  %v3588_v23 = vpop.xlane.xlu1 %3587 }
 0x3f4   : > { %v3585_v49 = vpop.xlane.xlu0 %3584  ;;  %v3854_v32 = vadd.f32 %v8337_v46, %v3588_v23 }
 0x3f5   : > { %v4343_v52 = vsel %vm4083_vm6, %v4342_v5, %v4338_v45  ;;  %v3853_v36 = vadd.f32 %v8337_v46, %v3585_v49 }
 0x3f6   : > { %v4348_v1 = vsel %vm4090_vm7, %v4347_v12, %v4343_v52  ;;  %v4377_v25 = vrot.slane %v3854_v32, %v8437_v4 }
 0x3f7   : > { %v4353_v39 = vsel %vm4097_vm8, %v4352_v35, %v4348_v1  ;;  %v3582_v37 = vpop.xlane.xlu1 %3581  ;;  %v4372_v29 = vrot.slane %v3853_v36, %v8443_v41 }
 0x3f8   : > { %v4358_v47 = vsel %vm4104_vm9, %v4357_v10, %v4353_v39  ;;  %v3579_v3 = vpop.xlane.xlu0 %3578  ;;  %v3852_v56 = vadd.f32 %v8337_v46, %v3582_v37 }
 0x3f9   : > { %v3851_v43 = vadd.f32 %v8337_v46, %v3579_v3 }
 0x3fa   : > { %v4367_v38 = vrot.slane %v3852_v56, %v8446_v51 }
 0x3fb   : > { %v4362_v40 = vrot.slane %v3851_v43, %v8452_v11  ;;  %v3624_v50 = vpop.xlane.xlu1 %3623 }
 0x3fc   : > { %v3597_v57 = vpop.xlane.xlu0 %3596  ;;  %v3866_v27 = vadd.f32 %v8337_v46, %v3624_v50 }
 0x3fd   : > { %v4363_v53 = vsel %vm4111_vm10, %v4362_v40, %v4358_v47  ;;  %v3857_v61 = vadd.f32 %v8337_v46, %v3597_v57 }
 0x3fe   : > { %v4368_v58 = vsel %vm4118_vm11, %v4367_v38, %v4363_v53  ;;  %v4436_v8 = vrot.slane %v3866_v27, %v8376_v30 }
 0x3ff   : > { %v4373_v28 = vsel %vm4125_vm12, %v4372_v29, %v4368_v58  ;;  %v3600_v59 = vpop.xlane.xlu1 %3599  ;;  %v4392_v42 = vrot.slane %v3857_v61, %v8501_v18 }
 0x400   : > { %v4378_v26 = vsel %vm9909_vm2, %v4377_v25, %v4373_v28  ;;  %v3591_v63 = vpop.xlane.xlu0 %3590  ;;  %v3858_v21 = vadd.f32 %v8337_v46, %v3600_v59 }
 0x401   : > { %v3855_v20 = vadd.f32 %v8337_v46, %v3591_v63 }
 0x402   : > { %v4397_v24 = vrot.slane %v3858_v21, %v8486_v17 }
 0x403   : > { %v4382_v54 = vrot.slane %v3855_v20, %v8534_v33  ;;  %v3594_v34 = vpop.xlane.xlu1 %3593 }
 0x404   : > { %v3621_v6 = vpop.xlane.xlu0 %3620  ;;  %v3856_v16 = vadd.f32 %v8337_v46, %v3594_v34 }
 0x405   : > { %v4383_v31 = vsel %vm4139_vm14, %v4382_v54, %v4378_v26  ;;  %v3865_v0 = vadd.f32 %v8337_v46, %v3621_v6 }
 0x406   : > { %v4387_v45 = vrot.slane %v3856_v16, %v8506_v9 }
 0x407   : > { %v4431_v2 = vrot.slane %v3865_v0, %v8379_v19  ;;  %v3630_v44 = vpop.xlane.xlu1 %3629 }
 0x408   : > { %v3627_v55 = vpop.xlane.xlu0 %3626  ;;  %v4388_v12 = vsel %vm4146_vm15, %v4387_v45, %v4383_v31  ;;  %v3868_v23 = vadd.f32 %v8337_v46, %v3630_v44 }
 0x409   : > { %v4432_v5 = vsel %vm4097_vm8, %v4431_v2, %v8496_v13  ;;  %v3867_v49 = vadd.f32 %v8337_v46, %v3627_v55  ;;  %v4393_v35 = vsel %vm4153_vm0, %v4392_v42, %v4388_v12 }
 0x40a   : > { %v4437_v52 = vsel %vm4104_vm9, %v4436_v8, %v4432_v5  ;;  %v4398_v10 = vsel %vm4160_vm1, %v4397_v24, %v4393_v35  ;;  %v4446_v1 = vrot.slane %v3868_v23, %v8446_v51 }
 0x40b   : > { %v4441_v39 = vrot.slane %v3867_v49, %v8452_v11  ;;  %v3636_v37 = vpop.xlane.xlu1 %3635  ;;  %v4720_v3 = vsel %vm4719_vm13, %v4398_v10, %v8782_v15  ;;  %vm4721_vm13 = vcmask 1044484  }
 0x40c   : > { %v3633_v47 = vpop.xlane.xlu0 %3632  ;;  %v3870_v36 = vadd.f32 %v8337_v46, %v3636_v37 }
 0x40d   : > { %v4442_v13 = vsel %vm4111_vm10, %v4441_v39, %v4437_v52  ;;  %v3869_v56 = vadd.f32 %v8337_v46, %v3633_v47 }
 0x40e   : > { %v4447_v43 = vsel %vm4118_vm11, %v4446_v1, %v4442_v13  ;;  %v4456_v32 = vrot.slane %v3870_v36, %v8437_v4 }
 0x40f   : > { %v4451_v38 = vrot.slane %v3869_v56, %v8443_v41  ;;  %v3642_v40 = vpop.xlane.xlu1 %3641 }
 0x410   : > { %v3639_v50 = vpop.xlane.xlu0 %3638  ;;  %v3872_v29 = vadd.f32 %v8337_v46, %v3642_v40 }
 0x411   : > { %v4452_v57 = vsel %vm4125_vm12, %v4451_v38, %v4447_v43  ;;  %v3871_v15 = vadd.f32 %v8337_v46, %v3639_v50 }
 0x412   : > { %v4457_v53 = vsel %vm9909_vm2, %v4456_v32, %v4452_v57  ;;  %v4466_v25 = vrot.slane %v3872_v29, %v8506_v9 }
 0x413   : > { %v4461_v58 = vrot.slane %v3871_v15, %v8534_v33  ;;  %v3648_v28 = vpop.xlane.xlu1 %3647 }
 0x414   : > { %v3645_v59 = vpop.xlane.xlu0 %3644  ;;  %v3874_v63 = vadd.f32 %v8337_v46, %v3648_v28 }
 0x415   : > { %v4462_v26 = vsel %vm4139_vm14, %v4461_v58, %v4457_v53  ;;  %v3873_v20 = vadd.f32 %v8337_v46, %v3645_v59 }
 0x416   : > { %v4467_v54 = vsel %vm4146_vm15, %v4466_v25, %v4462_v26  ;;  %v4476_v27 = vrot.slane %v3874_v63, %v8486_v17 }
 0x417   : > { %v4471_v61 = vrot.slane %v3873_v20, %v8501_v18  ;;  %v3654_v21 = vpop.xlane.xlu1 %3653 }
 0x418   : > { %v3651_v34 = vpop.xlane.xlu0 %3650  ;;  %v3876_v31 = vadd.f32 %v8337_v46, %v3654_v21 }
 0x419   : > { %v4472_v6 = vsel %vm4153_vm0, %v4471_v61, %v4467_v54  ;;  %v3875_v16 = vadd.f32 %v8337_v46, %v3651_v34 }
 0x41a   : > { %v4477_v0 = vsel %vm4160_vm1, %v4476_v27, %v4472_v6  ;;  %v4485_v45 = vrot.slane %v3876_v31, %v8349_v14 }
 0x41b   : > { %v4481_v2 = vrot.slane %v3875_v16, %v8353_v48  ;;  %v8865_v8 = vsel %vm4721_vm13, %v4477_v0, %v4720_v3  ;;  %v3699_v42 = vpop.xlane.xlu1 %3698 }
 0x41c   : > { %v3657_v24 = vpop.xlane.xlu0 %3656  ;;  %v3891_v12 = vadd.f32 %v8337_v46, %v3699_v42 }
 0x41d   : > { %v4486_v44 = vsel %vm4062_vm3, %v4485_v45, %v4481_v2  ;;  %v3877_v55 = vadd.f32 %v8337_v46, %v3657_v24 }
 0x41e   : > { %v4560_v1 = vrot.slane %v3891_v12, %v8353_v48 }
 0x41f   : > { %v4490_v5 = vrot.slane %v3877_v55, %v8344_v60  ;;  %v3660_v23 = vpop.xlane.xlu1 %3659 }
 0x420   : > { %v3702_v49 = vpop.xlane.xlu0 %3701  ;;  %v3878_v52 = vadd.f32 %v8337_v46, %v3660_v23 }
 0x421   : > { %v4491_v35 = vsel %vm4069_vm4, %v4490_v5, %v4486_v44  ;;  %v3892_v10 = vadd.f32 %v8337_v46, %v3702_v49 }
 0x422   : > { %v4495_v39 = vrot.slane %v3878_v52, %v8340_v22 }
 0x423   : > { %v4564_v37 = vrot.slane %v3892_v10, %v8349_v14  ;;  %v3747_v47 = vpop.xlane.xlu1 %3746 }
 0x424   : > { %v3705_v3 = vpop.xlane.xlu0 %3704  ;;  %v4496_v13 = vsel %vm4076_vm5, %v4495_v39, %v4491_v35  ;;  %v3907_v24 = vadd.f32 %v8337_v46, %v3747_v47 }
 0x425   : > { %v4565_v36 = vsel %vm4062_vm3, %v4564_v37, %v4560_v1  ;;  %v3893_v56 = vadd.f32 %v8337_v46, %v3705_v3 }
 0x426   : > { %v4639_v39 = vrot.slane %v3907_v24, %v8353_v48 }
 0x427   : > { %v4569_v43 = vrot.slane %v3893_v56, %v8344_v60  ;;  %v3663_v32 = vpop.xlane.xlu1 %3662 }
 0x428   : > { %v3750_v38 = vpop.xlane.xlu0 %3749  ;;  %v3879_v2 = vadd.f32 %v8337_v46, %v3663_v32 }
 0x429   : > { %v4570_v40 = vsel %vm4069_vm4, %v4569_v43, %v4565_v36  ;;  %v3908_v42 = vadd.f32 %v8337_v46, %v3750_v38 }
 0x42a   : > { %v4500_v23 = vrot.slane %v3879_v2, %v8387_v7 }
 0x42b   : > { %v3753_v50 = vpop.xlane.xlu1 %3752  ;;  %v4643_v49 = vrot.slane %v3908_v42, %v8349_v14 }
 0x42c   : > { %v3708_v57 = vpop.xlane.xlu0 %3707  ;;  %v3909_v44 = vadd.f32 %v8337_v46, %v3753_v50  ;;  %v4501_v32 = vsel %vm4083_vm6, %v4500_v23, %v4496_v13 }
 0x42d   : > { %v3894_v55 = vadd.f32 %v8337_v46, %v3708_v57  ;;  %v4644_v38 = vsel %vm4062_vm3, %v4643_v49, %v4639_v39  ;;  %vm4723_vm3 = vcmask 1045509  }
 0x42e   : > { %v4648_v37 = vrot.slane %v3909_v44, %v8344_v60 }
 0x42f   : > { %v3711_v29 = vpop.xlane.xlu1 %3710  ;;  %v4574_v36 = vrot.slane %v3894_v55, %v8340_v22 }
 0x430   : > { %v3666_v15 = vpop.xlane.xlu0 %3665  ;;  %v3895_v52 = vadd.f32 %v8337_v46, %v3711_v29 }
 0x431   : > { %v3880_v35 = vadd.f32 %v8337_v46, %v3666_v15 }
 0x432   : > { %v4579_v60 = vrot.slane %v3895_v52, %v8387_v7 }
 0x433   : > { %v3669_v53 = vpop.xlane.xlu1 %3668  ;;  %v4505_v50 = vrot.slane %v3880_v35, %v8384_v62 }
 0x434   : > { %v3756_v25 = vpop.xlane.xlu0 %3755  ;;  %v3881_v10 = vadd.f32 %v8337_v46, %v3669_v53  ;;  %v4649_v53 = vsel %vm4069_vm4, %v4648_v37, %v4644_v38  ;;  %vm4725_vm4 = vcmask 1046534  }
 0x435   : > { %v3910_v1 = vadd.f32 %v8337_v46, %v3756_v25 }
 0x436   : > { %v4510_v57 = vrot.slane %v3881_v10, %v8379_v19 }
 0x437   : > { %v3759_v58 = vpop.xlane.xlu1 %3758  ;;  %v4653_v29 = vrot.slane %v3910_v1, %v8340_v22 }
 0x438   : > { %v3714_v28 = vpop.xlane.xlu0 %3713  ;;  %v3911_v47 = vadd.f32 %v8337_v46, %v3759_v58 }
 0x439   : > { %v3896_v3 = vadd.f32 %v8337_v46, %v3714_v28  ;;  %v4575_v28 = vsel %vm4076_vm5, %v4574_v36, %v4570_v40  ;;  %v4654_v55 = vsel %vm4076_vm5, %v4653_v29, %v4649_v53  ;;  %vm9910_vm5 = vmmov %vm9909_vm2 }
 0x43a   : > { %v4658_v25 = vrot.slane %v3911_v47, %v8387_v7 }
 0x43b   : > { %v3717_v59 = vpop.xlane.xlu1 %3716  ;;  %v4584_v13 = vrot.slane %v3896_v3, %v8384_v62 }
 0x43c   : > { %v3672_v26 = vpop.xlane.xlu0 %3671  ;;  %v3897_v14 = vadd.f32 %v8337_v46, %v3717_v59 }
 0x43d   : > { %v3882_v48 = vadd.f32 %v8337_v46, %v3672_v26 }
 0x43e   : > { %v4589_v59 = vrot.slane %v3897_v14, %v8379_v19 }
 0x43f   : > { %v3675_v63 = vpop.xlane.xlu1 %3674  ;;  %v4515_v24 = vrot.slane %v3882_v48, %v8376_v30 }
 0x440   : > { %v3762_v20 = vpop.xlane.xlu0 %3761  ;;  %v3883_v15 = vadd.f32 %v8337_v46, %v3675_v63  ;;  %v4506_v63 = vsel %vm4090_vm7, %v4505_v50, %v4501_v32 }
 0x441   : > { %v3912_v58 = vadd.f32 %v8337_v46, %v3762_v20  ;;  %v4580_v20 = vsel %vm4083_vm6, %v4579_v60, %v4575_v28  ;;  %v4511_v40 = vsel %vm4097_vm8, %v4510_v57, %v4506_v63 }
 0x442   : > { %v4585_v23 = vsel %vm4090_vm7, %v4584_v13, %v4580_v20  ;;  %v4516_v37 = vsel %vm4104_vm9, %v4515_v24, %v4511_v40 }
 0x443   : > { %v3765_v54 = vpop.xlane.xlu1 %3764  ;;  %v4663_v49 = vrot.slane %v3912_v58, %v8384_v62 }
 0x444   : > { %v3720_v27 = vpop.xlane.xlu0 %3719  ;;  %v3913_v26 = vadd.f32 %v8337_v46, %v3765_v54  ;;  %v4520_v54 = vrot.slane %v3883_v15, %v8452_v11 }
 0x445   : > { %v3898_v2 = vadd.f32 %v8337_v46, %v3720_v27  ;;  %v4659_v27 = vsel %vm4083_vm6, %v4658_v25, %v4654_v55  ;;  %vm9911_vm6 = vmmov %vm9909_vm2 }
 0x446   : > { %v4664_v14 = vsel %vm4090_vm7, %v4663_v49, %v4659_v27  ;;  %vm9912_vm7 = vmmov %vm9909_vm2 }
 0x447   : > { %v3723_v61 = vpop.xlane.xlu1 %3722  ;;  %v4594_v52 = vrot.slane %v3898_v2, %v8376_v30 }
 0x448   : > { %v3678_v21 = vpop.xlane.xlu0 %3677  ;;  %v3899_v7 = vadd.f32 %v8337_v46, %v3723_v61  ;;  %v4590_v61 = vsel %vm4097_vm8, %v4589_v59, %v4585_v23 }
 0x449   : > { %v3884_v44 = vadd.f32 %v8337_v46, %v3678_v21  ;;  %v4668_v21 = vrot.slane %v3913_v26, %v8379_v19  ;;  %v4595_v48 = vsel %vm4104_vm9, %v4594_v52, %v4590_v61 }
 0x44a   : > { %v4599_v47 = vrot.slane %v3899_v7, %v8452_v11 }
 0x44b   : > { %v3681_v34 = vpop.xlane.xlu1 %3680  ;;  %v4525_v3 = vrot.slane %v3884_v44, %v8446_v51 }
 0x44c   : > { %v8882_v6 = vpop.xlane.xlu0 %3767  ;;  %v3885_v35 = vadd.f32 %v8337_v46, %v3681_v34  ;;  %v4521_v34 = vsel %vm4111_vm10, %v4520_v54, %v4516_v37  ;;  %v4600_v57 = vsel %vm4111_vm10, %v4599_v47, %v4595_v48 }
 0x44d   : > { %v3914_v36 = vadd.f32 %v8337_v46, %v8882_v6  ;;  %v4526_v29 = vsel %vm4118_vm11, %v4525_v3, %v4521_v34 }
 0x44e   : > { %v4530_v32 = vrot.slane %v3885_v35, %v8443_v41 }
 0x44f   : > { %v8884_v31 = vpop.xlane.xlu1 %3770  ;;  %v4673_v53 = vrot.slane %v3914_v36, %v8376_v30 }
 0x450   : > { %v3726_v16 = vpop.xlane.xlu0 %3725  ;;  %v3915_v38 = vadd.f32 %v8337_v46, %v8884_v31  ;;  %v4531_v28 = vsel %vm4125_vm12, %v4530_v32, %v4526_v29 }
 0x451   : > { %v3900_v10 = vadd.f32 %v8337_v46, %v3726_v16 }
 0x452   : > { %v4678_v59 = vrot.slane %v3915_v38, %v8452_v11 }
 0x453   : > { %v8886_v0 = vpop.xlane.xlu1 %3728  ;;  %v4604_v6 = vrot.slane %v3900_v10, %v8446_v51 }
 0x454   : > { %v3684_v45 = vpop.xlane.xlu0 %3683  ;;  %v3901_v19 = vadd.f32 %v8337_v46, %v8886_v0 }
 0x455   : > { %v3886_v62 = vadd.f32 %v8337_v46, %v3684_v45  ;;  %v4669_v45 = vsel %vm4097_vm8, %v4668_v21, %v4664_v14  ;;  %vm4727_vm8 = vcmask 1047559  }
 0x456   : > { %v4609_v25 = vrot.slane %v3901_v19, %v8443_v41 }
 0x457   : > { %v3687_v12 = vpop.xlane.xlu1 %3686  ;;  %v4535_v15 = vrot.slane %v3886_v62, %v8437_v4 }
 0x458   : > { %v8893_v5 = vpop.xlane.xlu0 %3773  ;;  %v3887_v16 = vadd.f32 %v8337_v46, %v3687_v12 }
 0x459   : > { %v3916_v30 = vadd.f32 %v8337_v46, %v8893_v5  ;;  %v4536_v11 = vsel %vm9910_vm5, %v4535_v15, %v4531_v28 }
 0x45a   : > { %v4540_v13 = vrot.slane %v3887_v16, %v8534_v33 }
 0x45b   : > { %v8907_v56 = vpop.xlane.xlu1 %3776  ;;  %v4683_v35 = vrot.slane %v3916_v30, %v8446_v51  ;;  %v4674_v51 = vsel %vm4104_vm9, %v4673_v53, %v4669_v45 }
 0x45c   : > { %v3732_v43 = vpop.xlane.xlu0 %3731  ;;  %v4541_v55 = vsel %vm4139_vm14, %v4540_v13, %v4536_v11  ;;  %v4679_v36 = vsel %vm4111_vm10, %v4678_v59, %v4674_v51 }
 0x45d   : > { %v3902_v31 = vadd.f32 %v8337_v46, %v3732_v43  ;;  %v4605_v43 = vsel %vm4118_vm11, %v4604_v6, %v4600_v57  ;;  %v4684_v32 = vsel %vm4118_vm11, %v4683_v35, %v4679_v36 }
 0x45e   : > { %v4610_v40 = vsel %vm4125_vm12, %v4609_v25, %v4605_v43 }
 0x45f   : > { %v3735_v42 = vpop.xlane.xlu1 %3734  ;;  %v4614_v7 = vrot.slane %v3902_v31, %v8437_v4 }
 0x460   : > { %v3690_v22 = vpop.xlane.xlu0 %3689  ;;  %v3903_v58 = vadd.f32 %v8337_v46, %v3735_v42 }
 0x461   : > { %v3888_v50 = vadd.f32 %v8337_v46, %v3690_v22  ;;  %v3917_v22 = vadd.f32 %v8337_v46, %v8907_v56 }
 0x462   : > { %v4619_v5 = vrot.slane %v3903_v58, %v8534_v33 }
 0x463   : > { %v3693_v1 = vpop.xlane.xlu1 %3692  ;;  %v4545_v26 = vrot.slane %v3888_v50, %v8506_v9  ;;  %v4688_v61 = vrot.slane %v3917_v22, %v8443_v41 }
 0x464   : > { %v3780_v39 = vpop.xlane.xlu0 %3779  ;;  %v3889_v0 = vadd.f32 %v8337_v46, %v3693_v1 }
 0x465   : > { %v3918_v56 = vadd.f32 %v8337_v46, %v3780_v39  ;;  %v4546_v54 = vsel %vm4146_vm15, %v4545_v26, %v4541_v55  ;;  %v4615_v39 = vsel %vm9911_vm6, %v4614_v7, %v4610_v40 }
 0x466   : > { %v4550_v42 = vrot.slane %v3889_v0, %v8501_v18  ;;  %v4620_v41 = vsel %vm4139_vm14, %v4619_v5, %v4615_v39 }
 0x467   : > { %v3783_v60 = vpop.xlane.xlu1 %3782  ;;  %v4693_v62 = vrot.slane %v3918_v56, %v8437_v4 }
 0x468   : > { %v3738_v12 = vpop.xlane.xlu0 %3737  ;;  %v3919_v27 = vadd.f32 %v8337_v46, %v3783_v60  ;;  %v4551_v21 = vsel %vm4153_vm0, %v4550_v42, %v4546_v54 }
 0x469   : > { %v3904_v2 = vadd.f32 %v8337_v46, %v3738_v12 }
 0x46a   : > { %v4698_v19 = vrot.slane %v3919_v27, %v8534_v33 }
 0x46b   : > { %v3741_v63 = vpop.xlane.xlu1 %3740  ;;  %v4624_v23 = vrot.slane %v3904_v2, %v8506_v9 }
 0x46c   : > { %v3696_v24 = vpop.xlane.xlu0 %3695  ;;  %v3905_v44 = vadd.f32 %v8337_v46, %v3741_v63 }
 0x46d   : > { %v3890_v20 = vadd.f32 %v8337_v46, %v3696_v24  ;;  %v4625_v16 = vsel %vm4146_vm15, %v4624_v23, %v4620_v41 }
 0x46e   : > { %v4629_v52 = vrot.slane %v3905_v44, %v8501_v18 }
 0x46f   : > { %v4555_v49 = vrot.slane %v3890_v20, %v8486_v17  ;;  %v3744_v10 = vpop.xlane.xlu1 %3743 }
 0x470   : > { %v3786_v1 = vpop.xlane.xlu0 %3785  ;;  %v3906_v47 = vadd.f32 %v8337_v46, %v3744_v10  ;;  %v4630_v38 = vsel %vm4153_vm0, %v4629_v52, %v4625_v16 }
 0x471   : > { %v4556_v37 = vsel %vm4160_vm1, %v4555_v49, %v4551_v21  ;;  %v3920_v3 = vadd.f32 %v8337_v46, %v3786_v1 }
 0x472   : > { %v4724_v34 = vsel %vm4723_vm3, %v4556_v37, %v8865_v8  ;;  %v4634_v14 = vrot.slane %v3906_v47, %v8486_v17  ;;  %v4689_v8 = vsel %vm4125_vm12, %v4688_v61, %v4684_v32 }
 0x473   : > { %v4703_v50 = vrot.slane %v3920_v3, %v8506_v9  ;;  %v3792_v45 = vpop.xlane.xlu1 %3791  ;;  %v4694_v0 = vsel %vm9912_vm7, %v4693_v62, %v4689_v8 }
 0x474   : > { %v3789_v4 = vpop.xlane.xlu0 %3788  ;;  %v4635_v48 = vsel %vm4160_vm1, %v4634_v14, %v4630_v38  ;;  %v3922_v33 = vadd.f32 %v8337_v46, %v3792_v45  ;;  %v4699_v12 = vsel %vm4139_vm14, %v4698_v19, %v4694_v0 }
 0x475   : > { %v3921_v6 = vadd.f32 %v8337_v46, %v3789_v4  ;;  %v4726_v60 = vsel %vm4725_vm4, %v4635_v48, %v4724_v34  ;;  %v4704_v29 = vsel %vm4146_vm15, %v4703_v50, %v4699_v12 }
 0x476   : > { %v4713_v9 = vrot.slane %v3922_v33, %v8486_v17 }
 0x477   : > { %v4708_v57 = vrot.slane %v3921_v6, %v8501_v18 }
 0x479   : > { %v4709_v15 = vsel %vm4153_vm0, %v4708_v57, %v4704_v29 }
 0x47a   : > { %v4714_v46 = vsel %vm4160_vm1, %v4713_v9, %v4709_v15 }
 0x47b   : > { %v4728_v31 = vsel %vm4727_vm8, %v4714_v46, %v4726_v60 }
 0x47c   : > { %4730 = vst [vmem:[%s231_s18] sm:$0xff] %v4728_v31 }
 0x47d   : > { %5549 = shalt.err (!%p5546_p3)
}
 0x47e   : > { %s5550_s10 = scalar_lea.hbm %s9032_s26, 128  ;;  %s5554_s13 = scalar_lea.hbm %s9074_s5, 384 }
 0x47f   : > { %p5551_p4 = scmp.ne.s32.totalorder %s9032_s26, %s5550_s10  ;;  %p5555_p9 = scmp.lt.s32.totalorder %s9032_s26, %s9074_s5 }
 0x480   : > { %p5556_p10 = scmp.lt.s32.totalorder %s5554_s13, %s5550_s10 }
 0x481   : > { %p5552_p7 = pnand %p5551_p4, %p5667_p5 }
 0x482   : > { %p5557_p11 = por %p5556_p10, %p5555_p9 }
 0x483   : > { %p5553_p8 = pneg %p5552_p7 }
 0x485   : > { %p5558_p12 = pnand %p5557_p11, %p5553_p8 }
 0x487   : > { %5561 = shalt.err (!%p5558_p12)
}
 0x488   : > { %5169 = dma.vmem_to_hbm [thread:$0]  (%p5667_p5), %s4746_s19, 128, %s9032_s26, %s4732_s27  }
 0x489 PF: > { %p5175_p13 = scmp.ge.s32.totalorder %s5596_s23, 2  ;;  %s4757_s16 = sand.u32 1, %s5584_s20  }
 0x48a   : > { %s4758_s17 = scalar_lea.sflag [#allocation4], %s4757_s16 }
 0x48b   : > { %p5172_p0 = pnand %p5175_p13, %p5671_p6 }
 0x48d   : > { %p5173_p1 = pneg %p5172_p0 }
 0x48f   : > { %5579 = dma.done.wait (%p5173_p1), %s4758_s17, 128  }
 0x490   : > { %5581 = vsyncadd (%p5173_p1), %s4758_s17, 4294967168  ;;  %p16_p2 = scmp.ge.s32.totalorder %s5655_s25, 5   ;;  %s9913_s20 = smov %s5588_s21 }
 0x491   : > { %s9914_s21 = smov %s5592_s22  ;;  %s9915_s22 = smov %s5665_s28 }
 0x492   : > { %s9916_s23 = smov %s5655_s25  ;;  %18 = sbr.rel (!%p16_p2) target bundleno = 5 (0x5), region = 75 }
 0x497   :  { %4763 = vsyncpa [#allocation4], 1 }
 0x498   :  { %4765 = vsyncpa [#allocation4 + $0x1], 1 }

</bundles_post_ra>
